<compile_context>
chip_gen: v6e
topology: v6e:2x2x1
jax: 0.10.0
libtpu: 0.0.40
codegen_flags: <defaults>
</compile_context>

<pallas_src>
import jax
import jax.numpy as jnp
from jax import lax
from jax.experimental import pallas as pl
from jax.experimental.pallas import tpu as pltpu

INPUT_SIZE = 1
HIDDEN = 1          # forward()'s reshape(b, a) forces hidden == 1
NUM_LAYERS = 8
OUTPUT_SIZE = 1


def _tree_sum(parts):
    """Balanced add tree (keeps the per-step dependency chain short)."""
    while len(parts) > 1:
        nxt = [a + b for a, b in zip(parts[0::2], parts[1::2])]
        if len(parts) % 2:
            nxt.append(parts[-1])
        parts = nxt
    return parts[0]


def lstmnet_kernel(x_ref, p_ref, o_ref):
    """Fused stacked-LSTM (wavefront schedule) + out_layer2 epilogue.

    # layout: x_ref (B, T)        input sequence, time on lanes (input_size==1 squeezed)
    # layout: p_ref (13B+1, L)    packed params, layer on lanes:
    #           rows [ 0, 4B)  W_ih per gate [i,f,g,o], each replicated over B rows
    #           rows [4B, 8B)  W_hh per gate
    #           rows [8B,12B)  b_ih + b_hh per gate
    #           rows [12B,13B) V[b,l] = W2[0, (l*B+b) % L]   (epilogue weights)
    #           row   13B      b2 (replicated along lanes)
    # layout: o_ref (1, B)        y transposed (lane-dense); wrapper reshapes to (B, 1)
    # PyTorch gate packing order: [i, f, g, o].
    """
    B, T = x_ref.shape
    R, L = p_ref.shape
    assert R == 13 * B + 1, "parameter pack does not match the batch size"

    # ---- hoist all loop-invariant parameter tiles (one load each, off the chain) ----
    wih = [p_ref[(0 + k) * B:(1 + k) * B, :] for k in range(4)]     # (B, L) each
    whh = [p_ref[(4 + k) * B:(5 + k) * B, :] for k in range(4)]
    bia = [p_ref[(8 + k) * B:(9 + k) * B, :] for k in range(4)]
    v = p_ref[12 * B:13 * B, :]                                     # (B, L)
    b2 = p_ref[13 * B:13 * B + 1, 0:1]                              # (1, 1)

    x = x_ref[...]                                                  # (B, T)
    lane = lax.broadcasted_iota(jnp.int32, (1, L), 1)               # 0..L-1 on lanes
    onehot = [(lane == j).astype(jnp.float32) for j in range(L)]    # (1, L) constants
    zcol = jnp.zeros((B, 1), jnp.float32)

    h = jnp.zeros((B, L), jnp.float32)    # h[b, l] = hidden state of layer l
    c = jnp.zeros((B, L), jnp.float32)

    # ---- diagonal wavefront: at step s, layer l processes timestep t = s - l ----
    for s in range(T + L - 1):            # static unroll: 15 steps vs 64 serial cells
        # Layer-l input: x[:, s] for l == 0, previous step's h of layer l-1 otherwise.
        xcol = x[:, s:s + 1] if s < T else zcol
        parts = [xcol * onehot[0]]
        parts += [h[:, j:j + 1] * onehot[j + 1] for j in range(L - 1)]
        inp = _tree_sum(parts)            # (B, L): lane l holds layer l's input

        gi = inp * wih[0] + h * whh[0] + bia[0]
        gf = inp * wih[1] + h * whh[1] + bia[1]
        gg = inp * wih[2] + h * whh[2] + bia[2]
        go = inp * wih[3] + h * whh[3] + bia[3]
        i_a = jax.nn.sigmoid(gi)
        f_a = jax.nn.sigmoid(gf)
        g_a = jnp.tanh(gg)
        o_a = jax.nn.sigmoid(go)
        c_cand = f_a * c + i_a * g_a
        h_cand = o_a * jnp.tanh(c_cand)

        lo, hi = max(0, s - T + 1), min(L - 1, s)   # layers active at this step
        if lo == 0 and hi == L - 1:
            c, h = c_cand, h_cand
        else:
            valid = (lane >= lo) & (lane <= hi)     # (1, L), broadcasts over B
            c = jnp.where(valid, c_cand, c)
            h = jnp.where(valid, h_cand, h)

    # ---- fused out_layer2: y[r] = b2 + sum_{l*B+b in [r*L,(r+1)*L)} h[b,l] * V[b,l],
    # which equals torch's (h_n.reshape(B, L) @ W2.T + b2)[r] exactly (including the
    # layer/batch interleaving that reshape produces).
    flat = (lax.broadcasted_iota(jnp.int32, (B, L), 1) * B
            + lax.broadcasted_iota(jnp.int32, (B, L), 0))           # flat[b,l] = l*B+b
    wh = h * v                                                      # (B, L)
    out = jnp.zeros((1, B), jnp.float32)
    for r in range(B):
        m = (flat >= r * L) & (flat < (r + 1) * L)
        y_r = jnp.sum(jnp.where(m, wh, 0.0), axis=0, keepdims=True)  # (1, L)
        y_r = jnp.sum(y_r, axis=1, keepdims=True)                    # (1, 1)
        oh = (lax.broadcasted_iota(jnp.int32, (1, B), 1) == r).astype(jnp.float32)
        out = out + y_r * oh
    o_ref[...] = out + b2


def init_params(key):
    """PyTorch-style uniform(-1/sqrt(H), 1/sqrt(H)) init (raw, per-tensor)."""
    k = 1.0 / float(HIDDEN) ** 0.5
    keys = jax.random.split(key, 4 * NUM_LAYERS + 2)
    wih, whh, bias = [], [], []
    idx = 0
    for l in range(NUM_LAYERS):
        in_dim = INPUT_SIZE if l == 0 else HIDDEN          # both == 1 here
        w_ih = jax.random.uniform(keys[idx], (4 * HIDDEN, in_dim), jnp.float32, -k, k); idx += 1
        w_hh = jax.random.uniform(keys[idx], (4 * HIDDEN, HIDDEN), jnp.float32, -k, k); idx += 1
        b_ih = jax.random.uniform(keys[idx], (4 * HIDDEN,), jnp.float32, -k, k); idx += 1
        b_hh = jax.random.uniform(keys[idx], (4 * HIDDEN,), jnp.float32, -k, k); idx += 1
        wih.append(w_ih[:, 0])        # (4H,) == W_ih.T squeezed (in_dim == 1)
        whh.append(w_hh[:, 0])        # (4H,) == W_hh.T squeezed (H == 1)
        bias.append(b_ih + b_hh)      # (4H,)
    k2 = 1.0 / float(NUM_LAYERS) ** 0.5
    w2 = jax.random.uniform(keys[idx], (OUTPUT_SIZE, NUM_LAYERS), jnp.float32, -k2, k2); idx += 1
    b2 = jax.random.uniform(keys[idx], (OUTPUT_SIZE,), jnp.float32, -k2, k2); idx += 1
    return dict(wih=jnp.stack(wih), whh=jnp.stack(whh), bias=jnp.stack(bias), w2=w2, b2=b2)


def pack_params(params, batch_size):
    """Build the single (13B+1, L) parameter block.  Built ONCE (not per forward call)."""
    B = batch_size
    L = params["wih"].shape[0]
    assert params["wih"].shape[1] == 4 * HIDDEN == 4, "pack layout assumes hidden == 1"

    def rep(mat):                     # (L, 4) -> (4B, L): gate-major, replicated over B rows
        return jnp.repeat(mat.T, B, axis=0)

    idx = (jnp.arange(L)[None, :] * B + jnp.arange(B)[:, None]) % L   # (B, L)
    v = params["w2"][0, idx]                                          # V[b,l] = w2[(l*B+b)%L]
    b2row = jnp.full((1, L), params["b2"][0], jnp.float32)
    return jnp.concatenate(
        [rep(params["wih"]), rep(params["whh"]), rep(params["bias"]), v, b2row],
        axis=0).astype(jnp.float32)


def lstmnet_forward(x, pack):
    """x: (B, T, input_size) matching torch's batch_first input `share`."""
    x = x.astype(jnp.float32)
    B, T, I = x.shape
    R, L = pack.shape
    assert I == 1, "forward's reshape(b, a) requires input_size == hidden == 1"
    assert R == 13 * B + 1, "parameter pack was built for a different batch size"

    vmem = pl.BlockSpec(memory_space=pltpu.MemorySpace.VMEM)
    y_t = pl.pallas_call(
        lstmnet_kernel,
        out_shape=jax.ShapeDtypeStruct((1, B), jnp.float32),
        in_specs=[vmem, vmem],
        out_specs=vmem,
    )(x.reshape(B, T), pack)
    return y_t.reshape(B, OUTPUT_SIZE)


def lstmnet_reference(x, params):
    """Pure-JAX reference mirroring the torch forward exactly."""
    x = x.astype(jnp.float32)
    B, T, _ = x.shape
    L, H4 = params["wih"].shape
    H = H4 // 4
    h = jnp.zeros((L, B, H), jnp.float32)
    c = jnp.zeros((L, B, H), jnp.float32)
    for t in range(T):
        inp = x[:, t, :]
        new_h, new_c = [], []
        for l in range(L):
            gates = (inp * params["wih"][l][None, :]
                     + h[l] * params["whh"][l][None, :]
                     + params["bias"][l][None, :])
            i_g = jax.nn.sigmoid(gates[:, 0 * H:1 * H])
            f_g = jax.nn.sigmoid(gates[:, 1 * H:2 * H])
            g_g = jnp.tanh(gates[:, 2 * H:3 * H])
            o_g = jax.nn.sigmoid(gates[:, 3 * H:4 * H])
            cl = f_g * c[l] + i_g * g_g
            hl = o_g * jnp.tanh(cl)
            new_h.append(hl)
            new_c.append(cl)
            inp = hl
        h, c = jnp.stack(new_h), jnp.stack(new_c)
    out = h.reshape(B, L)                 # torch: a, b, c = h.shape; h.reshape(b, a)
    return out @ params["w2"].T + params["b2"][None, :]


if __name__ == "__main__":
    key = jax.random.PRNGKey(0)
    pkey, xkey = jax.random.split(key)
    params = init_params(pkey)

    B, T = 2, 8
    pack = pack_params(params, B)         # one-time packing (not per call)
    share = jax.random.normal(xkey, (B, T, INPUT_SIZE), jnp.float32)

    y = jax.block_until_ready(jax.jit(lstmnet_forward)(share, pack))

    y_ref = lstmnet_reference(share, params)
    assert y.shape == (B, OUTPUT_SIZE), y.shape
    assert jnp.allclose(y, y_ref, atol=1e-4, rtol=1e-4), (y, y_ref)
    print("KERNEL_OK")
</pallas_src>

<mosaic_0001>
module attributes {stable_mosaic.version = 11 : i64} {
  func.func @lstmnet_kernel(%arg0: memref<2x8xf32, #tpu.memory_space<vmem>>, %arg1: memref<27x8xf32, #tpu.memory_space<vmem>>, %arg2: memref<1x2xf32, #tpu.memory_space<vmem>>) attributes {dimension_semantics = [], scalar_prefetch = 0 : i64, scratch_operands = 0 : i64, tpu.core_type = #tpu.core_type<tc>} {
    %c0 = arith.constant 0 : index
    %c0_0 = arith.constant 0 : index
    %0 = vector.load %arg1[%c0, %c0_0] : memref<27x8xf32, #tpu.memory_space<vmem>>, vector<2x8xf32>
    %c2 = arith.constant 2 : index
    %c0_1 = arith.constant 0 : index
    %1 = vector.load %arg1[%c2, %c0_1] : memref<27x8xf32, #tpu.memory_space<vmem>>, vector<2x8xf32>
    %c4 = arith.constant 4 : index
    %c0_2 = arith.constant 0 : index
    %2 = vector.load %arg1[%c4, %c0_2] : memref<27x8xf32, #tpu.memory_space<vmem>>, vector<2x8xf32>
    %c6 = arith.constant 6 : index
    %c0_3 = arith.constant 0 : index
    %3 = vector.load %arg1[%c6, %c0_3] : memref<27x8xf32, #tpu.memory_space<vmem>>, vector<2x8xf32>
    %c8 = arith.constant 8 : index
    %c0_4 = arith.constant 0 : index
    %4 = vector.load %arg1[%c8, %c0_4] : memref<27x8xf32, #tpu.memory_space<vmem>>, vector<2x8xf32>
    %c10 = arith.constant 10 : index
    %c0_5 = arith.constant 0 : index
    %5 = vector.load %arg1[%c10, %c0_5] : memref<27x8xf32, #tpu.memory_space<vmem>>, vector<2x8xf32>
    %c12 = arith.constant 12 : index
    %c0_6 = arith.constant 0 : index
    %6 = vector.load %arg1[%c12, %c0_6] : memref<27x8xf32, #tpu.memory_space<vmem>>, vector<2x8xf32>
    %c14 = arith.constant 14 : index
    %c0_7 = arith.constant 0 : index
    %7 = vector.load %arg1[%c14, %c0_7] : memref<27x8xf32, #tpu.memory_space<vmem>>, vector<2x8xf32>
    %c16 = arith.constant 16 : index
    %c0_8 = arith.constant 0 : index
    %8 = vector.load %arg1[%c16, %c0_8] : memref<27x8xf32, #tpu.memory_space<vmem>>, vector<2x8xf32>
    %c18 = arith.constant 18 : index
    %c0_9 = arith.constant 0 : index
    %9 = vector.load %arg1[%c18, %c0_9] : memref<27x8xf32, #tpu.memory_space<vmem>>, vector<2x8xf32>
    %c20 = arith.constant 20 : index
    %c0_10 = arith.constant 0 : index
    %10 = vector.load %arg1[%c20, %c0_10] : memref<27x8xf32, #tpu.memory_space<vmem>>, vector<2x8xf32>
    %c22 = arith.constant 22 : index
    %c0_11 = arith.constant 0 : index
    %11 = vector.load %arg1[%c22, %c0_11] : memref<27x8xf32, #tpu.memory_space<vmem>>, vector<2x8xf32>
    %c24 = arith.constant 24 : index
    %c0_12 = arith.constant 0 : index
    %12 = vector.load %arg1[%c24, %c0_12] : memref<27x8xf32, #tpu.memory_space<vmem>>, vector<2x8xf32>
    %c26 = arith.constant 26 : index
    %c0_13 = arith.constant 0 : index
    %13 = vector.load %arg1[%c26, %c0_13] : memref<27x8xf32, #tpu.memory_space<vmem>>, vector<1x1xf32>
    %c0_14 = arith.constant 0 : index
    %c0_15 = arith.constant 0 : index
    %14 = vector.load %arg0[%c0_14, %c0_15] : memref<2x8xf32, #tpu.memory_space<vmem>>, vector<2x8xf32>
    %15 = tpu.iota {dimensions = array<i32: 1>} : vector<1x8xi32>
    %c0_i32 = arith.constant 0 : i32
    %16 = vector.broadcast %c0_i32 : i32 to vector<1x8xi32>
    %17 = arith.cmpi eq, %15, %16 : vector<1x8xi32>
    %18 = arith.extui %17 : vector<1x8xi1> to vector<1x8xi32>
    %19 = arith.sitofp %18 : vector<1x8xi32> to vector<1x8xf32>
    %c1_i32 = arith.constant 1 : i32
    %20 = vector.broadcast %c1_i32 : i32 to vector<1x8xi32>
    %21 = arith.cmpi eq, %15, %20 : vector<1x8xi32>
    %22 = arith.extui %21 : vector<1x8xi1> to vector<1x8xi32>
    %23 = arith.sitofp %22 : vector<1x8xi32> to vector<1x8xf32>
    %c2_i32 = arith.constant 2 : i32
    %24 = vector.broadcast %c2_i32 : i32 to vector<1x8xi32>
    %25 = arith.cmpi eq, %15, %24 : vector<1x8xi32>
    %26 = arith.extui %25 : vector<1x8xi1> to vector<1x8xi32>
    %27 = arith.sitofp %26 : vector<1x8xi32> to vector<1x8xf32>
    %c3_i32 = arith.constant 3 : i32
    %28 = vector.broadcast %c3_i32 : i32 to vector<1x8xi32>
    %29 = arith.cmpi eq, %15, %28 : vector<1x8xi32>
    %30 = arith.extui %29 : vector<1x8xi1> to vector<1x8xi32>
    %31 = arith.sitofp %30 : vector<1x8xi32> to vector<1x8xf32>
    %c4_i32 = arith.constant 4 : i32
    %32 = vector.broadcast %c4_i32 : i32 to vector<1x8xi32>
    %33 = arith.cmpi eq, %15, %32 : vector<1x8xi32>
    %34 = arith.extui %33 : vector<1x8xi1> to vector<1x8xi32>
    %35 = arith.sitofp %34 : vector<1x8xi32> to vector<1x8xf32>
    %c5_i32 = arith.constant 5 : i32
    %36 = vector.broadcast %c5_i32 : i32 to vector<1x8xi32>
    %37 = arith.cmpi eq, %15, %36 : vector<1x8xi32>
    %38 = arith.extui %37 : vector<1x8xi1> to vector<1x8xi32>
    %39 = arith.sitofp %38 : vector<1x8xi32> to vector<1x8xf32>
    %c6_i32 = arith.constant 6 : i32
    %40 = vector.broadcast %c6_i32 : i32 to vector<1x8xi32>
    %41 = arith.cmpi eq, %15, %40 : vector<1x8xi32>
    %42 = arith.extui %41 : vector<1x8xi1> to vector<1x8xi32>
    %43 = arith.sitofp %42 : vector<1x8xi32> to vector<1x8xf32>
    %c7_i32 = arith.constant 7 : i32
    %44 = vector.broadcast %c7_i32 : i32 to vector<1x8xi32>
    %45 = arith.cmpi eq, %15, %44 : vector<1x8xi32>
    %46 = arith.extui %45 : vector<1x8xi1> to vector<1x8xi32>
    %47 = arith.sitofp %46 : vector<1x8xi32> to vector<1x8xf32>
    %cst = arith.constant 0.000000e+00 : f32
    %48 = vector.broadcast %cst : f32 to vector<2x1xf32>
    %cst_16 = arith.constant 0.000000e+00 : f32
    %49 = vector.broadcast %cst_16 : f32 to vector<2x8xf32>
    %cst_17 = arith.constant 0.000000e+00 : f32
    %50 = vector.broadcast %cst_17 : f32 to vector<2x8xf32>
    %51 = vector.extract_strided_slice %14 {offsets = [0, 0], sizes = [2, 1], strides = [1, 1]} : vector<2x8xf32> to vector<2x1xf32>
    %52 = vector.broadcast %51 : vector<2x1xf32> to vector<2x8xf32>
    %53 = vector.broadcast %19 : vector<1x8xf32> to vector<2x8xf32>
    %54 = arith.mulf %52, %53 : vector<2x8xf32>
    %55 = vector.extract_strided_slice %49 {offsets = [0, 0], sizes = [2, 1], strides = [1, 1]} : vector<2x8xf32> to vector<2x1xf32>
    %56 = vector.broadcast %55 : vector<2x1xf32> to vector<2x8xf32>
    %57 = vector.broadcast %23 : vector<1x8xf32> to vector<2x8xf32>
    %58 = arith.mulf %56, %57 : vector<2x8xf32>
    %59 = vector.extract_strided_slice %49 {offsets = [0, 1], sizes = [2, 1], strides = [1, 1]} : vector<2x8xf32> to vector<2x1xf32>
    %60 = vector.broadcast %59 : vector<2x1xf32> to vector<2x8xf32>
    %61 = vector.broadcast %27 : vector<1x8xf32> to vector<2x8xf32>
    %62 = arith.mulf %60, %61 : vector<2x8xf32>
    %63 = vector.extract_strided_slice %49 {offsets = [0, 2], sizes = [2, 1], strides = [1, 1]} : vector<2x8xf32> to vector<2x1xf32>
    %64 = vector.broadcast %63 : vector<2x1xf32> to vector<2x8xf32>
    %65 = vector.broadcast %31 : vector<1x8xf32> to vector<2x8xf32>
    %66 = arith.mulf %64, %65 : vector<2x8xf32>
    %67 = vector.extract_strided_slice %49 {offsets = [0, 3], sizes = [2, 1], strides = [1, 1]} : vector<2x8xf32> to vector<2x1xf32>
    %68 = vector.broadcast %67 : vector<2x1xf32> to vector<2x8xf32>
    %69 = vector.broadcast %35 : vector<1x8xf32> to vector<2x8xf32>
    %70 = arith.mulf %68, %69 : vector<2x8xf32>
    %71 = vector.extract_strided_slice %49 {offsets = [0, 4], sizes = [2, 1], strides = [1, 1]} : vector<2x8xf32> to vector<2x1xf32>
    %72 = vector.broadcast %71 : vector<2x1xf32> to vector<2x8xf32>
    %73 = vector.broadcast %39 : vector<1x8xf32> to vector<2x8xf32>
    %74 = arith.mulf %72, %73 : vector<2x8xf32>
    %75 = vector.extract_strided_slice %49 {offsets = [0, 5], sizes = [2, 1], strides = [1, 1]} : vector<2x8xf32> to vector<2x1xf32>
    %76 = vector.broadcast %75 : vector<2x1xf32> to vector<2x8xf32>
    %77 = vector.broadcast %43 : vector<1x8xf32> to vector<2x8xf32>
    %78 = arith.mulf %76, %77 : vector<2x8xf32>
    %79 = vector.extract_strided_slice %49 {offsets = [0, 6], sizes = [2, 1], strides = [1, 1]} : vector<2x8xf32> to vector<2x1xf32>
    %80 = vector.broadcast %79 : vector<2x1xf32> to vector<2x8xf32>
    %81 = vector.broadcast %47 : vector<1x8xf32> to vector<2x8xf32>
    %82 = arith.mulf %80, %81 : vector<2x8xf32>
    %83 = arith.addf %54, %58 : vector<2x8xf32>
    %84 = arith.addf %62, %66 : vector<2x8xf32>
    %85 = arith.addf %70, %74 : vector<2x8xf32>
    %86 = arith.addf %78, %82 : vector<2x8xf32>
    %87 = arith.addf %83, %84 : vector<2x8xf32>
    %88 = arith.addf %85, %86 : vector<2x8xf32>
    %89 = arith.addf %87, %88 : vector<2x8xf32>
    %90 = arith.mulf %89, %0 : vector<2x8xf32>
    %91 = arith.mulf %49, %4 : vector<2x8xf32>
    %92 = arith.addf %90, %91 : vector<2x8xf32>
    %93 = arith.addf %92, %8 : vector<2x8xf32>
    %94 = arith.mulf %89, %1 : vector<2x8xf32>
    %95 = arith.mulf %49, %5 : vector<2x8xf32>
    %96 = arith.addf %94, %95 : vector<2x8xf32>
    %97 = arith.addf %96, %9 : vector<2x8xf32>
    %98 = arith.mulf %89, %2 : vector<2x8xf32>
    %99 = arith.mulf %49, %6 : vector<2x8xf32>
    %100 = arith.addf %98, %99 : vector<2x8xf32>
    %101 = arith.addf %100, %10 : vector<2x8xf32>
    %102 = arith.mulf %89, %3 : vector<2x8xf32>
    %103 = arith.mulf %49, %7 : vector<2x8xf32>
    %104 = arith.addf %102, %103 : vector<2x8xf32>
    %105 = arith.addf %104, %11 : vector<2x8xf32>
    %106 = arith.negf %93 : vector<2x8xf32>
    %107 = math.exp %106 : vector<2x8xf32>
    %cst_18 = arith.constant 1.000000e+00 : f32
    %108 = vector.broadcast %cst_18 : f32 to vector<2x8xf32>
    %109 = arith.addf %108, %107 : vector<2x8xf32>
    %110 = arith.divf %108, %109 : vector<2x8xf32>
    %111 = arith.negf %97 : vector<2x8xf32>
    %112 = math.exp %111 : vector<2x8xf32>
    %cst_19 = arith.constant 1.000000e+00 : f32
    %113 = vector.broadcast %cst_19 : f32 to vector<2x8xf32>
    %114 = arith.addf %113, %112 : vector<2x8xf32>
    %115 = arith.divf %113, %114 : vector<2x8xf32>
    %116 = math.tanh %101 : vector<2x8xf32>
    %117 = arith.negf %105 : vector<2x8xf32>
    %118 = math.exp %117 : vector<2x8xf32>
    %cst_20 = arith.constant 1.000000e+00 : f32
    %119 = vector.broadcast %cst_20 : f32 to vector<2x8xf32>
    %120 = arith.addf %119, %118 : vector<2x8xf32>
    %121 = arith.divf %119, %120 : vector<2x8xf32>
    %122 = arith.mulf %115, %50 : vector<2x8xf32>
    %123 = arith.mulf %110, %116 : vector<2x8xf32>
    %124 = arith.addf %122, %123 : vector<2x8xf32>
    %125 = math.tanh %124 : vector<2x8xf32>
    %126 = arith.mulf %121, %125 : vector<2x8xf32>
    %c0_i32_21 = arith.constant 0 : i32
    %127 = vector.broadcast %c0_i32_21 : i32 to vector<1x8xi32>
    %128 = arith.cmpi sge, %15, %127 : vector<1x8xi32>
    %c0_i32_22 = arith.constant 0 : i32
    %129 = vector.broadcast %c0_i32_22 : i32 to vector<1x8xi32>
    %130 = arith.cmpi sle, %15, %129 : vector<1x8xi32>
    %131 = arith.andi %128, %130 : vector<1x8xi1>
    %132 = vector.shape_cast %131 : vector<1x8xi1> to vector<1x8xi1>
    %133 = vector.broadcast %132 : vector<1x8xi1> to vector<2x8xi1>
    %134 = arith.select %133, %124, %50 : vector<2x8xi1>, vector<2x8xf32>
    %135 = vector.shape_cast %131 : vector<1x8xi1> to vector<1x8xi1>
    %136 = vector.broadcast %135 : vector<1x8xi1> to vector<2x8xi1>
    %137 = arith.select %136, %126, %49 : vector<2x8xi1>, vector<2x8xf32>
    %138 = vector.extract_strided_slice %14 {offsets = [0, 1], sizes = [2, 1], strides = [1, 1]} : vector<2x8xf32> to vector<2x1xf32>
    %139 = vector.broadcast %138 : vector<2x1xf32> to vector<2x8xf32>
    %140 = vector.broadcast %19 : vector<1x8xf32> to vector<2x8xf32>
    %141 = arith.mulf %139, %140 : vector<2x8xf32>
    %142 = vector.extract_strided_slice %137 {offsets = [0, 0], sizes = [2, 1], strides = [1, 1]} : vector<2x8xf32> to vector<2x1xf32>
    %143 = vector.broadcast %142 : vector<2x1xf32> to vector<2x8xf32>
    %144 = vector.broadcast %23 : vector<1x8xf32> to vector<2x8xf32>
    %145 = arith.mulf %143, %144 : vector<2x8xf32>
    %146 = vector.extract_strided_slice %137 {offsets = [0, 1], sizes = [2, 1], strides = [1, 1]} : vector<2x8xf32> to vector<2x1xf32>
    %147 = vector.broadcast %146 : vector<2x1xf32> to vector<2x8xf32>
    %148 = vector.broadcast %27 : vector<1x8xf32> to vector<2x8xf32>
    %149 = arith.mulf %147, %148 : vector<2x8xf32>
    %150 = vector.extract_strided_slice %137 {offsets = [0, 2], sizes = [2, 1], strides = [1, 1]} : vector<2x8xf32> to vector<2x1xf32>
    %151 = vector.broadcast %150 : vector<2x1xf32> to vector<2x8xf32>
    %152 = vector.broadcast %31 : vector<1x8xf32> to vector<2x8xf32>
    %153 = arith.mulf %151, %152 : vector<2x8xf32>
    %154 = vector.extract_strided_slice %137 {offsets = [0, 3], sizes = [2, 1], strides = [1, 1]} : vector<2x8xf32> to vector<2x1xf32>
    %155 = vector.broadcast %154 : vector<2x1xf32> to vector<2x8xf32>
    %156 = vector.broadcast %35 : vector<1x8xf32> to vector<2x8xf32>
    %157 = arith.mulf %155, %156 : vector<2x8xf32>
    %158 = vector.extract_strided_slice %137 {offsets = [0, 4], sizes = [2, 1], strides = [1, 1]} : vector<2x8xf32> to vector<2x1xf32>
    %159 = vector.broadcast %158 : vector<2x1xf32> to vector<2x8xf32>
    %160 = vector.broadcast %39 : vector<1x8xf32> to vector<2x8xf32>
    %161 = arith.mulf %159, %160 : vector<2x8xf32>
    %162 = vector.extract_strided_slice %137 {offsets = [0, 5], sizes = [2, 1], strides = [1, 1]} : vector<2x8xf32> to vector<2x1xf32>
    %163 = vector.broadcast %162 : vector<2x1xf32> to vector<2x8xf32>
    %164 = vector.broadcast %43 : vector<1x8xf32> to vector<2x8xf32>
    %165 = arith.mulf %163, %164 : vector<2x8xf32>
    %166 = vector.extract_strided_slice %137 {offsets = [0, 6], sizes = [2, 1], strides = [1, 1]} : vector<2x8xf32> to vector<2x1xf32>
    %167 = vector.broadcast %166 : vector<2x1xf32> to vector<2x8xf32>
    %168 = vector.broadcast %47 : vector<1x8xf32> to vector<2x8xf32>
    %169 = arith.mulf %167, %168 : vector<2x8xf32>
    %170 = arith.addf %141, %145 : vector<2x8xf32>
    %171 = arith.addf %149, %153 : vector<2x8xf32>
    %172 = arith.addf %157, %161 : vector<2x8xf32>
    %173 = arith.addf %165, %169 : vector<2x8xf32>
    %174 = arith.addf %170, %171 : vector<2x8xf32>
    %175 = arith.addf %172, %173 : vector<2x8xf32>
    %176 = arith.addf %174, %175 : vector<2x8xf32>
    %177 = arith.mulf %176, %0 : vector<2x8xf32>
    %178 = arith.mulf %137, %4 : vector<2x8xf32>
    %179 = arith.addf %177, %178 : vector<2x8xf32>
    %180 = arith.addf %179, %8 : vector<2x8xf32>
    %181 = arith.mulf %176, %1 : vector<2x8xf32>
    %182 = arith.mulf %137, %5 : vector<2x8xf32>
    %183 = arith.addf %181, %182 : vector<2x8xf32>
    %184 = arith.addf %183, %9 : vector<2x8xf32>
    %185 = arith.mulf %176, %2 : vector<2x8xf32>
    %186 = arith.mulf %137, %6 : vector<2x8xf32>
    %187 = arith.addf %185, %186 : vector<2x8xf32>
    %188 = arith.addf %187, %10 : vector<2x8xf32>
    %189 = arith.mulf %176, %3 : vector<2x8xf32>
    %190 = arith.mulf %137, %7 : vector<2x8xf32>
    %191 = arith.addf %189, %190 : vector<2x8xf32>
    %192 = arith.addf %191, %11 : vector<2x8xf32>
    %193 = arith.negf %180 : vector<2x8xf32>
    %194 = math.exp %193 : vector<2x8xf32>
    %cst_23 = arith.constant 1.000000e+00 : f32
    %195 = vector.broadcast %cst_23 : f32 to vector<2x8xf32>
    %196 = arith.addf %195, %194 : vector<2x8xf32>
    %197 = arith.divf %195, %196 : vector<2x8xf32>
    %198 = arith.negf %184 : vector<2x8xf32>
    %199 = math.exp %198 : vector<2x8xf32>
    %cst_24 = arith.constant 1.000000e+00 : f32
    %200 = vector.broadcast %cst_24 : f32 to vector<2x8xf32>
    %201 = arith.addf %200, %199 : vector<2x8xf32>
    %202 = arith.divf %200, %201 : vector<2x8xf32>
    %203 = math.tanh %188 : vector<2x8xf32>
    %204 = arith.negf %192 : vector<2x8xf32>
    %205 = math.exp %204 : vector<2x8xf32>
    %cst_25 = arith.constant 1.000000e+00 : f32
    %206 = vector.broadcast %cst_25 : f32 to vector<2x8xf32>
    %207 = arith.addf %206, %205 : vector<2x8xf32>
    %208 = arith.divf %206, %207 : vector<2x8xf32>
    %209 = arith.mulf %202, %134 : vector<2x8xf32>
    %210 = arith.mulf %197, %203 : vector<2x8xf32>
    %211 = arith.addf %209, %210 : vector<2x8xf32>
    %212 = math.tanh %211 : vector<2x8xf32>
    %213 = arith.mulf %208, %212 : vector<2x8xf32>
    %c0_i32_26 = arith.constant 0 : i32
    %214 = vector.broadcast %c0_i32_26 : i32 to vector<1x8xi32>
    %215 = arith.cmpi sge, %15, %214 : vector<1x8xi32>
    %c1_i32_27 = arith.constant 1 : i32
    %216 = vector.broadcast %c1_i32_27 : i32 to vector<1x8xi32>
    %217 = arith.cmpi sle, %15, %216 : vector<1x8xi32>
    %218 = arith.andi %215, %217 : vector<1x8xi1>
    %219 = vector.shape_cast %218 : vector<1x8xi1> to vector<1x8xi1>
    %220 = vector.broadcast %219 : vector<1x8xi1> to vector<2x8xi1>
    %221 = arith.select %220, %211, %134 : vector<2x8xi1>, vector<2x8xf32>
    %222 = vector.shape_cast %218 : vector<1x8xi1> to vector<1x8xi1>
    %223 = vector.broadcast %222 : vector<1x8xi1> to vector<2x8xi1>
    %224 = arith.select %223, %213, %137 : vector<2x8xi1>, vector<2x8xf32>
    %225 = vector.extract_strided_slice %14 {offsets = [0, 2], sizes = [2, 1], strides = [1, 1]} : vector<2x8xf32> to vector<2x1xf32>
    %226 = vector.broadcast %225 : vector<2x1xf32> to vector<2x8xf32>
    %227 = vector.broadcast %19 : vector<1x8xf32> to vector<2x8xf32>
    %228 = arith.mulf %226, %227 : vector<2x8xf32>
    %229 = vector.extract_strided_slice %224 {offsets = [0, 0], sizes = [2, 1], strides = [1, 1]} : vector<2x8xf32> to vector<2x1xf32>
    %230 = vector.broadcast %229 : vector<2x1xf32> to vector<2x8xf32>
    %231 = vector.broadcast %23 : vector<1x8xf32> to vector<2x8xf32>
    %232 = arith.mulf %230, %231 : vector<2x8xf32>
    %233 = vector.extract_strided_slice %224 {offsets = [0, 1], sizes = [2, 1], strides = [1, 1]} : vector<2x8xf32> to vector<2x1xf32>
    %234 = vector.broadcast %233 : vector<2x1xf32> to vector<2x8xf32>
    %235 = vector.broadcast %27 : vector<1x8xf32> to vector<2x8xf32>
    %236 = arith.mulf %234, %235 : vector<2x8xf32>
    %237 = vector.extract_strided_slice %224 {offsets = [0, 2], sizes = [2, 1], strides = [1, 1]} : vector<2x8xf32> to vector<2x1xf32>
    %238 = vector.broadcast %237 : vector<2x1xf32> to vector<2x8xf32>
    %239 = vector.broadcast %31 : vector<1x8xf32> to vector<2x8xf32>
    %240 = arith.mulf %238, %239 : vector<2x8xf32>
    %241 = vector.extract_strided_slice %224 {offsets = [0, 3], sizes = [2, 1], strides = [1, 1]} : vector<2x8xf32> to vector<2x1xf32>
    %242 = vector.broadcast %241 : vector<2x1xf32> to vector<2x8xf32>
    %243 = vector.broadcast %35 : vector<1x8xf32> to vector<2x8xf32>
    %244 = arith.mulf %242, %243 : vector<2x8xf32>
    %245 = vector.extract_strided_slice %224 {offsets = [0, 4], sizes = [2, 1], strides = [1, 1]} : vector<2x8xf32> to vector<2x1xf32>
    %246 = vector.broadcast %245 : vector<2x1xf32> to vector<2x8xf32>
    %247 = vector.broadcast %39 : vector<1x8xf32> to vector<2x8xf32>
    %248 = arith.mulf %246, %247 : vector<2x8xf32>
    %249 = vector.extract_strided_slice %224 {offsets = [0, 5], sizes = [2, 1], strides = [1, 1]} : vector<2x8xf32> to vector<2x1xf32>
    %250 = vector.broadcast %249 : vector<2x1xf32> to vector<2x8xf32>
    %251 = vector.broadcast %43 : vector<1x8xf32> to vector<2x8xf32>
    %252 = arith.mulf %250, %251 : vector<2x8xf32>
    %253 = vector.extract_strided_slice %224 {offsets = [0, 6], sizes = [2, 1], strides = [1, 1]} : vector<2x8xf32> to vector<2x1xf32>
    %254 = vector.broadcast %253 : vector<2x1xf32> to vector<2x8xf32>
    %255 = vector.broadcast %47 : vector<1x8xf32> to vector<2x8xf32>
    %256 = arith.mulf %254, %255 : vector<2x8xf32>
    %257 = arith.addf %228, %232 : vector<2x8xf32>
    %258 = arith.addf %236, %240 : vector<2x8xf32>
    %259 = arith.addf %244, %248 : vector<2x8xf32>
    %260 = arith.addf %252, %256 : vector<2x8xf32>
    %261 = arith.addf %257, %258 : vector<2x8xf32>
    %262 = arith.addf %259, %260 : vector<2x8xf32>
    %263 = arith.addf %261, %262 : vector<2x8xf32>
    %264 = arith.mulf %263, %0 : vector<2x8xf32>
    %265 = arith.mulf %224, %4 : vector<2x8xf32>
    %266 = arith.addf %264, %265 : vector<2x8xf32>
    %267 = arith.addf %266, %8 : vector<2x8xf32>
    %268 = arith.mulf %263, %1 : vector<2x8xf32>
    %269 = arith.mulf %224, %5 : vector<2x8xf32>
    %270 = arith.addf %268, %269 : vector<2x8xf32>
    %271 = arith.addf %270, %9 : vector<2x8xf32>
    %272 = arith.mulf %263, %2 : vector<2x8xf32>
    %273 = arith.mulf %224, %6 : vector<2x8xf32>
    %274 = arith.addf %272, %273 : vector<2x8xf32>
    %275 = arith.addf %274, %10 : vector<2x8xf32>
    %276 = arith.mulf %263, %3 : vector<2x8xf32>
    %277 = arith.mulf %224, %7 : vector<2x8xf32>
    %278 = arith.addf %276, %277 : vector<2x8xf32>
    %279 = arith.addf %278, %11 : vector<2x8xf32>
    %280 = arith.negf %267 : vector<2x8xf32>
    %281 = math.exp %280 : vector<2x8xf32>
    %cst_28 = arith.constant 1.000000e+00 : f32
    %282 = vector.broadcast %cst_28 : f32 to vector<2x8xf32>
    %283 = arith.addf %282, %281 : vector<2x8xf32>
    %284 = arith.divf %282, %283 : vector<2x8xf32>
    %285 = arith.negf %271 : vector<2x8xf32>
    %286 = math.exp %285 : vector<2x8xf32>
    %cst_29 = arith.constant 1.000000e+00 : f32
    %287 = vector.broadcast %cst_29 : f32 to vector<2x8xf32>
    %288 = arith.addf %287, %286 : vector<2x8xf32>
    %289 = arith.divf %287, %288 : vector<2x8xf32>
    %290 = math.tanh %275 : vector<2x8xf32>
    %291 = arith.negf %279 : vector<2x8xf32>
    %292 = math.exp %291 : vector<2x8xf32>
    %cst_30 = arith.constant 1.000000e+00 : f32
    %293 = vector.broadcast %cst_30 : f32 to vector<2x8xf32>
    %294 = arith.addf %293, %292 : vector<2x8xf32>
    %295 = arith.divf %293, %294 : vector<2x8xf32>
    %296 = arith.mulf %289, %221 : vector<2x8xf32>
    %297 = arith.mulf %284, %290 : vector<2x8xf32>
    %298 = arith.addf %296, %297 : vector<2x8xf32>
    %299 = math.tanh %298 : vector<2x8xf32>
    %300 = arith.mulf %295, %299 : vector<2x8xf32>
    %c0_i32_31 = arith.constant 0 : i32
    %301 = vector.broadcast %c0_i32_31 : i32 to vector<1x8xi32>
    %302 = arith.cmpi sge, %15, %301 : vector<1x8xi32>
    %c2_i32_32 = arith.constant 2 : i32
    %303 = vector.broadcast %c2_i32_32 : i32 to vector<1x8xi32>
    %304 = arith.cmpi sle, %15, %303 : vector<1x8xi32>
    %305 = arith.andi %302, %304 : vector<1x8xi1>
    %306 = vector.shape_cast %305 : vector<1x8xi1> to vector<1x8xi1>
    %307 = vector.broadcast %306 : vector<1x8xi1> to vector<2x8xi1>
    %308 = arith.select %307, %298, %221 : vector<2x8xi1>, vector<2x8xf32>
    %309 = vector.shape_cast %305 : vector<1x8xi1> to vector<1x8xi1>
    %310 = vector.broadcast %309 : vector<1x8xi1> to vector<2x8xi1>
    %311 = arith.select %310, %300, %224 : vector<2x8xi1>, vector<2x8xf32>
    %312 = vector.extract_strided_slice %14 {offsets = [0, 3], sizes = [2, 1], strides = [1, 1]} : vector<2x8xf32> to vector<2x1xf32>
    %313 = vector.broadcast %312 : vector<2x1xf32> to vector<2x8xf32>
    %314 = vector.broadcast %19 : vector<1x8xf32> to vector<2x8xf32>
    %315 = arith.mulf %313, %314 : vector<2x8xf32>
    %316 = vector.extract_strided_slice %311 {offsets = [0, 0], sizes = [2, 1], strides = [1, 1]} : vector<2x8xf32> to vector<2x1xf32>
    %317 = vector.broadcast %316 : vector<2x1xf32> to vector<2x8xf32>
    %318 = vector.broadcast %23 : vector<1x8xf32> to vector<2x8xf32>
    %319 = arith.mulf %317, %318 : vector<2x8xf32>
    %320 = vector.extract_strided_slice %311 {offsets = [0, 1], sizes = [2, 1], strides = [1, 1]} : vector<2x8xf32> to vector<2x1xf32>
    %321 = vector.broadcast %320 : vector<2x1xf32> to vector<2x8xf32>
    %322 = vector.broadcast %27 : vector<1x8xf32> to vector<2x8xf32>
    %323 = arith.mulf %321, %322 : vector<2x8xf32>
    %324 = vector.extract_strided_slice %311 {offsets = [0, 2], sizes = [2, 1], strides = [1, 1]} : vector<2x8xf32> to vector<2x1xf32>
    %325 = vector.broadcast %324 : vector<2x1xf32> to vector<2x8xf32>
    %326 = vector.broadcast %31 : vector<1x8xf32> to vector<2x8xf32>
    %327 = arith.mulf %325, %326 : vector<2x8xf32>
    %328 = vector.extract_strided_slice %311 {offsets = [0, 3], sizes = [2, 1], strides = [1, 1]} : vector<2x8xf32> to vector<2x1xf32>
    %329 = vector.broadcast %328 : vector<2x1xf32> to vector<2x8xf32>
    %330 = vector.broadcast %35 : vector<1x8xf32> to vector<2x8xf32>
    %331 = arith.mulf %329, %330 : vector<2x8xf32>
    %332 = vector.extract_strided_slice %311 {offsets = [0, 4], sizes = [2, 1], strides = [1, 1]} : vector<2x8xf32> to vector<2x1xf32>
    %333 = vector.broadcast %332 : vector<2x1xf32> to vector<2x8xf32>
    %334 = vector.broadcast %39 : vector<1x8xf32> to vector<2x8xf32>
    %335 = arith.mulf %333, %334 : vector<2x8xf32>
    %336 = vector.extract_strided_slice %311 {offsets = [0, 5], sizes = [2, 1], strides = [1, 1]} : vector<2x8xf32> to vector<2x1xf32>
    %337 = vector.broadcast %336 : vector<2x1xf32> to vector<2x8xf32>
    %338 = vector.broadcast %43 : vector<1x8xf32> to vector<2x8xf32>
    %339 = arith.mulf %337, %338 : vector<2x8xf32>
    %340 = vector.extract_strided_slice %311 {offsets = [0, 6], sizes = [2, 1], strides = [1, 1]} : vector<2x8xf32> to vector<2x1xf32>
    %341 = vector.broadcast %340 : vector<2x1xf32> to vector<2x8xf32>
    %342 = vector.broadcast %47 : vector<1x8xf32> to vector<2x8xf32>
    %343 = arith.mulf %341, %342 : vector<2x8xf32>
    %344 = arith.addf %315, %319 : vector<2x8xf32>
    %345 = arith.addf %323, %327 : vector<2x8xf32>
    %346 = arith.addf %331, %335 : vector<2x8xf32>
    %347 = arith.addf %339, %343 : vector<2x8xf32>
    %348 = arith.addf %344, %345 : vector<2x8xf32>
    %349 = arith.addf %346, %347 : vector<2x8xf32>
    %350 = arith.addf %348, %349 : vector<2x8xf32>
    %351 = arith.mulf %350, %0 : vector<2x8xf32>
    %352 = arith.mulf %311, %4 : vector<2x8xf32>
    %353 = arith.addf %351, %352 : vector<2x8xf32>
    %354 = arith.addf %353, %8 : vector<2x8xf32>
    %355 = arith.mulf %350, %1 : vector<2x8xf32>
    %356 = arith.mulf %311, %5 : vector<2x8xf32>
    %357 = arith.addf %355, %356 : vector<2x8xf32>
    %358 = arith.addf %357, %9 : vector<2x8xf32>
    %359 = arith.mulf %350, %2 : vector<2x8xf32>
    %360 = arith.mulf %311, %6 : vector<2x8xf32>
    %361 = arith.addf %359, %360 : vector<2x8xf32>
    %362 = arith.addf %361, %10 : vector<2x8xf32>
    %363 = arith.mulf %350, %3 : vector<2x8xf32>
    %364 = arith.mulf %311, %7 : vector<2x8xf32>
    %365 = arith.addf %363, %364 : vector<2x8xf32>
    %366 = arith.addf %365, %11 : vector<2x8xf32>
    %367 = arith.negf %354 : vector<2x8xf32>
    %368 = math.exp %367 : vector<2x8xf32>
    %cst_33 = arith.constant 1.000000e+00 : f32
    %369 = vector.broadcast %cst_33 : f32 to vector<2x8xf32>
    %370 = arith.addf %369, %368 : vector<2x8xf32>
    %371 = arith.divf %369, %370 : vector<2x8xf32>
    %372 = arith.negf %358 : vector<2x8xf32>
    %373 = math.exp %372 : vector<2x8xf32>
    %cst_34 = arith.constant 1.000000e+00 : f32
    %374 = vector.broadcast %cst_34 : f32 to vector<2x8xf32>
    %375 = arith.addf %374, %373 : vector<2x8xf32>
    %376 = arith.divf %374, %375 : vector<2x8xf32>
    %377 = math.tanh %362 : vector<2x8xf32>
    %378 = arith.negf %366 : vector<2x8xf32>
    %379 = math.exp %378 : vector<2x8xf32>
    %cst_35 = arith.constant 1.000000e+00 : f32
    %380 = vector.broadcast %cst_35 : f32 to vector<2x8xf32>
    %381 = arith.addf %380, %379 : vector<2x8xf32>
    %382 = arith.divf %380, %381 : vector<2x8xf32>
    %383 = arith.mulf %376, %308 : vector<2x8xf32>
    %384 = arith.mulf %371, %377 : vector<2x8xf32>
    %385 = arith.addf %383, %384 : vector<2x8xf32>
    %386 = math.tanh %385 : vector<2x8xf32>
    %387 = arith.mulf %382, %386 : vector<2x8xf32>
    %c0_i32_36 = arith.constant 0 : i32
    %388 = vector.broadcast %c0_i32_36 : i32 to vector<1x8xi32>
    %389 = arith.cmpi sge, %15, %388 : vector<1x8xi32>
    %c3_i32_37 = arith.constant 3 : i32
    %390 = vector.broadcast %c3_i32_37 : i32 to vector<1x8xi32>
    %391 = arith.cmpi sle, %15, %390 : vector<1x8xi32>
    %392 = arith.andi %389, %391 : vector<1x8xi1>
    %393 = vector.shape_cast %392 : vector<1x8xi1> to vector<1x8xi1>
    %394 = vector.broadcast %393 : vector<1x8xi1> to vector<2x8xi1>
    %395 = arith.select %394, %385, %308 : vector<2x8xi1>, vector<2x8xf32>
    %396 = vector.shape_cast %392 : vector<1x8xi1> to vector<1x8xi1>
    %397 = vector.broadcast %396 : vector<1x8xi1> to vector<2x8xi1>
    %398 = arith.select %397, %387, %311 : vector<2x8xi1>, vector<2x8xf32>
    %399 = vector.extract_strided_slice %14 {offsets = [0, 4], sizes = [2, 1], strides = [1, 1]} : vector<2x8xf32> to vector<2x1xf32>
    %400 = vector.broadcast %399 : vector<2x1xf32> to vector<2x8xf32>
    %401 = vector.broadcast %19 : vector<1x8xf32> to vector<2x8xf32>
    %402 = arith.mulf %400, %401 : vector<2x8xf32>
    %403 = vector.extract_strided_slice %398 {offsets = [0, 0], sizes = [2, 1], strides = [1, 1]} : vector<2x8xf32> to vector<2x1xf32>
    %404 = vector.broadcast %403 : vector<2x1xf32> to vector<2x8xf32>
    %405 = vector.broadcast %23 : vector<1x8xf32> to vector<2x8xf32>
    %406 = arith.mulf %404, %405 : vector<2x8xf32>
    %407 = vector.extract_strided_slice %398 {offsets = [0, 1], sizes = [2, 1], strides = [1, 1]} : vector<2x8xf32> to vector<2x1xf32>
    %408 = vector.broadcast %407 : vector<2x1xf32> to vector<2x8xf32>
    %409 = vector.broadcast %27 : vector<1x8xf32> to vector<2x8xf32>
    %410 = arith.mulf %408, %409 : vector<2x8xf32>
    %411 = vector.extract_strided_slice %398 {offsets = [0, 2], sizes = [2, 1], strides = [1, 1]} : vector<2x8xf32> to vector<2x1xf32>
    %412 = vector.broadcast %411 : vector<2x1xf32> to vector<2x8xf32>
    %413 = vector.broadcast %31 : vector<1x8xf32> to vector<2x8xf32>
    %414 = arith.mulf %412, %413 : vector<2x8xf32>
    %415 = vector.extract_strided_slice %398 {offsets = [0, 3], sizes = [2, 1], strides = [1, 1]} : vector<2x8xf32> to vector<2x1xf32>
    %416 = vector.broadcast %415 : vector<2x1xf32> to vector<2x8xf32>
    %417 = vector.broadcast %35 : vector<1x8xf32> to vector<2x8xf32>
    %418 = arith.mulf %416, %417 : vector<2x8xf32>
    %419 = vector.extract_strided_slice %398 {offsets = [0, 4], sizes = [2, 1], strides = [1, 1]} : vector<2x8xf32> to vector<2x1xf32>
    %420 = vector.broadcast %419 : vector<2x1xf32> to vector<2x8xf32>
    %421 = vector.broadcast %39 : vector<1x8xf32> to vector<2x8xf32>
    %422 = arith.mulf %420, %421 : vector<2x8xf32>
    %423 = vector.extract_strided_slice %398 {offsets = [0, 5], sizes = [2, 1], strides = [1, 1]} : vector<2x8xf32> to vector<2x1xf32>
    %424 = vector.broadcast %423 : vector<2x1xf32> to vector<2x8xf32>
    %425 = vector.broadcast %43 : vector<1x8xf32> to vector<2x8xf32>
    %426 = arith.mulf %424, %425 : vector<2x8xf32>
    %427 = vector.extract_strided_slice %398 {offsets = [0, 6], sizes = [2, 1], strides = [1, 1]} : vector<2x8xf32> to vector<2x1xf32>
    %428 = vector.broadcast %427 : vector<2x1xf32> to vector<2x8xf32>
    %429 = vector.broadcast %47 : vector<1x8xf32> to vector<2x8xf32>
    %430 = arith.mulf %428, %429 : vector<2x8xf32>
    %431 = arith.addf %402, %406 : vector<2x8xf32>
    %432 = arith.addf %410, %414 : vector<2x8xf32>
    %433 = arith.addf %418, %422 : vector<2x8xf32>
    %434 = arith.addf %426, %430 : vector<2x8xf32>
    %435 = arith.addf %431, %432 : vector<2x8xf32>
    %436 = arith.addf %433, %434 : vector<2x8xf32>
    %437 = arith.addf %435, %436 : vector<2x8xf32>
    %438 = arith.mulf %437, %0 : vector<2x8xf32>
    %439 = arith.mulf %398, %4 : vector<2x8xf32>
    %440 = arith.addf %438, %439 : vector<2x8xf32>
    %441 = arith.addf %440, %8 : vector<2x8xf32>
    %442 = arith.mulf %437, %1 : vector<2x8xf32>
    %443 = arith.mulf %398, %5 : vector<2x8xf32>
    %444 = arith.addf %442, %443 : vector<2x8xf32>
    %445 = arith.addf %444, %9 : vector<2x8xf32>
    %446 = arith.mulf %437, %2 : vector<2x8xf32>
    %447 = arith.mulf %398, %6 : vector<2x8xf32>
    %448 = arith.addf %446, %447 : vector<2x8xf32>
    %449 = arith.addf %448, %10 : vector<2x8xf32>
    %450 = arith.mulf %437, %3 : vector<2x8xf32>
    %451 = arith.mulf %398, %7 : vector<2x8xf32>
    %452 = arith.addf %450, %451 : vector<2x8xf32>
    %453 = arith.addf %452, %11 : vector<2x8xf32>
    %454 = arith.negf %441 : vector<2x8xf32>
    %455 = math.exp %454 : vector<2x8xf32>
    %cst_38 = arith.constant 1.000000e+00 : f32
    %456 = vector.broadcast %cst_38 : f32 to vector<2x8xf32>
    %457 = arith.addf %456, %455 : vector<2x8xf32>
    %458 = arith.divf %456, %457 : vector<2x8xf32>
    %459 = arith.negf %445 : vector<2x8xf32>
    %460 = math.exp %459 : vector<2x8xf32>
    %cst_39 = arith.constant 1.000000e+00 : f32
    %461 = vector.broadcast %cst_39 : f32 to vector<2x8xf32>
    %462 = arith.addf %461, %460 : vector<2x8xf32>
    %463 = arith.divf %461, %462 : vector<2x8xf32>
    %464 = math.tanh %449 : vector<2x8xf32>
    %465 = arith.negf %453 : vector<2x8xf32>
    %466 = math.exp %465 : vector<2x8xf32>
    %cst_40 = arith.constant 1.000000e+00 : f32
    %467 = vector.broadcast %cst_40 : f32 to vector<2x8xf32>
    %468 = arith.addf %467, %466 : vector<2x8xf32>
    %469 = arith.divf %467, %468 : vector<2x8xf32>
    %470 = arith.mulf %463, %395 : vector<2x8xf32>
    %471 = arith.mulf %458, %464 : vector<2x8xf32>
    %472 = arith.addf %470, %471 : vector<2x8xf32>
    %473 = math.tanh %472 : vector<2x8xf32>
    %474 = arith.mulf %469, %473 : vector<2x8xf32>
    %c0_i32_41 = arith.constant 0 : i32
    %475 = vector.broadcast %c0_i32_41 : i32 to vector<1x8xi32>
    %476 = arith.cmpi sge, %15, %475 : vector<1x8xi32>
    %c4_i32_42 = arith.constant 4 : i32
    %477 = vector.broadcast %c4_i32_42 : i32 to vector<1x8xi32>
    %478 = arith.cmpi sle, %15, %477 : vector<1x8xi32>
    %479 = arith.andi %476, %478 : vector<1x8xi1>
    %480 = vector.shape_cast %479 : vector<1x8xi1> to vector<1x8xi1>
    %481 = vector.broadcast %480 : vector<1x8xi1> to vector<2x8xi1>
    %482 = arith.select %481, %472, %395 : vector<2x8xi1>, vector<2x8xf32>
    %483 = vector.shape_cast %479 : vector<1x8xi1> to vector<1x8xi1>
    %484 = vector.broadcast %483 : vector<1x8xi1> to vector<2x8xi1>
    %485 = arith.select %484, %474, %398 : vector<2x8xi1>, vector<2x8xf32>
    %486 = vector.extract_strided_slice %14 {offsets = [0, 5], sizes = [2, 1], strides = [1, 1]} : vector<2x8xf32> to vector<2x1xf32>
    %487 = vector.broadcast %486 : vector<2x1xf32> to vector<2x8xf32>
    %488 = vector.broadcast %19 : vector<1x8xf32> to vector<2x8xf32>
    %489 = arith.mulf %487, %488 : vector<2x8xf32>
    %490 = vector.extract_strided_slice %485 {offsets = [0, 0], sizes = [2, 1], strides = [1, 1]} : vector<2x8xf32> to vector<2x1xf32>
    %491 = vector.broadcast %490 : vector<2x1xf32> to vector<2x8xf32>
    %492 = vector.broadcast %23 : vector<1x8xf32> to vector<2x8xf32>
    %493 = arith.mulf %491, %492 : vector<2x8xf32>
    %494 = vector.extract_strided_slice %485 {offsets = [0, 1], sizes = [2, 1], strides = [1, 1]} : vector<2x8xf32> to vector<2x1xf32>
    %495 = vector.broadcast %494 : vector<2x1xf32> to vector<2x8xf32>
    %496 = vector.broadcast %27 : vector<1x8xf32> to vector<2x8xf32>
    %497 = arith.mulf %495, %496 : vector<2x8xf32>
    %498 = vector.extract_strided_slice %485 {offsets = [0, 2], sizes = [2, 1], strides = [1, 1]} : vector<2x8xf32> to vector<2x1xf32>
    %499 = vector.broadcast %498 : vector<2x1xf32> to vector<2x8xf32>
    %500 = vector.broadcast %31 : vector<1x8xf32> to vector<2x8xf32>
    %501 = arith.mulf %499, %500 : vector<2x8xf32>
    %502 = vector.extract_strided_slice %485 {offsets = [0, 3], sizes = [2, 1], strides = [1, 1]} : vector<2x8xf32> to vector<2x1xf32>
    %503 = vector.broadcast %502 : vector<2x1xf32> to vector<2x8xf32>
    %504 = vector.broadcast %35 : vector<1x8xf32> to vector<2x8xf32>
    %505 = arith.mulf %503, %504 : vector<2x8xf32>
    %506 = vector.extract_strided_slice %485 {offsets = [0, 4], sizes = [2, 1], strides = [1, 1]} : vector<2x8xf32> to vector<2x1xf32>
    %507 = vector.broadcast %506 : vector<2x1xf32> to vector<2x8xf32>
    %508 = vector.broadcast %39 : vector<1x8xf32> to vector<2x8xf32>
    %509 = arith.mulf %507, %508 : vector<2x8xf32>
    %510 = vector.extract_strided_slice %485 {offsets = [0, 5], sizes = [2, 1], strides = [1, 1]} : vector<2x8xf32> to vector<2x1xf32>
    %511 = vector.broadcast %510 : vector<2x1xf32> to vector<2x8xf32>
    %512 = vector.broadcast %43 : vector<1x8xf32> to vector<2x8xf32>
    %513 = arith.mulf %511, %512 : vector<2x8xf32>
    %514 = vector.extract_strided_slice %485 {offsets = [0, 6], sizes = [2, 1], strides = [1, 1]} : vector<2x8xf32> to vector<2x1xf32>
    %515 = vector.broadcast %514 : vector<2x1xf32> to vector<2x8xf32>
    %516 = vector.broadcast %47 : vector<1x8xf32> to vector<2x8xf32>
    %517 = arith.mulf %515, %516 : vector<2x8xf32>
    %518 = arith.addf %489, %493 : vector<2x8xf32>
    %519 = arith.addf %497, %501 : vector<2x8xf32>
    %520 = arith.addf %505, %509 : vector<2x8xf32>
    %521 = arith.addf %513, %517 : vector<2x8xf32>
    %522 = arith.addf %518, %519 : vector<2x8xf32>
    %523 = arith.addf %520, %521 : vector<2x8xf32>
    %524 = arith.addf %522, %523 : vector<2x8xf32>
    %525 = arith.mulf %524, %0 : vector<2x8xf32>
    %526 = arith.mulf %485, %4 : vector<2x8xf32>
    %527 = arith.addf %525, %526 : vector<2x8xf32>
    %528 = arith.addf %527, %8 : vector<2x8xf32>
    %529 = arith.mulf %524, %1 : vector<2x8xf32>
    %530 = arith.mulf %485, %5 : vector<2x8xf32>
    %531 = arith.addf %529, %530 : vector<2x8xf32>
    %532 = arith.addf %531, %9 : vector<2x8xf32>
    %533 = arith.mulf %524, %2 : vector<2x8xf32>
    %534 = arith.mulf %485, %6 : vector<2x8xf32>
    %535 = arith.addf %533, %534 : vector<2x8xf32>
    %536 = arith.addf %535, %10 : vector<2x8xf32>
    %537 = arith.mulf %524, %3 : vector<2x8xf32>
    %538 = arith.mulf %485, %7 : vector<2x8xf32>
    %539 = arith.addf %537, %538 : vector<2x8xf32>
    %540 = arith.addf %539, %11 : vector<2x8xf32>
    %541 = arith.negf %528 : vector<2x8xf32>
    %542 = math.exp %541 : vector<2x8xf32>
    %cst_43 = arith.constant 1.000000e+00 : f32
    %543 = vector.broadcast %cst_43 : f32 to vector<2x8xf32>
    %544 = arith.addf %543, %542 : vector<2x8xf32>
    %545 = arith.divf %543, %544 : vector<2x8xf32>
    %546 = arith.negf %532 : vector<2x8xf32>
    %547 = math.exp %546 : vector<2x8xf32>
    %cst_44 = arith.constant 1.000000e+00 : f32
    %548 = vector.broadcast %cst_44 : f32 to vector<2x8xf32>
    %549 = arith.addf %548, %547 : vector<2x8xf32>
    %550 = arith.divf %548, %549 : vector<2x8xf32>
    %551 = math.tanh %536 : vector<2x8xf32>
    %552 = arith.negf %540 : vector<2x8xf32>
    %553 = math.exp %552 : vector<2x8xf32>
    %cst_45 = arith.constant 1.000000e+00 : f32
    %554 = vector.broadcast %cst_45 : f32 to vector<2x8xf32>
    %555 = arith.addf %554, %553 : vector<2x8xf32>
    %556 = arith.divf %554, %555 : vector<2x8xf32>
    %557 = arith.mulf %550, %482 : vector<2x8xf32>
    %558 = arith.mulf %545, %551 : vector<2x8xf32>
    %559 = arith.addf %557, %558 : vector<2x8xf32>
    %560 = math.tanh %559 : vector<2x8xf32>
    %561 = arith.mulf %556, %560 : vector<2x8xf32>
    %c0_i32_46 = arith.constant 0 : i32
    %562 = vector.broadcast %c0_i32_46 : i32 to vector<1x8xi32>
    %563 = arith.cmpi sge, %15, %562 : vector<1x8xi32>
    %c5_i32_47 = arith.constant 5 : i32
    %564 = vector.broadcast %c5_i32_47 : i32 to vector<1x8xi32>
    %565 = arith.cmpi sle, %15, %564 : vector<1x8xi32>
    %566 = arith.andi %563, %565 : vector<1x8xi1>
    %567 = vector.shape_cast %566 : vector<1x8xi1> to vector<1x8xi1>
    %568 = vector.broadcast %567 : vector<1x8xi1> to vector<2x8xi1>
    %569 = arith.select %568, %559, %482 : vector<2x8xi1>, vector<2x8xf32>
    %570 = vector.shape_cast %566 : vector<1x8xi1> to vector<1x8xi1>
    %571 = vector.broadcast %570 : vector<1x8xi1> to vector<2x8xi1>
    %572 = arith.select %571, %561, %485 : vector<2x8xi1>, vector<2x8xf32>
    %573 = vector.extract_strided_slice %14 {offsets = [0, 6], sizes = [2, 1], strides = [1, 1]} : vector<2x8xf32> to vector<2x1xf32>
    %574 = vector.broadcast %573 : vector<2x1xf32> to vector<2x8xf32>
    %575 = vector.broadcast %19 : vector<1x8xf32> to vector<2x8xf32>
    %576 = arith.mulf %574, %575 : vector<2x8xf32>
    %577 = vector.extract_strided_slice %572 {offsets = [0, 0], sizes = [2, 1], strides = [1, 1]} : vector<2x8xf32> to vector<2x1xf32>
    %578 = vector.broadcast %577 : vector<2x1xf32> to vector<2x8xf32>
    %579 = vector.broadcast %23 : vector<1x8xf32> to vector<2x8xf32>
    %580 = arith.mulf %578, %579 : vector<2x8xf32>
    %581 = vector.extract_strided_slice %572 {offsets = [0, 1], sizes = [2, 1], strides = [1, 1]} : vector<2x8xf32> to vector<2x1xf32>
    %582 = vector.broadcast %581 : vector<2x1xf32> to vector<2x8xf32>
    %583 = vector.broadcast %27 : vector<1x8xf32> to vector<2x8xf32>
    %584 = arith.mulf %582, %583 : vector<2x8xf32>
    %585 = vector.extract_strided_slice %572 {offsets = [0, 2], sizes = [2, 1], strides = [1, 1]} : vector<2x8xf32> to vector<2x1xf32>
    %586 = vector.broadcast %585 : vector<2x1xf32> to vector<2x8xf32>
    %587 = vector.broadcast %31 : vector<1x8xf32> to vector<2x8xf32>
    %588 = arith.mulf %586, %587 : vector<2x8xf32>
    %589 = vector.extract_strided_slice %572 {offsets = [0, 3], sizes = [2, 1], strides = [1, 1]} : vector<2x8xf32> to vector<2x1xf32>
    %590 = vector.broadcast %589 : vector<2x1xf32> to vector<2x8xf32>
    %591 = vector.broadcast %35 : vector<1x8xf32> to vector<2x8xf32>
    %592 = arith.mulf %590, %591 : vector<2x8xf32>
    %593 = vector.extract_strided_slice %572 {offsets = [0, 4], sizes = [2, 1], strides = [1, 1]} : vector<2x8xf32> to vector<2x1xf32>
    %594 = vector.broadcast %593 : vector<2x1xf32> to vector<2x8xf32>
    %595 = vector.broadcast %39 : vector<1x8xf32> to vector<2x8xf32>
    %596 = arith.mulf %594, %595 : vector<2x8xf32>
    %597 = vector.extract_strided_slice %572 {offsets = [0, 5], sizes = [2, 1], strides = [1, 1]} : vector<2x8xf32> to vector<2x1xf32>
    %598 = vector.broadcast %597 : vector<2x1xf32> to vector<2x8xf32>
    %599 = vector.broadcast %43 : vector<1x8xf32> to vector<2x8xf32>
    %600 = arith.mulf %598, %599 : vector<2x8xf32>
    %601 = vector.extract_strided_slice %572 {offsets = [0, 6], sizes = [2, 1], strides = [1, 1]} : vector<2x8xf32> to vector<2x1xf32>
    %602 = vector.broadcast %601 : vector<2x1xf32> to vector<2x8xf32>
    %603 = vector.broadcast %47 : vector<1x8xf32> to vector<2x8xf32>
    %604 = arith.mulf %602, %603 : vector<2x8xf32>
    %605 = arith.addf %576, %580 : vector<2x8xf32>
    %606 = arith.addf %584, %588 : vector<2x8xf32>
    %607 = arith.addf %592, %596 : vector<2x8xf32>
    %608 = arith.addf %600, %604 : vector<2x8xf32>
    %609 = arith.addf %605, %606 : vector<2x8xf32>
    %610 = arith.addf %607, %608 : vector<2x8xf32>
    %611 = arith.addf %609, %610 : vector<2x8xf32>
    %612 = arith.mulf %611, %0 : vector<2x8xf32>
    %613 = arith.mulf %572, %4 : vector<2x8xf32>
    %614 = arith.addf %612, %613 : vector<2x8xf32>
    %615 = arith.addf %614, %8 : vector<2x8xf32>
    %616 = arith.mulf %611, %1 : vector<2x8xf32>
    %617 = arith.mulf %572, %5 : vector<2x8xf32>
    %618 = arith.addf %616, %617 : vector<2x8xf32>
    %619 = arith.addf %618, %9 : vector<2x8xf32>
    %620 = arith.mulf %611, %2 : vector<2x8xf32>
    %621 = arith.mulf %572, %6 : vector<2x8xf32>
    %622 = arith.addf %620, %621 : vector<2x8xf32>
    %623 = arith.addf %622, %10 : vector<2x8xf32>
    %624 = arith.mulf %611, %3 : vector<2x8xf32>
    %625 = arith.mulf %572, %7 : vector<2x8xf32>
    %626 = arith.addf %624, %625 : vector<2x8xf32>
    %627 = arith.addf %626, %11 : vector<2x8xf32>
    %628 = arith.negf %615 : vector<2x8xf32>
    %629 = math.exp %628 : vector<2x8xf32>
    %cst_48 = arith.constant 1.000000e+00 : f32
    %630 = vector.broadcast %cst_48 : f32 to vector<2x8xf32>
    %631 = arith.addf %630, %629 : vector<2x8xf32>
    %632 = arith.divf %630, %631 : vector<2x8xf32>
    %633 = arith.negf %619 : vector<2x8xf32>
    %634 = math.exp %633 : vector<2x8xf32>
    %cst_49 = arith.constant 1.000000e+00 : f32
    %635 = vector.broadcast %cst_49 : f32 to vector<2x8xf32>
    %636 = arith.addf %635, %634 : vector<2x8xf32>
    %637 = arith.divf %635, %636 : vector<2x8xf32>
    %638 = math.tanh %623 : vector<2x8xf32>
    %639 = arith.negf %627 : vector<2x8xf32>
    %640 = math.exp %639 : vector<2x8xf32>
    %cst_50 = arith.constant 1.000000e+00 : f32
    %641 = vector.broadcast %cst_50 : f32 to vector<2x8xf32>
    %642 = arith.addf %641, %640 : vector<2x8xf32>
    %643 = arith.divf %641, %642 : vector<2x8xf32>
    %644 = arith.mulf %637, %569 : vector<2x8xf32>
    %645 = arith.mulf %632, %638 : vector<2x8xf32>
    %646 = arith.addf %644, %645 : vector<2x8xf32>
    %647 = math.tanh %646 : vector<2x8xf32>
    %648 = arith.mulf %643, %647 : vector<2x8xf32>
    %c0_i32_51 = arith.constant 0 : i32
    %649 = vector.broadcast %c0_i32_51 : i32 to vector<1x8xi32>
    %650 = arith.cmpi sge, %15, %649 : vector<1x8xi32>
    %c6_i32_52 = arith.constant 6 : i32
    %651 = vector.broadcast %c6_i32_52 : i32 to vector<1x8xi32>
    %652 = arith.cmpi sle, %15, %651 : vector<1x8xi32>
    %653 = arith.andi %650, %652 : vector<1x8xi1>
    %654 = vector.shape_cast %653 : vector<1x8xi1> to vector<1x8xi1>
    %655 = vector.broadcast %654 : vector<1x8xi1> to vector<2x8xi1>
    %656 = arith.select %655, %646, %569 : vector<2x8xi1>, vector<2x8xf32>
    %657 = vector.shape_cast %653 : vector<1x8xi1> to vector<1x8xi1>
    %658 = vector.broadcast %657 : vector<1x8xi1> to vector<2x8xi1>
    %659 = arith.select %658, %648, %572 : vector<2x8xi1>, vector<2x8xf32>
    %660 = vector.extract_strided_slice %14 {offsets = [0, 7], sizes = [2, 1], strides = [1, 1]} : vector<2x8xf32> to vector<2x1xf32>
    %661 = vector.broadcast %660 : vector<2x1xf32> to vector<2x8xf32>
    %662 = vector.broadcast %19 : vector<1x8xf32> to vector<2x8xf32>
    %663 = arith.mulf %661, %662 : vector<2x8xf32>
    %664 = vector.extract_strided_slice %659 {offsets = [0, 0], sizes = [2, 1], strides = [1, 1]} : vector<2x8xf32> to vector<2x1xf32>
    %665 = vector.broadcast %664 : vector<2x1xf32> to vector<2x8xf32>
    %666 = vector.broadcast %23 : vector<1x8xf32> to vector<2x8xf32>
    %667 = arith.mulf %665, %666 : vector<2x8xf32>
    %668 = vector.extract_strided_slice %659 {offsets = [0, 1], sizes = [2, 1], strides = [1, 1]} : vector<2x8xf32> to vector<2x1xf32>
    %669 = vector.broadcast %668 : vector<2x1xf32> to vector<2x8xf32>
    %670 = vector.broadcast %27 : vector<1x8xf32> to vector<2x8xf32>
    %671 = arith.mulf %669, %670 : vector<2x8xf32>
    %672 = vector.extract_strided_slice %659 {offsets = [0, 2], sizes = [2, 1], strides = [1, 1]} : vector<2x8xf32> to vector<2x1xf32>
    %673 = vector.broadcast %672 : vector<2x1xf32> to vector<2x8xf32>
    %674 = vector.broadcast %31 : vector<1x8xf32> to vector<2x8xf32>
    %675 = arith.mulf %673, %674 : vector<2x8xf32>
    %676 = vector.extract_strided_slice %659 {offsets = [0, 3], sizes = [2, 1], strides = [1, 1]} : vector<2x8xf32> to vector<2x1xf32>
    %677 = vector.broadcast %676 : vector<2x1xf32> to vector<2x8xf32>
    %678 = vector.broadcast %35 : vector<1x8xf32> to vector<2x8xf32>
    %679 = arith.mulf %677, %678 : vector<2x8xf32>
    %680 = vector.extract_strided_slice %659 {offsets = [0, 4], sizes = [2, 1], strides = [1, 1]} : vector<2x8xf32> to vector<2x1xf32>
    %681 = vector.broadcast %680 : vector<2x1xf32> to vector<2x8xf32>
    %682 = vector.broadcast %39 : vector<1x8xf32> to vector<2x8xf32>
    %683 = arith.mulf %681, %682 : vector<2x8xf32>
    %684 = vector.extract_strided_slice %659 {offsets = [0, 5], sizes = [2, 1], strides = [1, 1]} : vector<2x8xf32> to vector<2x1xf32>
    %685 = vector.broadcast %684 : vector<2x1xf32> to vector<2x8xf32>
    %686 = vector.broadcast %43 : vector<1x8xf32> to vector<2x8xf32>
    %687 = arith.mulf %685, %686 : vector<2x8xf32>
    %688 = vector.extract_strided_slice %659 {offsets = [0, 6], sizes = [2, 1], strides = [1, 1]} : vector<2x8xf32> to vector<2x1xf32>
    %689 = vector.broadcast %688 : vector<2x1xf32> to vector<2x8xf32>
    %690 = vector.broadcast %47 : vector<1x8xf32> to vector<2x8xf32>
    %691 = arith.mulf %689, %690 : vector<2x8xf32>
    %692 = arith.addf %663, %667 : vector<2x8xf32>
    %693 = arith.addf %671, %675 : vector<2x8xf32>
    %694 = arith.addf %679, %683 : vector<2x8xf32>
    %695 = arith.addf %687, %691 : vector<2x8xf32>
    %696 = arith.addf %692, %693 : vector<2x8xf32>
    %697 = arith.addf %694, %695 : vector<2x8xf32>
    %698 = arith.addf %696, %697 : vector<2x8xf32>
    %699 = arith.mulf %698, %0 : vector<2x8xf32>
    %700 = arith.mulf %659, %4 : vector<2x8xf32>
    %701 = arith.addf %699, %700 : vector<2x8xf32>
    %702 = arith.addf %701, %8 : vector<2x8xf32>
    %703 = arith.mulf %698, %1 : vector<2x8xf32>
    %704 = arith.mulf %659, %5 : vector<2x8xf32>
    %705 = arith.addf %703, %704 : vector<2x8xf32>
    %706 = arith.addf %705, %9 : vector<2x8xf32>
    %707 = arith.mulf %698, %2 : vector<2x8xf32>
    %708 = arith.mulf %659, %6 : vector<2x8xf32>
    %709 = arith.addf %707, %708 : vector<2x8xf32>
    %710 = arith.addf %709, %10 : vector<2x8xf32>
    %711 = arith.mulf %698, %3 : vector<2x8xf32>
    %712 = arith.mulf %659, %7 : vector<2x8xf32>
    %713 = arith.addf %711, %712 : vector<2x8xf32>
    %714 = arith.addf %713, %11 : vector<2x8xf32>
    %715 = arith.negf %702 : vector<2x8xf32>
    %716 = math.exp %715 : vector<2x8xf32>
    %cst_53 = arith.constant 1.000000e+00 : f32
    %717 = vector.broadcast %cst_53 : f32 to vector<2x8xf32>
    %718 = arith.addf %717, %716 : vector<2x8xf32>
    %719 = arith.divf %717, %718 : vector<2x8xf32>
    %720 = arith.negf %706 : vector<2x8xf32>
    %721 = math.exp %720 : vector<2x8xf32>
    %cst_54 = arith.constant 1.000000e+00 : f32
    %722 = vector.broadcast %cst_54 : f32 to vector<2x8xf32>
    %723 = arith.addf %722, %721 : vector<2x8xf32>
    %724 = arith.divf %722, %723 : vector<2x8xf32>
    %725 = math.tanh %710 : vector<2x8xf32>
    %726 = arith.negf %714 : vector<2x8xf32>
    %727 = math.exp %726 : vector<2x8xf32>
    %cst_55 = arith.constant 1.000000e+00 : f32
    %728 = vector.broadcast %cst_55 : f32 to vector<2x8xf32>
    %729 = arith.addf %728, %727 : vector<2x8xf32>
    %730 = arith.divf %728, %729 : vector<2x8xf32>
    %731 = arith.mulf %724, %656 : vector<2x8xf32>
    %732 = arith.mulf %719, %725 : vector<2x8xf32>
    %733 = arith.addf %731, %732 : vector<2x8xf32>
    %734 = math.tanh %733 : vector<2x8xf32>
    %735 = arith.mulf %730, %734 : vector<2x8xf32>
    %736 = vector.broadcast %48 : vector<2x1xf32> to vector<2x8xf32>
    %737 = vector.broadcast %19 : vector<1x8xf32> to vector<2x8xf32>
    %738 = arith.mulf %736, %737 : vector<2x8xf32>
    %739 = vector.extract_strided_slice %735 {offsets = [0, 0], sizes = [2, 1], strides = [1, 1]} : vector<2x8xf32> to vector<2x1xf32>
    %740 = vector.broadcast %739 : vector<2x1xf32> to vector<2x8xf32>
    %741 = vector.broadcast %23 : vector<1x8xf32> to vector<2x8xf32>
    %742 = arith.mulf %740, %741 : vector<2x8xf32>
    %743 = vector.extract_strided_slice %735 {offsets = [0, 1], sizes = [2, 1], strides = [1, 1]} : vector<2x8xf32> to vector<2x1xf32>
    %744 = vector.broadcast %743 : vector<2x1xf32> to vector<2x8xf32>
    %745 = vector.broadcast %27 : vector<1x8xf32> to vector<2x8xf32>
    %746 = arith.mulf %744, %745 : vector<2x8xf32>
    %747 = vector.extract_strided_slice %735 {offsets = [0, 2], sizes = [2, 1], strides = [1, 1]} : vector<2x8xf32> to vector<2x1xf32>
    %748 = vector.broadcast %747 : vector<2x1xf32> to vector<2x8xf32>
    %749 = vector.broadcast %31 : vector<1x8xf32> to vector<2x8xf32>
    %750 = arith.mulf %748, %749 : vector<2x8xf32>
    %751 = vector.extract_strided_slice %735 {offsets = [0, 3], sizes = [2, 1], strides = [1, 1]} : vector<2x8xf32> to vector<2x1xf32>
    %752 = vector.broadcast %751 : vector<2x1xf32> to vector<2x8xf32>
    %753 = vector.broadcast %35 : vector<1x8xf32> to vector<2x8xf32>
    %754 = arith.mulf %752, %753 : vector<2x8xf32>
    %755 = vector.extract_strided_slice %735 {offsets = [0, 4], sizes = [2, 1], strides = [1, 1]} : vector<2x8xf32> to vector<2x1xf32>
    %756 = vector.broadcast %755 : vector<2x1xf32> to vector<2x8xf32>
    %757 = vector.broadcast %39 : vector<1x8xf32> to vector<2x8xf32>
    %758 = arith.mulf %756, %757 : vector<2x8xf32>
    %759 = vector.extract_strided_slice %735 {offsets = [0, 5], sizes = [2, 1], strides = [1, 1]} : vector<2x8xf32> to vector<2x1xf32>
    %760 = vector.broadcast %759 : vector<2x1xf32> to vector<2x8xf32>
    %761 = vector.broadcast %43 : vector<1x8xf32> to vector<2x8xf32>
    %762 = arith.mulf %760, %761 : vector<2x8xf32>
    %763 = vector.extract_strided_slice %735 {offsets = [0, 6], sizes = [2, 1], strides = [1, 1]} : vector<2x8xf32> to vector<2x1xf32>
    %764 = vector.broadcast %763 : vector<2x1xf32> to vector<2x8xf32>
    %765 = vector.broadcast %47 : vector<1x8xf32> to vector<2x8xf32>
    %766 = arith.mulf %764, %765 : vector<2x8xf32>
    %767 = arith.addf %738, %742 : vector<2x8xf32>
    %768 = arith.addf %746, %750 : vector<2x8xf32>
    %769 = arith.addf %754, %758 : vector<2x8xf32>
    %770 = arith.addf %762, %766 : vector<2x8xf32>
    %771 = arith.addf %767, %768 : vector<2x8xf32>
    %772 = arith.addf %769, %770 : vector<2x8xf32>
    %773 = arith.addf %771, %772 : vector<2x8xf32>
    %774 = arith.mulf %773, %0 : vector<2x8xf32>
    %775 = arith.mulf %735, %4 : vector<2x8xf32>
    %776 = arith.addf %774, %775 : vector<2x8xf32>
    %777 = arith.addf %776, %8 : vector<2x8xf32>
    %778 = arith.mulf %773, %1 : vector<2x8xf32>
    %779 = arith.mulf %735, %5 : vector<2x8xf32>
    %780 = arith.addf %778, %779 : vector<2x8xf32>
    %781 = arith.addf %780, %9 : vector<2x8xf32>
    %782 = arith.mulf %773, %2 : vector<2x8xf32>
    %783 = arith.mulf %735, %6 : vector<2x8xf32>
    %784 = arith.addf %782, %783 : vector<2x8xf32>
    %785 = arith.addf %784, %10 : vector<2x8xf32>
    %786 = arith.mulf %773, %3 : vector<2x8xf32>
    %787 = arith.mulf %735, %7 : vector<2x8xf32>
    %788 = arith.addf %786, %787 : vector<2x8xf32>
    %789 = arith.addf %788, %11 : vector<2x8xf32>
    %790 = arith.negf %777 : vector<2x8xf32>
    %791 = math.exp %790 : vector<2x8xf32>
    %cst_56 = arith.constant 1.000000e+00 : f32
    %792 = vector.broadcast %cst_56 : f32 to vector<2x8xf32>
    %793 = arith.addf %792, %791 : vector<2x8xf32>
    %794 = arith.divf %792, %793 : vector<2x8xf32>
    %795 = arith.negf %781 : vector<2x8xf32>
    %796 = math.exp %795 : vector<2x8xf32>
    %cst_57 = arith.constant 1.000000e+00 : f32
    %797 = vector.broadcast %cst_57 : f32 to vector<2x8xf32>
    %798 = arith.addf %797, %796 : vector<2x8xf32>
    %799 = arith.divf %797, %798 : vector<2x8xf32>
    %800 = math.tanh %785 : vector<2x8xf32>
    %801 = arith.negf %789 : vector<2x8xf32>
    %802 = math.exp %801 : vector<2x8xf32>
    %cst_58 = arith.constant 1.000000e+00 : f32
    %803 = vector.broadcast %cst_58 : f32 to vector<2x8xf32>
    %804 = arith.addf %803, %802 : vector<2x8xf32>
    %805 = arith.divf %803, %804 : vector<2x8xf32>
    %806 = arith.mulf %799, %733 : vector<2x8xf32>
    %807 = arith.mulf %794, %800 : vector<2x8xf32>
    %808 = arith.addf %806, %807 : vector<2x8xf32>
    %809 = math.tanh %808 : vector<2x8xf32>
    %810 = arith.mulf %805, %809 : vector<2x8xf32>
    %c1_i32_59 = arith.constant 1 : i32
    %811 = vector.broadcast %c1_i32_59 : i32 to vector<1x8xi32>
    %812 = arith.cmpi sge, %15, %811 : vector<1x8xi32>
    %c7_i32_60 = arith.constant 7 : i32
    %813 = vector.broadcast %c7_i32_60 : i32 to vector<1x8xi32>
    %814 = arith.cmpi sle, %15, %813 : vector<1x8xi32>
    %815 = arith.andi %812, %814 : vector<1x8xi1>
    %816 = vector.shape_cast %815 : vector<1x8xi1> to vector<1x8xi1>
    %817 = vector.broadcast %816 : vector<1x8xi1> to vector<2x8xi1>
    %818 = arith.select %817, %808, %733 : vector<2x8xi1>, vector<2x8xf32>
    %819 = vector.shape_cast %815 : vector<1x8xi1> to vector<1x8xi1>
    %820 = vector.broadcast %819 : vector<1x8xi1> to vector<2x8xi1>
    %821 = arith.select %820, %810, %735 : vector<2x8xi1>, vector<2x8xf32>
    %822 = vector.broadcast %48 : vector<2x1xf32> to vector<2x8xf32>
    %823 = vector.broadcast %19 : vector<1x8xf32> to vector<2x8xf32>
    %824 = arith.mulf %822, %823 : vector<2x8xf32>
    %825 = vector.extract_strided_slice %821 {offsets = [0, 0], sizes = [2, 1], strides = [1, 1]} : vector<2x8xf32> to vector<2x1xf32>
    %826 = vector.broadcast %825 : vector<2x1xf32> to vector<2x8xf32>
    %827 = vector.broadcast %23 : vector<1x8xf32> to vector<2x8xf32>
    %828 = arith.mulf %826, %827 : vector<2x8xf32>
    %829 = vector.extract_strided_slice %821 {offsets = [0, 1], sizes = [2, 1], strides = [1, 1]} : vector<2x8xf32> to vector<2x1xf32>
    %830 = vector.broadcast %829 : vector<2x1xf32> to vector<2x8xf32>
    %831 = vector.broadcast %27 : vector<1x8xf32> to vector<2x8xf32>
    %832 = arith.mulf %830, %831 : vector<2x8xf32>
    %833 = vector.extract_strided_slice %821 {offsets = [0, 2], sizes = [2, 1], strides = [1, 1]} : vector<2x8xf32> to vector<2x1xf32>
    %834 = vector.broadcast %833 : vector<2x1xf32> to vector<2x8xf32>
    %835 = vector.broadcast %31 : vector<1x8xf32> to vector<2x8xf32>
    %836 = arith.mulf %834, %835 : vector<2x8xf32>
    %837 = vector.extract_strided_slice %821 {offsets = [0, 3], sizes = [2, 1], strides = [1, 1]} : vector<2x8xf32> to vector<2x1xf32>
    %838 = vector.broadcast %837 : vector<2x1xf32> to vector<2x8xf32>
    %839 = vector.broadcast %35 : vector<1x8xf32> to vector<2x8xf32>
    %840 = arith.mulf %838, %839 : vector<2x8xf32>
    %841 = vector.extract_strided_slice %821 {offsets = [0, 4], sizes = [2, 1], strides = [1, 1]} : vector<2x8xf32> to vector<2x1xf32>
    %842 = vector.broadcast %841 : vector<2x1xf32> to vector<2x8xf32>
    %843 = vector.broadcast %39 : vector<1x8xf32> to vector<2x8xf32>
    %844 = arith.mulf %842, %843 : vector<2x8xf32>
    %845 = vector.extract_strided_slice %821 {offsets = [0, 5], sizes = [2, 1], strides = [1, 1]} : vector<2x8xf32> to vector<2x1xf32>
    %846 = vector.broadcast %845 : vector<2x1xf32> to vector<2x8xf32>
    %847 = vector.broadcast %43 : vector<1x8xf32> to vector<2x8xf32>
    %848 = arith.mulf %846, %847 : vector<2x8xf32>
    %849 = vector.extract_strided_slice %821 {offsets = [0, 6], sizes = [2, 1], strides = [1, 1]} : vector<2x8xf32> to vector<2x1xf32>
    %850 = vector.broadcast %849 : vector<2x1xf32> to vector<2x8xf32>
    %851 = vector.broadcast %47 : vector<1x8xf32> to vector<2x8xf32>
    %852 = arith.mulf %850, %851 : vector<2x8xf32>
    %853 = arith.addf %824, %828 : vector<2x8xf32>
    %854 = arith.addf %832, %836 : vector<2x8xf32>
    %855 = arith.addf %840, %844 : vector<2x8xf32>
    %856 = arith.addf %848, %852 : vector<2x8xf32>
    %857 = arith.addf %853, %854 : vector<2x8xf32>
    %858 = arith.addf %855, %856 : vector<2x8xf32>
    %859 = arith.addf %857, %858 : vector<2x8xf32>
    %860 = arith.mulf %859, %0 : vector<2x8xf32>
    %861 = arith.mulf %821, %4 : vector<2x8xf32>
    %862 = arith.addf %860, %861 : vector<2x8xf32>
    %863 = arith.addf %862, %8 : vector<2x8xf32>
    %864 = arith.mulf %859, %1 : vector<2x8xf32>
    %865 = arith.mulf %821, %5 : vector<2x8xf32>
    %866 = arith.addf %864, %865 : vector<2x8xf32>
    %867 = arith.addf %866, %9 : vector<2x8xf32>
    %868 = arith.mulf %859, %2 : vector<2x8xf32>
    %869 = arith.mulf %821, %6 : vector<2x8xf32>
    %870 = arith.addf %868, %869 : vector<2x8xf32>
    %871 = arith.addf %870, %10 : vector<2x8xf32>
    %872 = arith.mulf %859, %3 : vector<2x8xf32>
    %873 = arith.mulf %821, %7 : vector<2x8xf32>
    %874 = arith.addf %872, %873 : vector<2x8xf32>
    %875 = arith.addf %874, %11 : vector<2x8xf32>
    %876 = arith.negf %863 : vector<2x8xf32>
    %877 = math.exp %876 : vector<2x8xf32>
    %cst_61 = arith.constant 1.000000e+00 : f32
    %878 = vector.broadcast %cst_61 : f32 to vector<2x8xf32>
    %879 = arith.addf %878, %877 : vector<2x8xf32>
    %880 = arith.divf %878, %879 : vector<2x8xf32>
    %881 = arith.negf %867 : vector<2x8xf32>
    %882 = math.exp %881 : vector<2x8xf32>
    %cst_62 = arith.constant 1.000000e+00 : f32
    %883 = vector.broadcast %cst_62 : f32 to vector<2x8xf32>
    %884 = arith.addf %883, %882 : vector<2x8xf32>
    %885 = arith.divf %883, %884 : vector<2x8xf32>
    %886 = math.tanh %871 : vector<2x8xf32>
    %887 = arith.negf %875 : vector<2x8xf32>
    %888 = math.exp %887 : vector<2x8xf32>
    %cst_63 = arith.constant 1.000000e+00 : f32
    %889 = vector.broadcast %cst_63 : f32 to vector<2x8xf32>
    %890 = arith.addf %889, %888 : vector<2x8xf32>
    %891 = arith.divf %889, %890 : vector<2x8xf32>
    %892 = arith.mulf %885, %818 : vector<2x8xf32>
    %893 = arith.mulf %880, %886 : vector<2x8xf32>
    %894 = arith.addf %892, %893 : vector<2x8xf32>
    %895 = math.tanh %894 : vector<2x8xf32>
    %896 = arith.mulf %891, %895 : vector<2x8xf32>
    %c2_i32_64 = arith.constant 2 : i32
    %897 = vector.broadcast %c2_i32_64 : i32 to vector<1x8xi32>
    %898 = arith.cmpi sge, %15, %897 : vector<1x8xi32>
    %c7_i32_65 = arith.constant 7 : i32
    %899 = vector.broadcast %c7_i32_65 : i32 to vector<1x8xi32>
    %900 = arith.cmpi sle, %15, %899 : vector<1x8xi32>
    %901 = arith.andi %898, %900 : vector<1x8xi1>
    %902 = vector.shape_cast %901 : vector<1x8xi1> to vector<1x8xi1>
    %903 = vector.broadcast %902 : vector<1x8xi1> to vector<2x8xi1>
    %904 = arith.select %903, %894, %818 : vector<2x8xi1>, vector<2x8xf32>
    %905 = vector.shape_cast %901 : vector<1x8xi1> to vector<1x8xi1>
    %906 = vector.broadcast %905 : vector<1x8xi1> to vector<2x8xi1>
    %907 = arith.select %906, %896, %821 : vector<2x8xi1>, vector<2x8xf32>
    %908 = vector.broadcast %48 : vector<2x1xf32> to vector<2x8xf32>
    %909 = vector.broadcast %19 : vector<1x8xf32> to vector<2x8xf32>
    %910 = arith.mulf %908, %909 : vector<2x8xf32>
    %911 = vector.extract_strided_slice %907 {offsets = [0, 0], sizes = [2, 1], strides = [1, 1]} : vector<2x8xf32> to vector<2x1xf32>
    %912 = vector.broadcast %911 : vector<2x1xf32> to vector<2x8xf32>
    %913 = vector.broadcast %23 : vector<1x8xf32> to vector<2x8xf32>
    %914 = arith.mulf %912, %913 : vector<2x8xf32>
    %915 = vector.extract_strided_slice %907 {offsets = [0, 1], sizes = [2, 1], strides = [1, 1]} : vector<2x8xf32> to vector<2x1xf32>
    %916 = vector.broadcast %915 : vector<2x1xf32> to vector<2x8xf32>
    %917 = vector.broadcast %27 : vector<1x8xf32> to vector<2x8xf32>
    %918 = arith.mulf %916, %917 : vector<2x8xf32>
    %919 = vector.extract_strided_slice %907 {offsets = [0, 2], sizes = [2, 1], strides = [1, 1]} : vector<2x8xf32> to vector<2x1xf32>
    %920 = vector.broadcast %919 : vector<2x1xf32> to vector<2x8xf32>
    %921 = vector.broadcast %31 : vector<1x8xf32> to vector<2x8xf32>
    %922 = arith.mulf %920, %921 : vector<2x8xf32>
    %923 = vector.extract_strided_slice %907 {offsets = [0, 3], sizes = [2, 1], strides = [1, 1]} : vector<2x8xf32> to vector<2x1xf32>
    %924 = vector.broadcast %923 : vector<2x1xf32> to vector<2x8xf32>
    %925 = vector.broadcast %35 : vector<1x8xf32> to vector<2x8xf32>
    %926 = arith.mulf %924, %925 : vector<2x8xf32>
    %927 = vector.extract_strided_slice %907 {offsets = [0, 4], sizes = [2, 1], strides = [1, 1]} : vector<2x8xf32> to vector<2x1xf32>
    %928 = vector.broadcast %927 : vector<2x1xf32> to vector<2x8xf32>
    %929 = vector.broadcast %39 : vector<1x8xf32> to vector<2x8xf32>
    %930 = arith.mulf %928, %929 : vector<2x8xf32>
    %931 = vector.extract_strided_slice %907 {offsets = [0, 5], sizes = [2, 1], strides = [1, 1]} : vector<2x8xf32> to vector<2x1xf32>
    %932 = vector.broadcast %931 : vector<2x1xf32> to vector<2x8xf32>
    %933 = vector.broadcast %43 : vector<1x8xf32> to vector<2x8xf32>
    %934 = arith.mulf %932, %933 : vector<2x8xf32>
    %935 = vector.extract_strided_slice %907 {offsets = [0, 6], sizes = [2, 1], strides = [1, 1]} : vector<2x8xf32> to vector<2x1xf32>
    %936 = vector.broadcast %935 : vector<2x1xf32> to vector<2x8xf32>
    %937 = vector.broadcast %47 : vector<1x8xf32> to vector<2x8xf32>
    %938 = arith.mulf %936, %937 : vector<2x8xf32>
    %939 = arith.addf %910, %914 : vector<2x8xf32>
    %940 = arith.addf %918, %922 : vector<2x8xf32>
    %941 = arith.addf %926, %930 : vector<2x8xf32>
    %942 = arith.addf %934, %938 : vector<2x8xf32>
    %943 = arith.addf %939, %940 : vector<2x8xf32>
    %944 = arith.addf %941, %942 : vector<2x8xf32>
    %945 = arith.addf %943, %944 : vector<2x8xf32>
    %946 = arith.mulf %945, %0 : vector<2x8xf32>
    %947 = arith.mulf %907, %4 : vector<2x8xf32>
    %948 = arith.addf %946, %947 : vector<2x8xf32>
    %949 = arith.addf %948, %8 : vector<2x8xf32>
    %950 = arith.mulf %945, %1 : vector<2x8xf32>
    %951 = arith.mulf %907, %5 : vector<2x8xf32>
    %952 = arith.addf %950, %951 : vector<2x8xf32>
    %953 = arith.addf %952, %9 : vector<2x8xf32>
    %954 = arith.mulf %945, %2 : vector<2x8xf32>
    %955 = arith.mulf %907, %6 : vector<2x8xf32>
    %956 = arith.addf %954, %955 : vector<2x8xf32>
    %957 = arith.addf %956, %10 : vector<2x8xf32>
    %958 = arith.mulf %945, %3 : vector<2x8xf32>
    %959 = arith.mulf %907, %7 : vector<2x8xf32>
    %960 = arith.addf %958, %959 : vector<2x8xf32>
    %961 = arith.addf %960, %11 : vector<2x8xf32>
    %962 = arith.negf %949 : vector<2x8xf32>
    %963 = math.exp %962 : vector<2x8xf32>
    %cst_66 = arith.constant 1.000000e+00 : f32
    %964 = vector.broadcast %cst_66 : f32 to vector<2x8xf32>
    %965 = arith.addf %964, %963 : vector<2x8xf32>
    %966 = arith.divf %964, %965 : vector<2x8xf32>
    %967 = arith.negf %953 : vector<2x8xf32>
    %968 = math.exp %967 : vector<2x8xf32>
    %cst_67 = arith.constant 1.000000e+00 : f32
    %969 = vector.broadcast %cst_67 : f32 to vector<2x8xf32>
    %970 = arith.addf %969, %968 : vector<2x8xf32>
    %971 = arith.divf %969, %970 : vector<2x8xf32>
    %972 = math.tanh %957 : vector<2x8xf32>
    %973 = arith.negf %961 : vector<2x8xf32>
    %974 = math.exp %973 : vector<2x8xf32>
    %cst_68 = arith.constant 1.000000e+00 : f32
    %975 = vector.broadcast %cst_68 : f32 to vector<2x8xf32>
    %976 = arith.addf %975, %974 : vector<2x8xf32>
    %977 = arith.divf %975, %976 : vector<2x8xf32>
    %978 = arith.mulf %971, %904 : vector<2x8xf32>
    %979 = arith.mulf %966, %972 : vector<2x8xf32>
    %980 = arith.addf %978, %979 : vector<2x8xf32>
    %981 = math.tanh %980 : vector<2x8xf32>
    %982 = arith.mulf %977, %981 : vector<2x8xf32>
    %c3_i32_69 = arith.constant 3 : i32
    %983 = vector.broadcast %c3_i32_69 : i32 to vector<1x8xi32>
    %984 = arith.cmpi sge, %15, %983 : vector<1x8xi32>
    %c7_i32_70 = arith.constant 7 : i32
    %985 = vector.broadcast %c7_i32_70 : i32 to vector<1x8xi32>
    %986 = arith.cmpi sle, %15, %985 : vector<1x8xi32>
    %987 = arith.andi %984, %986 : vector<1x8xi1>
    %988 = vector.shape_cast %987 : vector<1x8xi1> to vector<1x8xi1>
    %989 = vector.broadcast %988 : vector<1x8xi1> to vector<2x8xi1>
    %990 = arith.select %989, %980, %904 : vector<2x8xi1>, vector<2x8xf32>
    %991 = vector.shape_cast %987 : vector<1x8xi1> to vector<1x8xi1>
    %992 = vector.broadcast %991 : vector<1x8xi1> to vector<2x8xi1>
    %993 = arith.select %992, %982, %907 : vector<2x8xi1>, vector<2x8xf32>
    %994 = vector.broadcast %48 : vector<2x1xf32> to vector<2x8xf32>
    %995 = vector.broadcast %19 : vector<1x8xf32> to vector<2x8xf32>
    %996 = arith.mulf %994, %995 : vector<2x8xf32>
    %997 = vector.extract_strided_slice %993 {offsets = [0, 0], sizes = [2, 1], strides = [1, 1]} : vector<2x8xf32> to vector<2x1xf32>
    %998 = vector.broadcast %997 : vector<2x1xf32> to vector<2x8xf32>
    %999 = vector.broadcast %23 : vector<1x8xf32> to vector<2x8xf32>
    %1000 = arith.mulf %998, %999 : vector<2x8xf32>
    %1001 = vector.extract_strided_slice %993 {offsets = [0, 1], sizes = [2, 1], strides = [1, 1]} : vector<2x8xf32> to vector<2x1xf32>
    %1002 = vector.broadcast %1001 : vector<2x1xf32> to vector<2x8xf32>
    %1003 = vector.broadcast %27 : vector<1x8xf32> to vector<2x8xf32>
    %1004 = arith.mulf %1002, %1003 : vector<2x8xf32>
    %1005 = vector.extract_strided_slice %993 {offsets = [0, 2], sizes = [2, 1], strides = [1, 1]} : vector<2x8xf32> to vector<2x1xf32>
    %1006 = vector.broadcast %1005 : vector<2x1xf32> to vector<2x8xf32>
    %1007 = vector.broadcast %31 : vector<1x8xf32> to vector<2x8xf32>
    %1008 = arith.mulf %1006, %1007 : vector<2x8xf32>
    %1009 = vector.extract_strided_slice %993 {offsets = [0, 3], sizes = [2, 1], strides = [1, 1]} : vector<2x8xf32> to vector<2x1xf32>
    %1010 = vector.broadcast %1009 : vector<2x1xf32> to vector<2x8xf32>
    %1011 = vector.broadcast %35 : vector<1x8xf32> to vector<2x8xf32>
    %1012 = arith.mulf %1010, %1011 : vector<2x8xf32>
    %1013 = vector.extract_strided_slice %993 {offsets = [0, 4], sizes = [2, 1], strides = [1, 1]} : vector<2x8xf32> to vector<2x1xf32>
    %1014 = vector.broadcast %1013 : vector<2x1xf32> to vector<2x8xf32>
    %1015 = vector.broadcast %39 : vector<1x8xf32> to vector<2x8xf32>
    %1016 = arith.mulf %1014, %1015 : vector<2x8xf32>
    %1017 = vector.extract_strided_slice %993 {offsets = [0, 5], sizes = [2, 1], strides = [1, 1]} : vector<2x8xf32> to vector<2x1xf32>
    %1018 = vector.broadcast %1017 : vector<2x1xf32> to vector<2x8xf32>
    %1019 = vector.broadcast %43 : vector<1x8xf32> to vector<2x8xf32>
    %1020 = arith.mulf %1018, %1019 : vector<2x8xf32>
    %1021 = vector.extract_strided_slice %993 {offsets = [0, 6], sizes = [2, 1], strides = [1, 1]} : vector<2x8xf32> to vector<2x1xf32>
    %1022 = vector.broadcast %1021 : vector<2x1xf32> to vector<2x8xf32>
    %1023 = vector.broadcast %47 : vector<1x8xf32> to vector<2x8xf32>
    %1024 = arith.mulf %1022, %1023 : vector<2x8xf32>
    %1025 = arith.addf %996, %1000 : vector<2x8xf32>
    %1026 = arith.addf %1004, %1008 : vector<2x8xf32>
    %1027 = arith.addf %1012, %1016 : vector<2x8xf32>
    %1028 = arith.addf %1020, %1024 : vector<2x8xf32>
    %1029 = arith.addf %1025, %1026 : vector<2x8xf32>
    %1030 = arith.addf %1027, %1028 : vector<2x8xf32>
    %1031 = arith.addf %1029, %1030 : vector<2x8xf32>
    %1032 = arith.mulf %1031, %0 : vector<2x8xf32>
    %1033 = arith.mulf %993, %4 : vector<2x8xf32>
    %1034 = arith.addf %1032, %1033 : vector<2x8xf32>
    %1035 = arith.addf %1034, %8 : vector<2x8xf32>
    %1036 = arith.mulf %1031, %1 : vector<2x8xf32>
    %1037 = arith.mulf %993, %5 : vector<2x8xf32>
    %1038 = arith.addf %1036, %1037 : vector<2x8xf32>
    %1039 = arith.addf %1038, %9 : vector<2x8xf32>
    %1040 = arith.mulf %1031, %2 : vector<2x8xf32>
    %1041 = arith.mulf %993, %6 : vector<2x8xf32>
    %1042 = arith.addf %1040, %1041 : vector<2x8xf32>
    %1043 = arith.addf %1042, %10 : vector<2x8xf32>
    %1044 = arith.mulf %1031, %3 : vector<2x8xf32>
    %1045 = arith.mulf %993, %7 : vector<2x8xf32>
    %1046 = arith.addf %1044, %1045 : vector<2x8xf32>
    %1047 = arith.addf %1046, %11 : vector<2x8xf32>
    %1048 = arith.negf %1035 : vector<2x8xf32>
    %1049 = math.exp %1048 : vector<2x8xf32>
    %cst_71 = arith.constant 1.000000e+00 : f32
    %1050 = vector.broadcast %cst_71 : f32 to vector<2x8xf32>
    %1051 = arith.addf %1050, %1049 : vector<2x8xf32>
    %1052 = arith.divf %1050, %1051 : vector<2x8xf32>
    %1053 = arith.negf %1039 : vector<2x8xf32>
    %1054 = math.exp %1053 : vector<2x8xf32>
    %cst_72 = arith.constant 1.000000e+00 : f32
    %1055 = vector.broadcast %cst_72 : f32 to vector<2x8xf32>
    %1056 = arith.addf %1055, %1054 : vector<2x8xf32>
    %1057 = arith.divf %1055, %1056 : vector<2x8xf32>
    %1058 = math.tanh %1043 : vector<2x8xf32>
    %1059 = arith.negf %1047 : vector<2x8xf32>
    %1060 = math.exp %1059 : vector<2x8xf32>
    %cst_73 = arith.constant 1.000000e+00 : f32
    %1061 = vector.broadcast %cst_73 : f32 to vector<2x8xf32>
    %1062 = arith.addf %1061, %1060 : vector<2x8xf32>
    %1063 = arith.divf %1061, %1062 : vector<2x8xf32>
    %1064 = arith.mulf %1057, %990 : vector<2x8xf32>
    %1065 = arith.mulf %1052, %1058 : vector<2x8xf32>
    %1066 = arith.addf %1064, %1065 : vector<2x8xf32>
    %1067 = math.tanh %1066 : vector<2x8xf32>
    %1068 = arith.mulf %1063, %1067 : vector<2x8xf32>
    %c4_i32_74 = arith.constant 4 : i32
    %1069 = vector.broadcast %c4_i32_74 : i32 to vector<1x8xi32>
    %1070 = arith.cmpi sge, %15, %1069 : vector<1x8xi32>
    %c7_i32_75 = arith.constant 7 : i32
    %1071 = vector.broadcast %c7_i32_75 : i32 to vector<1x8xi32>
    %1072 = arith.cmpi sle, %15, %1071 : vector<1x8xi32>
    %1073 = arith.andi %1070, %1072 : vector<1x8xi1>
    %1074 = vector.shape_cast %1073 : vector<1x8xi1> to vector<1x8xi1>
    %1075 = vector.broadcast %1074 : vector<1x8xi1> to vector<2x8xi1>
    %1076 = arith.select %1075, %1066, %990 : vector<2x8xi1>, vector<2x8xf32>
    %1077 = vector.shape_cast %1073 : vector<1x8xi1> to vector<1x8xi1>
    %1078 = vector.broadcast %1077 : vector<1x8xi1> to vector<2x8xi1>
    %1079 = arith.select %1078, %1068, %993 : vector<2x8xi1>, vector<2x8xf32>
    %1080 = vector.broadcast %48 : vector<2x1xf32> to vector<2x8xf32>
    %1081 = vector.broadcast %19 : vector<1x8xf32> to vector<2x8xf32>
    %1082 = arith.mulf %1080, %1081 : vector<2x8xf32>
    %1083 = vector.extract_strided_slice %1079 {offsets = [0, 0], sizes = [2, 1], strides = [1, 1]} : vector<2x8xf32> to vector<2x1xf32>
    %1084 = vector.broadcast %1083 : vector<2x1xf32> to vector<2x8xf32>
    %1085 = vector.broadcast %23 : vector<1x8xf32> to vector<2x8xf32>
    %1086 = arith.mulf %1084, %1085 : vector<2x8xf32>
    %1087 = vector.extract_strided_slice %1079 {offsets = [0, 1], sizes = [2, 1], strides = [1, 1]} : vector<2x8xf32> to vector<2x1xf32>
    %1088 = vector.broadcast %1087 : vector<2x1xf32> to vector<2x8xf32>
    %1089 = vector.broadcast %27 : vector<1x8xf32> to vector<2x8xf32>
    %1090 = arith.mulf %1088, %1089 : vector<2x8xf32>
    %1091 = vector.extract_strided_slice %1079 {offsets = [0, 2], sizes = [2, 1], strides = [1, 1]} : vector<2x8xf32> to vector<2x1xf32>
    %1092 = vector.broadcast %1091 : vector<2x1xf32> to vector<2x8xf32>
    %1093 = vector.broadcast %31 : vector<1x8xf32> to vector<2x8xf32>
    %1094 = arith.mulf %1092, %1093 : vector<2x8xf32>
    %1095 = vector.extract_strided_slice %1079 {offsets = [0, 3], sizes = [2, 1], strides = [1, 1]} : vector<2x8xf32> to vector<2x1xf32>
    %1096 = vector.broadcast %1095 : vector<2x1xf32> to vector<2x8xf32>
    %1097 = vector.broadcast %35 : vector<1x8xf32> to vector<2x8xf32>
    %1098 = arith.mulf %1096, %1097 : vector<2x8xf32>
    %1099 = vector.extract_strided_slice %1079 {offsets = [0, 4], sizes = [2, 1], strides = [1, 1]} : vector<2x8xf32> to vector<2x1xf32>
    %1100 = vector.broadcast %1099 : vector<2x1xf32> to vector<2x8xf32>
    %1101 = vector.broadcast %39 : vector<1x8xf32> to vector<2x8xf32>
    %1102 = arith.mulf %1100, %1101 : vector<2x8xf32>
    %1103 = vector.extract_strided_slice %1079 {offsets = [0, 5], sizes = [2, 1], strides = [1, 1]} : vector<2x8xf32> to vector<2x1xf32>
    %1104 = vector.broadcast %1103 : vector<2x1xf32> to vector<2x8xf32>
    %1105 = vector.broadcast %43 : vector<1x8xf32> to vector<2x8xf32>
    %1106 = arith.mulf %1104, %1105 : vector<2x8xf32>
    %1107 = vector.extract_strided_slice %1079 {offsets = [0, 6], sizes = [2, 1], strides = [1, 1]} : vector<2x8xf32> to vector<2x1xf32>
    %1108 = vector.broadcast %1107 : vector<2x1xf32> to vector<2x8xf32>
    %1109 = vector.broadcast %47 : vector<1x8xf32> to vector<2x8xf32>
    %1110 = arith.mulf %1108, %1109 : vector<2x8xf32>
    %1111 = arith.addf %1082, %1086 : vector<2x8xf32>
    %1112 = arith.addf %1090, %1094 : vector<2x8xf32>
    %1113 = arith.addf %1098, %1102 : vector<2x8xf32>
    %1114 = arith.addf %1106, %1110 : vector<2x8xf32>
    %1115 = arith.addf %1111, %1112 : vector<2x8xf32>
    %1116 = arith.addf %1113, %1114 : vector<2x8xf32>
    %1117 = arith.addf %1115, %1116 : vector<2x8xf32>
    %1118 = arith.mulf %1117, %0 : vector<2x8xf32>
    %1119 = arith.mulf %1079, %4 : vector<2x8xf32>
    %1120 = arith.addf %1118, %1119 : vector<2x8xf32>
    %1121 = arith.addf %1120, %8 : vector<2x8xf32>
    %1122 = arith.mulf %1117, %1 : vector<2x8xf32>
    %1123 = arith.mulf %1079, %5 : vector<2x8xf32>
    %1124 = arith.addf %1122, %1123 : vector<2x8xf32>
    %1125 = arith.addf %1124, %9 : vector<2x8xf32>
    %1126 = arith.mulf %1117, %2 : vector<2x8xf32>
    %1127 = arith.mulf %1079, %6 : vector<2x8xf32>
    %1128 = arith.addf %1126, %1127 : vector<2x8xf32>
    %1129 = arith.addf %1128, %10 : vector<2x8xf32>
    %1130 = arith.mulf %1117, %3 : vector<2x8xf32>
    %1131 = arith.mulf %1079, %7 : vector<2x8xf32>
    %1132 = arith.addf %1130, %1131 : vector<2x8xf32>
    %1133 = arith.addf %1132, %11 : vector<2x8xf32>
    %1134 = arith.negf %1121 : vector<2x8xf32>
    %1135 = math.exp %1134 : vector<2x8xf32>
    %cst_76 = arith.constant 1.000000e+00 : f32
    %1136 = vector.broadcast %cst_76 : f32 to vector<2x8xf32>
    %1137 = arith.addf %1136, %1135 : vector<2x8xf32>
    %1138 = arith.divf %1136, %1137 : vector<2x8xf32>
    %1139 = arith.negf %1125 : vector<2x8xf32>
    %1140 = math.exp %1139 : vector<2x8xf32>
    %cst_77 = arith.constant 1.000000e+00 : f32
    %1141 = vector.broadcast %cst_77 : f32 to vector<2x8xf32>
    %1142 = arith.addf %1141, %1140 : vector<2x8xf32>
    %1143 = arith.divf %1141, %1142 : vector<2x8xf32>
    %1144 = math.tanh %1129 : vector<2x8xf32>
    %1145 = arith.negf %1133 : vector<2x8xf32>
    %1146 = math.exp %1145 : vector<2x8xf32>
    %cst_78 = arith.constant 1.000000e+00 : f32
    %1147 = vector.broadcast %cst_78 : f32 to vector<2x8xf32>
    %1148 = arith.addf %1147, %1146 : vector<2x8xf32>
    %1149 = arith.divf %1147, %1148 : vector<2x8xf32>
    %1150 = arith.mulf %1143, %1076 : vector<2x8xf32>
    %1151 = arith.mulf %1138, %1144 : vector<2x8xf32>
    %1152 = arith.addf %1150, %1151 : vector<2x8xf32>
    %1153 = math.tanh %1152 : vector<2x8xf32>
    %1154 = arith.mulf %1149, %1153 : vector<2x8xf32>
    %c5_i32_79 = arith.constant 5 : i32
    %1155 = vector.broadcast %c5_i32_79 : i32 to vector<1x8xi32>
    %1156 = arith.cmpi sge, %15, %1155 : vector<1x8xi32>
    %c7_i32_80 = arith.constant 7 : i32
    %1157 = vector.broadcast %c7_i32_80 : i32 to vector<1x8xi32>
    %1158 = arith.cmpi sle, %15, %1157 : vector<1x8xi32>
    %1159 = arith.andi %1156, %1158 : vector<1x8xi1>
    %1160 = vector.shape_cast %1159 : vector<1x8xi1> to vector<1x8xi1>
    %1161 = vector.broadcast %1160 : vector<1x8xi1> to vector<2x8xi1>
    %1162 = arith.select %1161, %1152, %1076 : vector<2x8xi1>, vector<2x8xf32>
    %1163 = vector.shape_cast %1159 : vector<1x8xi1> to vector<1x8xi1>
    %1164 = vector.broadcast %1163 : vector<1x8xi1> to vector<2x8xi1>
    %1165 = arith.select %1164, %1154, %1079 : vector<2x8xi1>, vector<2x8xf32>
    %1166 = vector.broadcast %48 : vector<2x1xf32> to vector<2x8xf32>
    %1167 = vector.broadcast %19 : vector<1x8xf32> to vector<2x8xf32>
    %1168 = arith.mulf %1166, %1167 : vector<2x8xf32>
    %1169 = vector.extract_strided_slice %1165 {offsets = [0, 0], sizes = [2, 1], strides = [1, 1]} : vector<2x8xf32> to vector<2x1xf32>
    %1170 = vector.broadcast %1169 : vector<2x1xf32> to vector<2x8xf32>
    %1171 = vector.broadcast %23 : vector<1x8xf32> to vector<2x8xf32>
    %1172 = arith.mulf %1170, %1171 : vector<2x8xf32>
    %1173 = vector.extract_strided_slice %1165 {offsets = [0, 1], sizes = [2, 1], strides = [1, 1]} : vector<2x8xf32> to vector<2x1xf32>
    %1174 = vector.broadcast %1173 : vector<2x1xf32> to vector<2x8xf32>
    %1175 = vector.broadcast %27 : vector<1x8xf32> to vector<2x8xf32>
    %1176 = arith.mulf %1174, %1175 : vector<2x8xf32>
    %1177 = vector.extract_strided_slice %1165 {offsets = [0, 2], sizes = [2, 1], strides = [1, 1]} : vector<2x8xf32> to vector<2x1xf32>
    %1178 = vector.broadcast %1177 : vector<2x1xf32> to vector<2x8xf32>
    %1179 = vector.broadcast %31 : vector<1x8xf32> to vector<2x8xf32>
    %1180 = arith.mulf %1178, %1179 : vector<2x8xf32>
    %1181 = vector.extract_strided_slice %1165 {offsets = [0, 3], sizes = [2, 1], strides = [1, 1]} : vector<2x8xf32> to vector<2x1xf32>
    %1182 = vector.broadcast %1181 : vector<2x1xf32> to vector<2x8xf32>
    %1183 = vector.broadcast %35 : vector<1x8xf32> to vector<2x8xf32>
    %1184 = arith.mulf %1182, %1183 : vector<2x8xf32>
    %1185 = vector.extract_strided_slice %1165 {offsets = [0, 4], sizes = [2, 1], strides = [1, 1]} : vector<2x8xf32> to vector<2x1xf32>
    %1186 = vector.broadcast %1185 : vector<2x1xf32> to vector<2x8xf32>
    %1187 = vector.broadcast %39 : vector<1x8xf32> to vector<2x8xf32>
    %1188 = arith.mulf %1186, %1187 : vector<2x8xf32>
    %1189 = vector.extract_strided_slice %1165 {offsets = [0, 5], sizes = [2, 1], strides = [1, 1]} : vector<2x8xf32> to vector<2x1xf32>
    %1190 = vector.broadcast %1189 : vector<2x1xf32> to vector<2x8xf32>
    %1191 = vector.broadcast %43 : vector<1x8xf32> to vector<2x8xf32>
    %1192 = arith.mulf %1190, %1191 : vector<2x8xf32>
    %1193 = vector.extract_strided_slice %1165 {offsets = [0, 6], sizes = [2, 1], strides = [1, 1]} : vector<2x8xf32> to vector<2x1xf32>
    %1194 = vector.broadcast %1193 : vector<2x1xf32> to vector<2x8xf32>
    %1195 = vector.broadcast %47 : vector<1x8xf32> to vector<2x8xf32>
    %1196 = arith.mulf %1194, %1195 : vector<2x8xf32>
    %1197 = arith.addf %1168, %1172 : vector<2x8xf32>
    %1198 = arith.addf %1176, %1180 : vector<2x8xf32>
    %1199 = arith.addf %1184, %1188 : vector<2x8xf32>
    %1200 = arith.addf %1192, %1196 : vector<2x8xf32>
    %1201 = arith.addf %1197, %1198 : vector<2x8xf32>
    %1202 = arith.addf %1199, %1200 : vector<2x8xf32>
    %1203 = arith.addf %1201, %1202 : vector<2x8xf32>
    %1204 = arith.mulf %1203, %0 : vector<2x8xf32>
    %1205 = arith.mulf %1165, %4 : vector<2x8xf32>
    %1206 = arith.addf %1204, %1205 : vector<2x8xf32>
    %1207 = arith.addf %1206, %8 : vector<2x8xf32>
    %1208 = arith.mulf %1203, %1 : vector<2x8xf32>
    %1209 = arith.mulf %1165, %5 : vector<2x8xf32>
    %1210 = arith.addf %1208, %1209 : vector<2x8xf32>
    %1211 = arith.addf %1210, %9 : vector<2x8xf32>
    %1212 = arith.mulf %1203, %2 : vector<2x8xf32>
    %1213 = arith.mulf %1165, %6 : vector<2x8xf32>
    %1214 = arith.addf %1212, %1213 : vector<2x8xf32>
    %1215 = arith.addf %1214, %10 : vector<2x8xf32>
    %1216 = arith.mulf %1203, %3 : vector<2x8xf32>
    %1217 = arith.mulf %1165, %7 : vector<2x8xf32>
    %1218 = arith.addf %1216, %1217 : vector<2x8xf32>
    %1219 = arith.addf %1218, %11 : vector<2x8xf32>
    %1220 = arith.negf %1207 : vector<2x8xf32>
    %1221 = math.exp %1220 : vector<2x8xf32>
    %cst_81 = arith.constant 1.000000e+00 : f32
    %1222 = vector.broadcast %cst_81 : f32 to vector<2x8xf32>
    %1223 = arith.addf %1222, %1221 : vector<2x8xf32>
    %1224 = arith.divf %1222, %1223 : vector<2x8xf32>
    %1225 = arith.negf %1211 : vector<2x8xf32>
    %1226 = math.exp %1225 : vector<2x8xf32>
    %cst_82 = arith.constant 1.000000e+00 : f32
    %1227 = vector.broadcast %cst_82 : f32 to vector<2x8xf32>
    %1228 = arith.addf %1227, %1226 : vector<2x8xf32>
    %1229 = arith.divf %1227, %1228 : vector<2x8xf32>
    %1230 = math.tanh %1215 : vector<2x8xf32>
    %1231 = arith.negf %1219 : vector<2x8xf32>
    %1232 = math.exp %1231 : vector<2x8xf32>
    %cst_83 = arith.constant 1.000000e+00 : f32
    %1233 = vector.broadcast %cst_83 : f32 to vector<2x8xf32>
    %1234 = arith.addf %1233, %1232 : vector<2x8xf32>
    %1235 = arith.divf %1233, %1234 : vector<2x8xf32>
    %1236 = arith.mulf %1229, %1162 : vector<2x8xf32>
    %1237 = arith.mulf %1224, %1230 : vector<2x8xf32>
    %1238 = arith.addf %1236, %1237 : vector<2x8xf32>
    %1239 = math.tanh %1238 : vector<2x8xf32>
    %1240 = arith.mulf %1235, %1239 : vector<2x8xf32>
    %c6_i32_84 = arith.constant 6 : i32
    %1241 = vector.broadcast %c6_i32_84 : i32 to vector<1x8xi32>
    %1242 = arith.cmpi sge, %15, %1241 : vector<1x8xi32>
    %c7_i32_85 = arith.constant 7 : i32
    %1243 = vector.broadcast %c7_i32_85 : i32 to vector<1x8xi32>
    %1244 = arith.cmpi sle, %15, %1243 : vector<1x8xi32>
    %1245 = arith.andi %1242, %1244 : vector<1x8xi1>
    %1246 = vector.shape_cast %1245 : vector<1x8xi1> to vector<1x8xi1>
    %1247 = vector.broadcast %1246 : vector<1x8xi1> to vector<2x8xi1>
    %1248 = arith.select %1247, %1238, %1162 : vector<2x8xi1>, vector<2x8xf32>
    %1249 = vector.shape_cast %1245 : vector<1x8xi1> to vector<1x8xi1>
    %1250 = vector.broadcast %1249 : vector<1x8xi1> to vector<2x8xi1>
    %1251 = arith.select %1250, %1240, %1165 : vector<2x8xi1>, vector<2x8xf32>
    %1252 = vector.broadcast %48 : vector<2x1xf32> to vector<2x8xf32>
    %1253 = vector.broadcast %19 : vector<1x8xf32> to vector<2x8xf32>
    %1254 = arith.mulf %1252, %1253 : vector<2x8xf32>
    %1255 = vector.extract_strided_slice %1251 {offsets = [0, 0], sizes = [2, 1], strides = [1, 1]} : vector<2x8xf32> to vector<2x1xf32>
    %1256 = vector.broadcast %1255 : vector<2x1xf32> to vector<2x8xf32>
    %1257 = vector.broadcast %23 : vector<1x8xf32> to vector<2x8xf32>
    %1258 = arith.mulf %1256, %1257 : vector<2x8xf32>
    %1259 = vector.extract_strided_slice %1251 {offsets = [0, 1], sizes = [2, 1], strides = [1, 1]} : vector<2x8xf32> to vector<2x1xf32>
    %1260 = vector.broadcast %1259 : vector<2x1xf32> to vector<2x8xf32>
    %1261 = vector.broadcast %27 : vector<1x8xf32> to vector<2x8xf32>
    %1262 = arith.mulf %1260, %1261 : vector<2x8xf32>
    %1263 = vector.extract_strided_slice %1251 {offsets = [0, 2], sizes = [2, 1], strides = [1, 1]} : vector<2x8xf32> to vector<2x1xf32>
    %1264 = vector.broadcast %1263 : vector<2x1xf32> to vector<2x8xf32>
    %1265 = vector.broadcast %31 : vector<1x8xf32> to vector<2x8xf32>
    %1266 = arith.mulf %1264, %1265 : vector<2x8xf32>
    %1267 = vector.extract_strided_slice %1251 {offsets = [0, 3], sizes = [2, 1], strides = [1, 1]} : vector<2x8xf32> to vector<2x1xf32>
    %1268 = vector.broadcast %1267 : vector<2x1xf32> to vector<2x8xf32>
    %1269 = vector.broadcast %35 : vector<1x8xf32> to vector<2x8xf32>
    %1270 = arith.mulf %1268, %1269 : vector<2x8xf32>
    %1271 = vector.extract_strided_slice %1251 {offsets = [0, 4], sizes = [2, 1], strides = [1, 1]} : vector<2x8xf32> to vector<2x1xf32>
    %1272 = vector.broadcast %1271 : vector<2x1xf32> to vector<2x8xf32>
    %1273 = vector.broadcast %39 : vector<1x8xf32> to vector<2x8xf32>
    %1274 = arith.mulf %1272, %1273 : vector<2x8xf32>
    %1275 = vector.extract_strided_slice %1251 {offsets = [0, 5], sizes = [2, 1], strides = [1, 1]} : vector<2x8xf32> to vector<2x1xf32>
    %1276 = vector.broadcast %1275 : vector<2x1xf32> to vector<2x8xf32>
    %1277 = vector.broadcast %43 : vector<1x8xf32> to vector<2x8xf32>
    %1278 = arith.mulf %1276, %1277 : vector<2x8xf32>
    %1279 = vector.extract_strided_slice %1251 {offsets = [0, 6], sizes = [2, 1], strides = [1, 1]} : vector<2x8xf32> to vector<2x1xf32>
    %1280 = vector.broadcast %1279 : vector<2x1xf32> to vector<2x8xf32>
    %1281 = vector.broadcast %47 : vector<1x8xf32> to vector<2x8xf32>
    %1282 = arith.mulf %1280, %1281 : vector<2x8xf32>
    %1283 = arith.addf %1254, %1258 : vector<2x8xf32>
    %1284 = arith.addf %1262, %1266 : vector<2x8xf32>
    %1285 = arith.addf %1270, %1274 : vector<2x8xf32>
    %1286 = arith.addf %1278, %1282 : vector<2x8xf32>
    %1287 = arith.addf %1283, %1284 : vector<2x8xf32>
    %1288 = arith.addf %1285, %1286 : vector<2x8xf32>
    %1289 = arith.addf %1287, %1288 : vector<2x8xf32>
    %1290 = arith.mulf %1289, %0 : vector<2x8xf32>
    %1291 = arith.mulf %1251, %4 : vector<2x8xf32>
    %1292 = arith.addf %1290, %1291 : vector<2x8xf32>
    %1293 = arith.addf %1292, %8 : vector<2x8xf32>
    %1294 = arith.mulf %1289, %1 : vector<2x8xf32>
    %1295 = arith.mulf %1251, %5 : vector<2x8xf32>
    %1296 = arith.addf %1294, %1295 : vector<2x8xf32>
    %1297 = arith.addf %1296, %9 : vector<2x8xf32>
    %1298 = arith.mulf %1289, %2 : vector<2x8xf32>
    %1299 = arith.mulf %1251, %6 : vector<2x8xf32>
    %1300 = arith.addf %1298, %1299 : vector<2x8xf32>
    %1301 = arith.addf %1300, %10 : vector<2x8xf32>
    %1302 = arith.mulf %1289, %3 : vector<2x8xf32>
    %1303 = arith.mulf %1251, %7 : vector<2x8xf32>
    %1304 = arith.addf %1302, %1303 : vector<2x8xf32>
    %1305 = arith.addf %1304, %11 : vector<2x8xf32>
    %1306 = arith.negf %1293 : vector<2x8xf32>
    %1307 = math.exp %1306 : vector<2x8xf32>
    %cst_86 = arith.constant 1.000000e+00 : f32
    %1308 = vector.broadcast %cst_86 : f32 to vector<2x8xf32>
    %1309 = arith.addf %1308, %1307 : vector<2x8xf32>
    %1310 = arith.divf %1308, %1309 : vector<2x8xf32>
    %1311 = arith.negf %1297 : vector<2x8xf32>
    %1312 = math.exp %1311 : vector<2x8xf32>
    %cst_87 = arith.constant 1.000000e+00 : f32
    %1313 = vector.broadcast %cst_87 : f32 to vector<2x8xf32>
    %1314 = arith.addf %1313, %1312 : vector<2x8xf32>
    %1315 = arith.divf %1313, %1314 : vector<2x8xf32>
    %1316 = math.tanh %1301 : vector<2x8xf32>
    %1317 = arith.negf %1305 : vector<2x8xf32>
    %1318 = math.exp %1317 : vector<2x8xf32>
    %cst_88 = arith.constant 1.000000e+00 : f32
    %1319 = vector.broadcast %cst_88 : f32 to vector<2x8xf32>
    %1320 = arith.addf %1319, %1318 : vector<2x8xf32>
    %1321 = arith.divf %1319, %1320 : vector<2x8xf32>
    %1322 = arith.mulf %1315, %1248 : vector<2x8xf32>
    %1323 = arith.mulf %1310, %1316 : vector<2x8xf32>
    %1324 = arith.addf %1322, %1323 : vector<2x8xf32>
    %1325 = math.tanh %1324 : vector<2x8xf32>
    %1326 = arith.mulf %1321, %1325 : vector<2x8xf32>
    %c7_i32_89 = arith.constant 7 : i32
    %1327 = vector.broadcast %c7_i32_89 : i32 to vector<1x8xi32>
    %1328 = arith.cmpi sge, %15, %1327 : vector<1x8xi32>
    %c7_i32_90 = arith.constant 7 : i32
    %1329 = vector.broadcast %c7_i32_90 : i32 to vector<1x8xi32>
    %1330 = arith.cmpi sle, %15, %1329 : vector<1x8xi32>
    %1331 = arith.andi %1328, %1330 : vector<1x8xi1>
    %1332 = vector.shape_cast %1331 : vector<1x8xi1> to vector<1x8xi1>
    %1333 = vector.broadcast %1332 : vector<1x8xi1> to vector<2x8xi1>
    %1334 = arith.select %1333, %1326, %1251 : vector<2x8xi1>, vector<2x8xf32>
    %1335 = tpu.iota {dimensions = array<i32: 1>} : vector<2x8xi32>
    %c2_i32_91 = arith.constant 2 : i32
    %1336 = vector.broadcast %c2_i32_91 : i32 to vector<2x8xi32>
    %1337 = arith.muli %1335, %1336 : vector<2x8xi32>
    %1338 = tpu.iota {dimensions = array<i32: 0>} : vector<2x8xi32>
    %1339 = arith.addi %1337, %1338 : vector<2x8xi32>
    %1340 = arith.mulf %1334, %12 : vector<2x8xf32>
    %cst_92 = arith.constant 0.000000e+00 : f32
    %1341 = vector.broadcast %cst_92 : f32 to vector<1x2xf32>
    %c0_i32_93 = arith.constant 0 : i32
    %1342 = vector.broadcast %c0_i32_93 : i32 to vector<2x8xi32>
    %1343 = arith.cmpi sge, %1339, %1342 : vector<2x8xi32>
    %c8_i32 = arith.constant 8 : i32
    %1344 = vector.broadcast %c8_i32 : i32 to vector<2x8xi32>
    %1345 = arith.cmpi slt, %1339, %1344 : vector<2x8xi32>
    %1346 = arith.andi %1343, %1345 : vector<2x8xi1>
    %cst_94 = arith.constant 0.000000e+00 : f32
    %1347 = vector.broadcast %cst_94 : f32 to vector<2x8xf32>
    %1348 = arith.select %1346, %1340, %1347 : vector<2x8xi1>, vector<2x8xf32>
    %cst_95 = arith.constant dense<0.000000e+00> : vector<8xf32>
    %1349 = vector.multi_reduction <add>, %1348, %cst_95 [0] : vector<2x8xf32> to vector<8xf32>
    %1350 = vector.shape_cast %1349 : vector<8xf32> to vector<1x8xf32>
    %cst_96 = arith.constant dense<0.000000e+00> : vector<1xf32>
    %1351 = vector.multi_reduction <add>, %1350, %cst_96 [1] : vector<1x8xf32> to vector<1xf32>
    %1352 = vector.shape_cast %1351 : vector<1xf32> to vector<1x1xf32>
    %1353 = tpu.iota {dimensions = array<i32: 1>} : vector<1x2xi32>
    %c0_i32_97 = arith.constant 0 : i32
    %1354 = vector.broadcast %c0_i32_97 : i32 to vector<1x2xi32>
    %1355 = arith.cmpi eq, %1353, %1354 : vector<1x2xi32>
    %1356 = arith.extui %1355 : vector<1x2xi1> to vector<1x2xi32>
    %1357 = arith.sitofp %1356 : vector<1x2xi32> to vector<1x2xf32>
    %1358 = vector.broadcast %1352 : vector<1x1xf32> to vector<1x2xf32>
    %1359 = arith.mulf %1358, %1357 : vector<1x2xf32>
    %1360 = arith.addf %1341, %1359 : vector<1x2xf32>
    %c8_i32_98 = arith.constant 8 : i32
    %1361 = vector.broadcast %c8_i32_98 : i32 to vector<2x8xi32>
    %1362 = arith.cmpi sge, %1339, %1361 : vector<2x8xi32>
    %c16_i32 = arith.constant 16 : i32
    %1363 = vector.broadcast %c16_i32 : i32 to vector<2x8xi32>
    %1364 = arith.cmpi slt, %1339, %1363 : vector<2x8xi32>
    %1365 = arith.andi %1362, %1364 : vector<2x8xi1>
    %cst_99 = arith.constant 0.000000e+00 : f32
    %1366 = vector.broadcast %cst_99 : f32 to vector<2x8xf32>
    %1367 = arith.select %1365, %1340, %1366 : vector<2x8xi1>, vector<2x8xf32>
    %cst_100 = arith.constant dense<0.000000e+00> : vector<8xf32>
    %1368 = vector.multi_reduction <add>, %1367, %cst_100 [0] : vector<2x8xf32> to vector<8xf32>
    %1369 = vector.shape_cast %1368 : vector<8xf32> to vector<1x8xf32>
    %cst_101 = arith.constant dense<0.000000e+00> : vector<1xf32>
    %1370 = vector.multi_reduction <add>, %1369, %cst_101 [1] : vector<1x8xf32> to vector<1xf32>
    %1371 = vector.shape_cast %1370 : vector<1xf32> to vector<1x1xf32>
    %1372 = tpu.iota {dimensions = array<i32: 1>} : vector<1x2xi32>
    %c1_i32_102 = arith.constant 1 : i32
    %1373 = vector.broadcast %c1_i32_102 : i32 to vector<1x2xi32>
    %1374 = arith.cmpi eq, %1372, %1373 : vector<1x2xi32>
    %1375 = arith.extui %1374 : vector<1x2xi1> to vector<1x2xi32>
    %1376 = arith.sitofp %1375 : vector<1x2xi32> to vector<1x2xf32>
    %1377 = vector.broadcast %1371 : vector<1x1xf32> to vector<1x2xf32>
    %1378 = arith.mulf %1377, %1376 : vector<1x2xf32>
    %1379 = arith.addf %1360, %1378 : vector<1x2xf32>
    %1380 = vector.broadcast %13 : vector<1x1xf32> to vector<1x2xf32>
    %1381 = arith.addf %1379, %1380 : vector<1x2xf32>
    %c0_103 = arith.constant 0 : index
    %c0_104 = arith.constant 0 : index
    %1382 = vector.load %arg2[%c0_103, %c0_104] : memref<1x2xf32, #tpu.memory_space<vmem>>, vector<1x2xf32>
    tpu.vector_store %arg2[%c0_103, %c0_104], %1381 {strides = array<i32>} : memref<1x2xf32, #tpu.memory_space<vmem>>, vector<1x2xf32>,
    return
  }
}

</mosaic_0001>

<bundles_post_ra>
// kernel: lstmnet_forward.1
= control target key start
LH: loop header
LB: loop body
LE: loop exit
PB: predicated region body
PF: predicated region fallthrough
CT: control target
= control target key end

     0   :  { %v1913_v1 = vmov 0   ;;  %s2858_s0 = inlined_call_operand.vmem [shape: f32[2,8], index: 0, kind: input, shape index: {}]   ;;  %s2859_s1 = inlined_call_operand.vmem [shape: f32[27,8], index: 1, kind: input, shape index: {}]   ;;  %s2860_s2 = inlined_call_operand.hbm [shape: f32[1,2], index: 2, kind: output, shape index: {}]  }
   0x1   :  { %v1941_v0 = vld [vmem:[%s2858_s0] sm:$0x3]  ;;  %1520 = vset.pattern.permute.xlu0 %v1913_v1  ;;  %1522 = vset.pattern.permute.xlu1 %v1913_v1 }
   0x2   :  { %55 = vperm.xlu0 %1520, %v1941_v0  }
   0x3   :  { %7 = vsyncpa [#allocation3], 0  ;;  %v1914_v2 = vmov 1   ;;  %v1915_v3 = vmov 3   ;;  %v27_v4 = vlaneseq  ;;  %v1916_v6 = vmov 0.0   ;;  %s1922_s3 = smov [#allocation2]  }
   0x4   :  { %v1987_v29 = vld [vmem:[%s2859_s1 + $0x8] sm:$0x3]  ;;  %v1992_v30 = vld [vmem:[%s2859_s1 + $0xa] sm:$0x3]  ;;  %v1997_v32 = vld [vmem:[%s2859_s1] sm:$0x3] }
   0x5   :  { %v1950_v5 = vand.u32 127, %v27_v4  ;;  %v2002_v33 = vld [vmem:[%s2859_s1 + $0x2] sm:$0x3]  ;;  %v74_v35 = vmul.f32 0.0, %v1987_v29  ;;  %v78_v36 = vmul.f32 0.0, %v1992_v30  ;;  %s1449_s4 = sshll.u32 %s1922_s3, 4  ;;  %s1450_s4 = int_to_ptr.vmem [resolvable:$true] %s1449_s4 }
   0x6   :  { %1521 = vset.pattern.permute.xlu0 %v1914_v2  ;;  %v2011_v39 = vld [vmem:[%s2859_s1 + $0x10] sm:$0x3]  ;;  %v2016_v40 = vld [vmem:[%s2859_s1 + $0x12] sm:$0x3]  ;;  %v2021_v43 = vld [vmem:[%s2859_s1 + $0x6] sm:$0x3]  ;;  %p1896_p1 = scmp.lt.s32.totalorder %s1450_s4, %s1450_s4 }
   0x7   :  { %121 = vperm.xlu0 %1521, %v1941_v0   ;;  %vm41_vm0 = vcmp.eq.s32.totalorder %v1950_v5, 4  ;;  %vm44_vm1 = vcmp.eq.s32.totalorder %v1950_v5, 5  ;;  %vm47_vm2 = vcmp.eq.s32.totalorder %v1950_v5, 6  ;;  %vm50_vm3 = vcmp.eq.s32.totalorder %v1950_v5, 7  ;;  %v2026_v44 = vld [vmem:[%s2859_s1 + $0xe] sm:$0x3] }
   0x8   :  { %vm35_vm4 = vcmp.eq.s32.totalorder %v1950_v5, 2  ;;  %vm38_vm5 = vcmp.eq.s32.totalorder %v1950_v5, 3  ;;  %v1958_v7 = vsel %vm41_vm0, 1.0, %v1916_v6  ;;  %v1960_v8 = vsel %vm44_vm1, 1.0, %v1916_v6  ;;  %v2035_v51 = vld [vmem:[%s2859_s1 + $0x4] sm:$0x3] }
   0x9   :  { %v1962_v9 = vsel %vm47_vm2, 1.0, %v1916_v6  ;;  %v1964_v10 = vsel %vm50_vm3, 1.0, %v1916_v6  ;;  %vm32_vm6 = vcmp.eq.s32.totalorder %v1950_v5, 1  ;;  %vm29_vm7 = vcmp.eq.s32.totalorder %v1950_v5, 0  ;;  %v2040_v52 = vld [vmem:[%s2859_s1 + $0xc] sm:$0x3] }
   0xa   :  { %v1968_v11 = vsel %vm35_vm4, 1.0, %v1916_v6  ;;  %v1970_v12 = vsel %vm38_vm5, 1.0, %v1916_v6  ;;  %v62_v13 = vmul.f32 0.0, %v1958_v7  ;;  %v63_v14 = vmul.f32 0.0, %v1960_v8  ;;  %v2045_v54 = vld [vmem:[%s2859_s1 + $0x16] sm:$0x3] }
   0xb   :  { %1525 = vset.pattern.permute.xlu0 %v1915_v3  ;;  %v64_v15 = vmul.f32 0.0, %v1962_v9  ;;  %v65_v16 = vmul.f32 0.0, %v1964_v10  ;;  %v1976_v17 = vsel %vm32_vm6, 1.0, %v1916_v6  ;;  %v60_v18 = vmul.f32 0.0, %v1968_v11  ;;  %v2053_v59 = vld [vmem:[%s2859_s1 + $0x14] sm:$0x3] }
   0xc   :  { %v61_v19 = vmul.f32 0.0, %v1970_v12  ;;  %v1980_v20 = vsel %vm29_vm7, 1.0, %v1916_v6  ;;  %v59_v21 = vmul.f32 0.0, %v1976_v17  ;;  %v68_v22 = vadd.f32 %v63_v14, %v62_v13  ;;  %s1891_s5 = scalar_lea.vmem %s1450_s4, 16  ;;  %s1895_s6 = scalar_lea.vmem %s1450_s4, 32 }
   0xd   :  { %v69_v23 = vadd.f32 %v65_v16, %v64_v15  ;;  %v86_v48 = vmul.f32 0.0, %v2026_v44  ;;  %v82_v56 = vmul.f32 0.0, %v2040_v52  ;;  %vm114_vm8 = vcmp.le.s32.totalorder %v1950_v5, 0  ;;  %p1892_p0 = scmp.ne.s32.totalorder %s1450_s4, %s1891_s5  ;;  %p1897_p2 = scmp.lt.s32.totalorder %s1895_s6, %s1891_s5 }
   0xe   :  { %v67_v25 = vadd.f32 %v61_v19, %v60_v18  ;;  %vm208_vm9 = vcmp.le.s32.totalorder %v1950_v5, 1  ;;  %vm302_vm10 = vcmp.le.s32.totalorder %v1950_v5, 2  ;;  %vm396_vm11 = vcmp.le.s32.totalorder %v1950_v5, 3 }
   0xf   :  { %v71_v27 = vadd.f32 %v69_v23, %v68_v22  ;;  %vm490_vm12 = vcmp.le.s32.totalorder %v1950_v5, 4  ;;  %vm584_vm13 = vcmp.le.s32.totalorder %v1950_v5, 5  ;;  %vm678_vm14 = vcmp.le.s32.totalorder %v1950_v5, 6  ;;  %p1898_p3 = por %p1897_p2, %p1896_p1 }
  0x10   :  { %vm856_vm15 = vcmp.ge.s32.totalorder %v1950_v5, 1  ;;  %vm857_vm0 = vcmp.le.s32.totalorder %v1950_v5, 7  ;;  %vm946_vm2 = vcmp.ge.s32.totalorder %v1950_v5, 2  ;;  %vm1035_vm4 = vcmp.ge.s32.totalorder %v1950_v5, 3 }
  0x11   :  { %vm858_vm1 = vmand %vm856_vm15, %vm857_vm0  ;;  %vm1124_vm6 = vcmp.ge.s32.totalorder %v1950_v5, 4  ;;  %p1899_p4 = pnand %p1898_p3, %p1892_p0 }
  0x12   :  { %vm947_vm3 = vmand %vm946_vm2, %vm857_vm0 }
  0x13   :  { %vm1036_vm5 = vmand %vm1035_vm4, %vm857_vm0 }
  0x14   :  { %vm1125_vm7 = vmand %vm1124_vm6, %vm857_vm0  ;;  %vm1441_vm6 = vcmask 8192  }
  0x7d   :  { %v56_v24 = vpop.permute.xlu0 %55 }
  0x7e   :  { %v58_v26 = vmul.f32 %v1980_v20, %v56_v24 }
  0x80   :  { %v66_v28 = vadd.f32 %v59_v21, %v58_v26 }
  0x82   :  { %v70_v31 = vadd.f32 %v67_v25, %v66_v28 }
  0x84   :  { %v72_v34 = vadd.f32 %v71_v27, %v70_v31  ;;  %v1917_v31 = vmov 6  }
  0x86   :  { %v73_v37 = vmul.f32 %v72_v34, %v1997_v32  ;;  %v77_v38 = vmul.f32 %v72_v34, %v2002_v33  ;;  %v85_v47 = vmul.f32 %v72_v34, %v2021_v43  ;;  %v81_v55 = vmul.f32 %v72_v34, %v2035_v51 }
  0x87   :  { %v1918_v34 = vmov 2  }
  0x88   :  { %v75_v41 = vadd.f32 %v74_v35, %v73_v37  ;;  %v79_v42 = vadd.f32 %v78_v36, %v77_v38  ;;  %v87_v53 = vadd.f32 %v86_v48, %v85_v47  ;;  %v83_v58 = vadd.f32 %v82_v56, %v81_v55 }
  0x89   :  { %v1919_v35 = vmov 4   ;;  %v1920_v36 = vmov 5  }
  0x8a   :  { %v76_v45 = vadd.f32 %v75_v41, %v2011_v39  ;;  %v80_v46 = vadd.f32 %v79_v42, %v2016_v40  ;;  %v88_v57 = vadd.f32 %v87_v53, %v2045_v54  ;;  %v84_v61 = vadd.f32 %v83_v58, %v2053_v59  ;;  %v122_v41 = vpop.permute.xlu0 %121 }
  0x8c   :  { %v1465_v49 = vmul.f32 -1.442695, %v76_v45  ;;  %v1466_v50 = vmul.f32 -1.442695, %v80_v46  ;;  %v1467_v60 = vmul.f32 -1.442695, %v88_v57 }
  0x8e   :  { %1626 = vpow2.f32 %v1465_v49  ;;  %v124_v49 = vmul.f32 %v1980_v20, %v122_v41 }
  0x8f   :  { %1628 = vpow2.f32 %v1466_v50 }
  0x90   :  { %1630 = vpow2.f32 %v1467_v60 }
  0x91   :  { %1632 = vtanh.f32 %v84_v61 }
  0x9b   :  { %v1627_v62 = vpop.eup %1626 }
  0x9c   :  { %v1629_v63 = vpop.eup %1628  ;;  %v92_v6 = vadd.f32 1.0, %v1627_v62 }
  0x9d   :  { %v98_v13 = vadd.f32 1.0, %v1629_v63  ;;  %v1631_v14 = vpop.eup %1630 }
  0x9e   :  { %1634 = vrcp.f32 %v92_v6  ;;  %v1633_v15 = vpop.eup %1632  ;;  %v105_v19 = vadd.f32 1.0, %v1631_v14 }
  0x9f   :  { %1636 = vrcp.f32 %v98_v13 }
  0xa0   :  { %1638 = vrcp.f32 %v105_v19 }
  0xab   :  { %v1635_v16 = vpop.eup %1634 }
  0xac   :  { %v1637_v18 = vpop.eup %1636  ;;  %v109_v21 = vmul.f32 %v1635_v16, %v1633_v15 }
  0xad   :  { %v108_v22 = vmul.f32 0.0, %v1637_v18  ;;  %v1639_v25 = vpop.eup %1638 }
  0xaf   :  { %v110_v23 = vadd.f32 %v109_v21, %v108_v22 }
  0xb1   :  { %1640 = vtanh.f32 %v110_v23  ;;  %v2057_v24 = vsel %vm114_vm8, %v110_v23, 0.0 }
  0xbe   :  { %v1641_v26 = vpop.eup %1640 }
  0xbf   :  { %v112_v27 = vmul.f32 %v1641_v26, %v1639_v25 }
  0xc1   :  { %v2059_v28 = vsel %vm114_vm8, %v112_v27, 0.0  ;;  %vm1213_vm8 = vcmp.ge.s32.totalorder %v1950_v5, 5 }
  0xc2   :  { %142 = vperm.xlu0 %1525, %v2059_v28   ;;  %127 = vperm.xlu1 %1522, %v2059_v28   ;;  %v169_v18 = vmul.f32 %v2059_v28, %v1987_v29  ;;  %v173_v21 = vmul.f32 %v2059_v28, %v1992_v30  ;;  %v181_v41 = vmul.f32 %v2059_v28, %v2026_v44 }
  0xc6   :  { %1528 = vset.pattern.permute.xlu0 %v1917_v31  ;;  %1523 = vset.pattern.permute.xlu1 %v1914_v2 }
  0xc7   :  { %157 = vperm.xlu0 %1528, %v2059_v28   ;;  %132 = vperm.xlu1 %1523, %v2059_v28  }
  0xcb   :  { %1524 = vset.pattern.permute.xlu1 %v1918_v34  ;;  %1531 = vset.pattern.permute.xlu0 %v1914_v2 }
  0xcc   :  { %137 = vperm.xlu1 %1524, %v2059_v28  }
  0xd0   :  { %1526 = vset.pattern.permute.xlu1 %v1919_v35 }
  0xd1   :  { %147 = vperm.xlu1 %1526, %v2059_v28  }
  0xd5   :  { %1527 = vset.pattern.permute.xlu1 %v1920_v36 }
  0xd6   :  { %152 = vperm.xlu1 %1527, %v2059_v28  }
  0xda   :  { %1529 = vset.pattern.permute.xlu1 %v1918_v34 }
  0xdb   :  { %215 = vperm.xlu1 %1529, %v1941_v0  }
  0xdf   :  { %1530 = vset.pattern.permute.xlu1 %v1913_v1 }
 0x13d   :  { %v128_v37 = vpop.permute.xlu1 %127  ;;  %v143_v45 = vpop.permute.xlu0 %142 }
 0x13e   :  { %v130_v50 = vmul.f32 %v1976_v17, %v128_v37  ;;  %v145_v57 = vmul.f32 %v1958_v7, %v143_v45 }
 0x140   :  { %v161_v62 = vadd.f32 %v130_v50, %v124_v49 }
 0x142   :  { %v133_v38 = vpop.permute.xlu1 %132  ;;  %v158_v48 = vpop.permute.xlu0 %157 }
 0x143   :  { %v135_v53 = vmul.f32 %v1968_v11, %v133_v38  ;;  %v160_v58 = vmul.f32 %v1964_v10, %v158_v48 }
 0x147   :  { %v138_v42 = vpop.permute.xlu1 %137 }
 0x148   :  { %v140_v47 = vmul.f32 %v1970_v12, %v138_v42 }
 0x14a   :  { %v162_v60 = vadd.f32 %v140_v47, %v135_v53 }
 0x14c   :  { %v148_v46 = vpop.permute.xlu1 %147  ;;  %v165_v13 = vadd.f32 %v162_v60, %v161_v62 }
 0x14d   :  { %v150_v55 = vmul.f32 %v1960_v8, %v148_v46  ;;  %v177_v46 = vmul.f32 %v2059_v28, %v2040_v52 }
 0x14f   :  { %v163_v63 = vadd.f32 %v150_v55, %v145_v57 }
 0x151   :  { %v153_v56 = vpop.permute.xlu1 %152 }
 0x152   :  { %v155_v61 = vmul.f32 %v1962_v9, %v153_v56 }
 0x154   :  { %v164_v6 = vadd.f32 %v160_v58, %v155_v61 }
 0x156   :  { %v166_v14 = vadd.f32 %v164_v6, %v163_v63 }
 0x158   :  { %v167_v15 = vadd.f32 %v166_v14, %v165_v13 }
 0x15a   :  { %v168_v16 = vmul.f32 %v167_v15, %v1997_v32  ;;  %v172_v19 = vmul.f32 %v167_v15, %v2002_v33  ;;  %v180_v27 = vmul.f32 %v167_v15, %v2021_v43  ;;  %v176_v45 = vmul.f32 %v167_v15, %v2035_v51 }
 0x15c   :  { %v170_v22 = vadd.f32 %v169_v18, %v168_v16  ;;  %v174_v23 = vadd.f32 %v173_v21, %v172_v19  ;;  %v182_v42 = vadd.f32 %v181_v41, %v180_v27  ;;  %v178_v48 = vadd.f32 %v177_v46, %v176_v45 }
 0x15e   :  { %v171_v25 = vadd.f32 %v170_v22, %v2011_v39  ;;  %v175_v26 = vadd.f32 %v174_v23, %v2016_v40  ;;  %v183_v47 = vadd.f32 %v182_v42, %v2045_v54  ;;  %v179_v50 = vadd.f32 %v178_v48, %v2053_v59 }
 0x160   :  { %v1468_v37 = vmul.f32 -1.442695, %v171_v25  ;;  %v1469_v38 = vmul.f32 -1.442695, %v175_v26  ;;  %v1470_v49 = vmul.f32 -1.442695, %v183_v47 }
 0x162   :  { %1642 = vpow2.f32 %v1468_v37 }
 0x163   :  { %1644 = vpow2.f32 %v1469_v38 }
 0x164   :  { %1646 = vpow2.f32 %v1470_v49 }
 0x165   :  { %1648 = vtanh.f32 %v179_v50 }
 0x16f   :  { %v1643_v53 = vpop.eup %1642 }
 0x170   :  { %v1645_v55 = vpop.eup %1644  ;;  %v187_v56 = vadd.f32 1.0, %v1643_v53 }
 0x171   :  { %v193_v57 = vadd.f32 1.0, %v1645_v55  ;;  %v1647_v58 = vpop.eup %1646 }
 0x172   :  { %1650 = vrcp.f32 %v187_v56  ;;  %v1649_v60 = vpop.eup %1648  ;;  %v200_v63 = vadd.f32 1.0, %v1647_v58 }
 0x173   :  { %1652 = vrcp.f32 %v193_v57 }
 0x174   :  { %1654 = vrcp.f32 %v200_v63 }
 0x17f   :  { %v1651_v61 = vpop.eup %1650 }
 0x180   :  { %v1653_v62 = vpop.eup %1652  ;;  %v204_v6 = vmul.f32 %v1651_v61, %v1649_v60 }
 0x181   :  { %v203_v13 = vmul.f32 %v1653_v62, %v2057_v24  ;;  %v1655_v16 = vpop.eup %1654 }
 0x183   :  { %v205_v14 = vadd.f32 %v204_v6, %v203_v13 }
 0x185   :  { %1656 = vtanh.f32 %v205_v14  ;;  %v2104_v15 = vsel %vm208_vm9, %v205_v14, %v2057_v24  ;;  %v216_v24 = vpop.permute.xlu1 %215 }
 0x186   :  { %v218_v45 = vmul.f32 %v1980_v20, %v216_v24 }
 0x192   :  { %v1657_v18 = vpop.eup %1656 }
 0x193   :  { %v207_v19 = vmul.f32 %v1657_v18, %v1655_v16 }
 0x195   :  { %v2107_v21 = vsel %vm208_vm9, %v207_v19, %v2059_v28  ;;  %vm1214_vm9 = vmand %vm1213_vm8, %vm857_vm0 }
 0x196   :  { %226 = vperm.xlu0 %1531, %v2107_v21   ;;  %221 = vperm.xlu1 %1530, %v2107_v21   ;;  %v263_v62 = vmul.f32 %v2107_v21, %v1987_v29  ;;  %v267_v6 = vmul.f32 %v2107_v21, %v1992_v30 }
 0x19a   :  { %1534 = vset.pattern.permute.xlu0 %v1919_v35  ;;  %1532 = vset.pattern.permute.xlu1 %v1918_v34 }
 0x19b   :  { %241 = vperm.xlu0 %1534, %v2107_v21   ;;  %231 = vperm.xlu1 %1532, %v2107_v21  }
 0x19f   :  { %1533 = vset.pattern.permute.xlu1 %v1915_v3  ;;  %1537 = vset.pattern.permute.xlu0 %v1915_v3 }
 0x1a0   :  { %236 = vperm.xlu1 %1533, %v2107_v21   ;;  %309 = vperm.xlu0 %1537, %v1941_v0  }
 0x1a4   :  { %1535 = vset.pattern.permute.xlu1 %v1920_v36  ;;  %1540 = vset.pattern.permute.xlu0 %v1918_v34 }
 0x1a5   :  { %246 = vperm.xlu1 %1535, %v2107_v21  }
 0x1a9   :  { %1536 = vset.pattern.permute.xlu1 %v1917_v31 }
 0x1aa   :  { %251 = vperm.xlu1 %1536, %v2107_v21  }
 0x1ae   :  { %1538 = vset.pattern.permute.xlu1 %v1913_v1 }
 0x211   :  { %v222_v28 = vpop.permute.xlu1 %221  ;;  %v227_v25 = vpop.permute.xlu0 %226 }
 0x212   :  { %v229_v38 = vmul.f32 %v1968_v11, %v227_v25  ;;  %v224_v41 = vmul.f32 %v1976_v17, %v222_v28 }
 0x214   :  { %v255_v53 = vadd.f32 %v224_v41, %v218_v45 }
 0x216   :  { %v232_v22 = vpop.permute.xlu1 %231  ;;  %v242_v37 = vpop.permute.xlu0 %241 }
 0x217   :  { %v234_v27 = vmul.f32 %v1970_v12, %v232_v22  ;;  %v244_v47 = vmul.f32 %v1960_v8, %v242_v37  ;;  %v275_v22 = vmul.f32 %v2107_v21, %v2026_v44 }
 0x219   :  { %v256_v48 = vadd.f32 %v234_v27, %v229_v38 }
 0x21b   :  { %v237_v23 = vpop.permute.xlu1 %236  ;;  %v259_v57 = vadd.f32 %v256_v48, %v255_v53 }
 0x21c   :  { %v239_v42 = vmul.f32 %v1958_v7, %v237_v23 }
 0x21e   :  { %v257_v55 = vadd.f32 %v244_v47, %v239_v42 }
 0x220   :  { %v247_v26 = vpop.permute.xlu1 %246 }
 0x221   :  { %v249_v49 = vmul.f32 %v1962_v9, %v247_v26  ;;  %v271_v26 = vmul.f32 %v2107_v21, %v2040_v52 }
 0x225   :  { %v252_v46 = vpop.permute.xlu1 %251 }
 0x226   :  { %v254_v50 = vmul.f32 %v1964_v10, %v252_v46 }
 0x228   :  { %v258_v56 = vadd.f32 %v254_v50, %v249_v49 }
 0x22a   :  { %v260_v58 = vadd.f32 %v258_v56, %v257_v55 }
 0x22c   :  { %v261_v60 = vadd.f32 %v260_v58, %v259_v57 }
 0x22e   :  { %v262_v61 = vmul.f32 %v261_v60, %v1997_v32  ;;  %v266_v63 = vmul.f32 %v261_v60, %v2002_v33  ;;  %v274_v19 = vmul.f32 %v261_v60, %v2021_v43  ;;  %v270_v25 = vmul.f32 %v261_v60, %v2035_v51 }
 0x230   :  { %v264_v13 = vadd.f32 %v263_v62, %v262_v61  ;;  %v268_v14 = vadd.f32 %v267_v6, %v266_v63  ;;  %v276_v23 = vadd.f32 %v275_v22, %v274_v19  ;;  %v272_v37 = vadd.f32 %v271_v26, %v270_v25 }
 0x232   :  { %v265_v16 = vadd.f32 %v264_v13, %v2011_v39  ;;  %v269_v18 = vadd.f32 %v268_v14, %v2016_v40  ;;  %v277_v27 = vadd.f32 %v276_v23, %v2045_v54  ;;  %v273_v41 = vadd.f32 %v272_v37, %v2053_v59  ;;  %v310_v13 = vpop.permute.xlu0 %309 }
 0x234   :  { %v1471_v24 = vmul.f32 -1.442695, %v265_v16  ;;  %v1472_v28 = vmul.f32 -1.442695, %v269_v18  ;;  %v1473_v38 = vmul.f32 -1.442695, %v277_v27 }
 0x236   :  { %1658 = vpow2.f32 %v1471_v24 }
 0x237   :  { %1660 = vpow2.f32 %v1472_v28  ;;  %v312_v28 = vmul.f32 %v1980_v20, %v310_v13 }
 0x238   :  { %1662 = vpow2.f32 %v1473_v38 }
 0x239   :  { %1664 = vtanh.f32 %v273_v41 }
 0x243   :  { %v1659_v42 = vpop.eup %1658 }
 0x244   :  { %v1661_v45 = vpop.eup %1660  ;;  %v281_v46 = vadd.f32 1.0, %v1659_v42 }
 0x245   :  { %v287_v47 = vadd.f32 1.0, %v1661_v45  ;;  %v1663_v48 = vpop.eup %1662 }
 0x246   :  { %1666 = vrcp.f32 %v281_v46  ;;  %v1665_v49 = vpop.eup %1664  ;;  %v294_v55 = vadd.f32 1.0, %v1663_v48 }
 0x247   :  { %1668 = vrcp.f32 %v287_v47 }
 0x248   :  { %1670 = vrcp.f32 %v294_v55 }
 0x253   :  { %v1667_v50 = vpop.eup %1666 }
 0x254   :  { %v1669_v53 = vpop.eup %1668  ;;  %v298_v56 = vmul.f32 %v1667_v50, %v1665_v49 }
 0x255   :  { %v297_v57 = vmul.f32 %v1669_v53, %v2104_v15  ;;  %v1671_v61 = vpop.eup %1670 }
 0x257   :  { %v299_v58 = vadd.f32 %v298_v56, %v297_v57 }
 0x259   :  { %1672 = vtanh.f32 %v299_v58  ;;  %v2152_v60 = vsel %vm302_vm10, %v299_v58, %v2104_v15 }
 0x266   :  { %v1673_v62 = vpop.eup %1672 }
 0x267   :  { %v301_v63 = vmul.f32 %v1673_v62, %v1671_v61 }
 0x269   :  { %v2155_v6 = vsel %vm302_vm10, %v301_v63, %v2107_v21  ;;  %vm1302_vm10 = vcmp.ge.s32.totalorder %v1950_v5, 6 }
 0x26a   :  { %325 = vperm.xlu0 %1540, %v2155_v6   ;;  %315 = vperm.xlu1 %1538, %v2155_v6   ;;  %v357_v53 = vmul.f32 %v2155_v6, %v1987_v29  ;;  %v361_v56 = vmul.f32 %v2155_v6, %v1992_v30  ;;  %v369_v13 = vmul.f32 %v2155_v6, %v2026_v44 }
 0x26e   :  { %1543 = vset.pattern.permute.xlu0 %v1920_v36  ;;  %1539 = vset.pattern.permute.xlu1 %v1914_v2 }
 0x26f   :  { %340 = vperm.xlu0 %1543, %v2155_v6   ;;  %320 = vperm.xlu1 %1539, %v2155_v6  }
 0x273   :  { %1541 = vset.pattern.permute.xlu1 %v1915_v3  ;;  %1546 = vset.pattern.permute.xlu0 %v1913_v1 }
 0x274   :  { %330 = vperm.xlu1 %1541, %v2155_v6  }
 0x278   :  { %1542 = vset.pattern.permute.xlu1 %v1919_v35 }
 0x279   :  { %335 = vperm.xlu1 %1542, %v2155_v6  }
 0x27d   :  { %1544 = vset.pattern.permute.xlu1 %v1917_v31 }
 0x27e   :  { %345 = vperm.xlu1 %1544, %v2155_v6  }
 0x282   :  { %1545 = vset.pattern.permute.xlu1 %v1919_v35 }
 0x283   :  { %403 = vperm.xlu1 %1545, %v1941_v0  }
 0x287   :  { %1547 = vset.pattern.permute.xlu1 %v1914_v2 }
 0x2e5   :  { %v316_v15 = vpop.permute.xlu1 %315  ;;  %v326_v16 = vpop.permute.xlu0 %325 }
 0x2e6   :  { %v328_v22 = vmul.f32 %v1970_v12, %v326_v16  ;;  %v318_v23 = vmul.f32 %v1976_v17, %v316_v15 }
 0x2e8   :  { %v349_v42 = vadd.f32 %v318_v23, %v312_v28 }
 0x2ea   :  { %v321_v21 = vpop.permute.xlu1 %320  ;;  %v341_v24 = vpop.permute.xlu0 %340 }
 0x2eb   :  { %v323_v19 = vmul.f32 %v1968_v11, %v321_v21  ;;  %v343_v27 = vmul.f32 %v1962_v9, %v341_v24 }
 0x2ed   :  { %v350_v37 = vadd.f32 %v328_v22, %v323_v19 }
 0x2ef   :  { %v331_v14 = vpop.permute.xlu1 %330  ;;  %v353_v47 = vadd.f32 %v350_v37, %v349_v42 }
 0x2f0   :  { %v333_v38 = vmul.f32 %v1958_v7, %v331_v14 }
 0x2f4   :  { %v336_v18 = vpop.permute.xlu1 %335 }
 0x2f5   :  { %v338_v25 = vmul.f32 %v1960_v8, %v336_v18  ;;  %v365_v18 = vmul.f32 %v2155_v6, %v2040_v52 }
 0x2f7   :  { %v351_v45 = vadd.f32 %v338_v25, %v333_v38 }
 0x2f9   :  { %v346_v26 = vpop.permute.xlu1 %345 }
 0x2fa   :  { %v348_v41 = vmul.f32 %v1964_v10, %v346_v26 }
 0x2fc   :  { %v352_v46 = vadd.f32 %v348_v41, %v343_v27 }
 0x2fe   :  { %v354_v48 = vadd.f32 %v352_v46, %v351_v45 }
 0x300   :  { %v355_v49 = vadd.f32 %v354_v48, %v353_v47 }
 0x302   :  { %v356_v50 = vmul.f32 %v355_v49, %v1997_v32  ;;  %v360_v55 = vmul.f32 %v355_v49, %v2002_v33  ;;  %v368_v63 = vmul.f32 %v355_v49, %v2021_v43  ;;  %v364_v16 = vmul.f32 %v355_v49, %v2035_v51 }
 0x304   :  { %v358_v57 = vadd.f32 %v357_v53, %v356_v50  ;;  %v362_v58 = vadd.f32 %v361_v56, %v360_v55  ;;  %v370_v14 = vadd.f32 %v369_v13, %v368_v63  ;;  %v366_v24 = vadd.f32 %v365_v18, %v364_v16 }
 0x306   :  { %v359_v61 = vadd.f32 %v358_v57, %v2011_v39  ;;  %v363_v62 = vadd.f32 %v362_v58, %v2016_v40  ;;  %v371_v19 = vadd.f32 %v370_v14, %v2045_v54  ;;  %v367_v22 = vadd.f32 %v366_v24, %v2053_v59 }
 0x308   :  { %v1474_v15 = vmul.f32 -1.442695, %v359_v61  ;;  %v1475_v21 = vmul.f32 -1.442695, %v363_v62  ;;  %v1476_v28 = vmul.f32 -1.442695, %v371_v19 }
 0x30a   :  { %1674 = vpow2.f32 %v1474_v15 }
 0x30b   :  { %1676 = vpow2.f32 %v1475_v21 }
 0x30c   :  { %1678 = vpow2.f32 %v1476_v28 }
 0x30d   :  { %1680 = vtanh.f32 %v367_v22 }
 0x317   :  { %v1675_v23 = vpop.eup %1674 }
 0x318   :  { %v1677_v25 = vpop.eup %1676  ;;  %v375_v26 = vadd.f32 1.0, %v1675_v23 }
 0x319   :  { %v381_v27 = vadd.f32 1.0, %v1677_v25  ;;  %v1679_v37 = vpop.eup %1678 }
 0x31a   :  { %1682 = vrcp.f32 %v375_v26  ;;  %v1681_v38 = vpop.eup %1680  ;;  %v388_v45 = vadd.f32 1.0, %v1679_v37 }
 0x31b   :  { %1684 = vrcp.f32 %v381_v27 }
 0x31c   :  { %1686 = vrcp.f32 %v388_v45 }
 0x327   :  { %v1683_v41 = vpop.eup %1682 }
 0x328   :  { %v1685_v42 = vpop.eup %1684  ;;  %v392_v46 = vmul.f32 %v1683_v41, %v1681_v38 }
 0x329   :  { %v391_v47 = vmul.f32 %v1685_v42, %v2152_v60  ;;  %v1687_v50 = vpop.eup %1686 }
 0x32b   :  { %v393_v48 = vadd.f32 %v392_v46, %v391_v47 }
 0x32d   :  { %1688 = vtanh.f32 %v393_v48  ;;  %v2200_v49 = vsel %vm396_vm11, %v393_v48, %v2152_v60  ;;  %v404_v60 = vpop.permute.xlu1 %403 }
 0x32e   :  { %v406_v16 = vmul.f32 %v1980_v20, %v404_v60 }
 0x33a   :  { %v1689_v53 = vpop.eup %1688 }
 0x33b   :  { %v395_v55 = vmul.f32 %v1689_v53, %v1687_v50 }
 0x33d   :  { %v2203_v56 = vsel %vm396_vm11, %v395_v55, %v2155_v6  ;;  %vm2781_vm11 = vmand %vm1302_vm10, %vm857_vm0 }
 0x33e   :  { %414 = vperm.xlu1 %1547, %v2203_v56   ;;  %409 = vperm.xlu0 %1546, %v2203_v56   ;;  %v451_v42 = vmul.f32 %v2203_v56, %v1987_v29  ;;  %v455_v46 = vmul.f32 %v2203_v56, %v1992_v30 }
 0x342   :  { %1548 = vset.pattern.permute.xlu1 %v1918_v34  ;;  %1549 = vset.pattern.permute.xlu0 %v1915_v3 }
 0x343   :  { %419 = vperm.xlu1 %1548, %v2203_v56   ;;  %424 = vperm.xlu0 %1549, %v2203_v56  }
 0x347   :  { %1550 = vset.pattern.permute.xlu1 %v1919_v35  ;;  %1552 = vset.pattern.permute.xlu0 %v1917_v31 }
 0x348   :  { %429 = vperm.xlu1 %1550, %v2203_v56   ;;  %439 = vperm.xlu0 %1552, %v2203_v56  }
 0x34c   :  { %1551 = vset.pattern.permute.xlu1 %v1920_v36  ;;  %1554 = vset.pattern.permute.xlu0 %v1914_v2 }
 0x34d   :  { %434 = vperm.xlu1 %1551, %v2203_v56  }
 0x351   :  { %497 = vperm.xlu1 %1551, %v1941_v0  }
 0x355   :  { %1553 = vset.pattern.permute.xlu1 %v1913_v1 }
 0x3b9   :  { %v415_v6 = vpop.permute.xlu1 %414  ;;  %v410_v57 = vpop.permute.xlu0 %409 }
 0x3ba   :  { %v417_v21 = vmul.f32 %v1968_v11, %v415_v6  ;;  %v412_v13 = vmul.f32 %v1976_v17, %v410_v57  ;;  %v463_v57 = vmul.f32 %v2203_v56, %v2026_v44 }
 0x3bc   :  { %v443_v23 = vadd.f32 %v412_v13, %v406_v16 }
 0x3be   :  { %v420_v58 = vpop.permute.xlu1 %419  ;;  %v425_v61 = vpop.permute.xlu0 %424 }
 0x3bf   :  { %v422_v63 = vmul.f32 %v1970_v12, %v420_v58  ;;  %v427_v24 = vmul.f32 %v1958_v7, %v425_v61 }
 0x3c1   :  { %v444_v19 = vadd.f32 %v422_v63, %v417_v21 }
 0x3c3   :  { %v430_v62 = vpop.permute.xlu1 %429  ;;  %v440_v15 = vpop.permute.xlu0 %439  ;;  %v447_v27 = vadd.f32 %v444_v19, %v443_v23 }
 0x3c4   :  { %v432_v14 = vmul.f32 %v1960_v8, %v430_v62  ;;  %v442_v28 = vmul.f32 %v1964_v10, %v440_v15  ;;  %v459_v62 = vmul.f32 %v2203_v56, %v2040_v52 }
 0x3c6   :  { %v445_v25 = vadd.f32 %v432_v14, %v427_v24 }
 0x3c8   :  { %v435_v18 = vpop.permute.xlu1 %434 }
 0x3c9   :  { %v437_v22 = vmul.f32 %v1962_v9, %v435_v18 }
 0x3cb   :  { %v446_v26 = vadd.f32 %v442_v28, %v437_v22 }
 0x3cd   :  { %v448_v37 = vadd.f32 %v446_v26, %v445_v25 }
 0x3cf   :  { %v449_v38 = vadd.f32 %v448_v37, %v447_v27 }
 0x3d1   :  { %v450_v41 = vmul.f32 %v449_v38, %v1997_v32  ;;  %v454_v45 = vmul.f32 %v449_v38, %v2002_v33  ;;  %v462_v55 = vmul.f32 %v449_v38, %v2021_v43  ;;  %v458_v61 = vmul.f32 %v449_v38, %v2035_v51 }
 0x3d3   :  { %v452_v47 = vadd.f32 %v451_v42, %v450_v41  ;;  %v456_v48 = vadd.f32 %v455_v46, %v454_v45  ;;  %v464_v58 = vadd.f32 %v463_v57, %v462_v55  ;;  %v460_v15 = vadd.f32 %v459_v62, %v458_v61 }
 0x3d5   :  { %v453_v50 = vadd.f32 %v452_v47, %v2011_v39  ;;  %v457_v53 = vadd.f32 %v456_v48, %v2016_v40  ;;  %v465_v63 = vadd.f32 %v464_v58, %v2045_v54  ;;  %v461_v13 = vadd.f32 %v460_v15, %v2053_v59 }
 0x3d7   :  { %v1477_v60 = vmul.f32 -1.442695, %v453_v50  ;;  %v1478_v6 = vmul.f32 -1.442695, %v457_v53  ;;  %v1479_v21 = vmul.f32 -1.442695, %v465_v63 }
 0x3d9   :  { %1690 = vpow2.f32 %v1477_v60 }
 0x3da   :  { %1692 = vpow2.f32 %v1478_v6 }
 0x3db   :  { %1694 = vpow2.f32 %v1479_v21 }
 0x3dc   :  { %1696 = vtanh.f32 %v461_v13 }
 0x3e6   :  { %v1691_v14 = vpop.eup %1690 }
 0x3e7   :  { %v1693_v16 = vpop.eup %1692  ;;  %v469_v18 = vadd.f32 1.0, %v1691_v14 }
 0x3e8   :  { %v475_v19 = vadd.f32 1.0, %v1693_v16  ;;  %v1695_v24 = vpop.eup %1694 }
 0x3e9   :  { %1698 = vrcp.f32 %v469_v18  ;;  %v1697_v28 = vpop.eup %1696  ;;  %v482_v25 = vadd.f32 1.0, %v1695_v24 }
 0x3ea   :  { %1700 = vrcp.f32 %v475_v19 }
 0x3eb   :  { %1702 = vrcp.f32 %v482_v25 }
 0x3f6   :  { %v1699_v22 = vpop.eup %1698 }
 0x3f7   :  { %v1701_v23 = vpop.eup %1700  ;;  %v486_v26 = vmul.f32 %v1699_v22, %v1697_v28 }
 0x3f8   :  { %v485_v27 = vmul.f32 %v1701_v23, %v2200_v49  ;;  %v1703_v41 = vpop.eup %1702 }
 0x3fa   :  { %v487_v37 = vadd.f32 %v486_v26, %v485_v27 }
 0x3fc   :  { %1704 = vtanh.f32 %v487_v37  ;;  %v2247_v38 = vsel %vm490_vm12, %v487_v37, %v2200_v49  ;;  %v498_v49 = vpop.permute.xlu1 %497 }
 0x3fd   :  { %v500_v58 = vmul.f32 %v1980_v20, %v498_v49 }
 0x409   :  { %v1705_v42 = vpop.eup %1704 }
 0x40a   :  { %v489_v45 = vmul.f32 %v1705_v42, %v1703_v41 }
 0x40c   :  { %v2250_v46 = vsel %vm490_vm12, %v489_v45, %v2203_v56  ;;  %vm1391_vm12 = vcmp.ge.s32.totalorder %v1950_v5, 7 }
 0x40d   :  { %508 = vperm.xlu0 %1554, %v2250_v46   ;;  %503 = vperm.xlu1 %1553, %v2250_v46   ;;  %v545_v22 = vmul.f32 %v2250_v46, %v1987_v29  ;;  %v549_v25 = vmul.f32 %v2250_v46, %v1992_v30  ;;  %v553_v30 = vmul.f32 %v2250_v46, %v2040_v52  ;;  %vm1392_vm15 = vmand %vm1391_vm12, %vm857_vm0  ;;  %vm1413_vm0 = vcmask 64512  }
 0x411   :  { %1557 = vset.pattern.permute.xlu0 %v1919_v35  ;;  %1555 = vset.pattern.permute.xlu1 %v1918_v34 }
 0x412   :  { %523 = vperm.xlu0 %1557, %v2250_v46   ;;  %513 = vperm.xlu1 %1555, %v2250_v46  }
 0x416   :  { %1556 = vset.pattern.permute.xlu1 %v1915_v3  ;;  %1560 = vset.pattern.permute.xlu0 %v1917_v31 }
 0x417   :  { %518 = vperm.xlu1 %1556, %v2250_v46   ;;  %591 = vperm.xlu0 %1560, %v1941_v0  }
 0x41b   :  { %1558 = vset.pattern.permute.xlu1 %v1920_v36  ;;  %1563 = vset.pattern.permute.xlu0 %v1918_v34 }
 0x41c   :  { %528 = vperm.xlu1 %1558, %v2250_v46  }
 0x420   :  { %1559 = vset.pattern.permute.xlu1 %v1917_v31 }
 0x421   :  { %533 = vperm.xlu1 %1559, %v2250_v46  }
 0x425   :  { %1561 = vset.pattern.permute.xlu1 %v1913_v1 }
 0x488   :  { %v504_v56 = vpop.permute.xlu1 %503  ;;  %v509_v50 = vpop.permute.xlu0 %508 }
 0x489   :  { %v511_v60 = vmul.f32 %v1968_v11, %v509_v50  ;;  %v506_v6 = vmul.f32 %v1976_v17, %v504_v56 }
 0x48b   :  { %v537_v13 = vadd.f32 %v506_v6, %v500_v58 }
 0x48d   :  { %v514_v47 = vpop.permute.xlu1 %513  ;;  %v524_v55 = vpop.permute.xlu0 %523 }
 0x48e   :  { %v516_v0 = vmul.f32 %v1970_v12, %v514_v47  ;;  %v526_v62 = vmul.f32 %v1960_v8, %v524_v55 }
 0x490   :  { %v538_v63 = vadd.f32 %v516_v0, %v511_v60 }
 0x492   :  { %v519_v48 = vpop.permute.xlu1 %518  ;;  %v541_v18 = vadd.f32 %v538_v63, %v537_v13  ;;  %v592_v13 = vpop.permute.xlu0 %591 }
 0x493   :  { %v521_v57 = vmul.f32 %v1958_v7, %v519_v48 }
 0x495   :  { %v539_v14 = vadd.f32 %v526_v62, %v521_v57 }
 0x497   :  { %v529_v53 = vpop.permute.xlu1 %528 }
 0x498   :  { %v531_v15 = vmul.f32 %v1962_v9, %v529_v53 }
 0x49c   :  { %v534_v61 = vpop.permute.xlu1 %533 }
 0x49d   :  { %v536_v21 = vmul.f32 %v1964_v10, %v534_v61 }
 0x49f   :  { %v540_v16 = vadd.f32 %v536_v21, %v531_v15 }
 0x4a1   :  { %v542_v19 = vadd.f32 %v540_v16, %v539_v14 }
 0x4a3   :  { %v543_v24 = vadd.f32 %v542_v19, %v541_v18 }
 0x4a5   :  { %v544_v28 = vmul.f32 %v543_v24, %v1997_v32  ;;  %v548_v23 = vmul.f32 %v543_v24, %v2002_v33  ;;  %v556_v42 = vmul.f32 %v543_v24, %v2021_v43  ;;  %v557_v32 = vmul.f32 %v2250_v46, %v2026_v44 }
 0x4a6   :  { %v552_v33 = vmul.f32 %v543_v24, %v2035_v51 }
 0x4a7   :  { %v546_v26 = vadd.f32 %v545_v22, %v544_v28  ;;  %v550_v27 = vadd.f32 %v549_v25, %v548_v23  ;;  %v558_v29 = vadd.f32 %v557_v32, %v556_v42  ;;  %v594_v28 = vmul.f32 %v1980_v20, %v592_v13  ;;  %v2385_v13 = vld [vmem:[%s2859_s1 + $0xc] sm:$0x3] }
 0x4a9   :  { %v547_v37 = vadd.f32 %v546_v26, %v2011_v39  ;;  %v551_v41 = vadd.f32 %v550_v27, %v2016_v40  ;;  %v559_v56 = vadd.f32 %v558_v29, %v2045_v54  ;;  %v554_v39 = vadd.f32 %v553_v30, %v552_v33 }
 0x4ab   :  { %v1480_v45 = vmul.f32 -1.442695, %v547_v37  ;;  %v1481_v49 = vmul.f32 -1.442695, %v551_v41  ;;  %v1482_v47 = vmul.f32 -1.442695, %v559_v56  ;;  %v555_v40 = vadd.f32 %v554_v39, %v2053_v59 }
 0x4ac   :  { %v2328_v56 = vld [vmem:[%s2859_s1] sm:$0x3] }
 0x4ad   :  { %1706 = vpow2.f32 %v1480_v45 }
 0x4ae   :  { %1708 = vpow2.f32 %v1481_v49 }
 0x4af   :  { %1710 = vpow2.f32 %v1482_v47  ;;  %v2334_v47 = vld [vmem:[%s2859_s1 + $0x8] sm:$0x3] }
 0x4b0   :  { %1712 = vtanh.f32 %v555_v40 }
 0x4ba   :  { %v1707_v43 = vpop.eup %1706 }
 0x4bb   :  { %v1709_v48 = vpop.eup %1708  ;;  %v563_v50 = vadd.f32 1.0, %v1707_v43  ;;  %v2341_v43 = vld [vmem:[%s2859_s1 + $0x2] sm:$0x3] }
 0x4bc   :  { %v569_v53 = vadd.f32 1.0, %v1709_v48  ;;  %v1711_v44 = vpop.eup %1710 }
 0x4bd   :  { %1714 = vrcp.f32 %v563_v50  ;;  %v1713_v0 = vpop.eup %1712  ;;  %v576_v60 = vadd.f32 1.0, %v1711_v44  ;;  %v2347_v50 = vld [vmem:[%s2859_s1 + $0xa] sm:$0x3] }
 0x4be   :  { %1716 = vrcp.f32 %v569_v53 }
 0x4bf   :  { %1718 = vrcp.f32 %v576_v60  ;;  %v2360_v60 = vld [vmem:[%s2859_s1 + $0x12] sm:$0x3] }
 0x4ca   :  { %v1715_v51 = vpop.eup %1714 }
 0x4cb   :  { %v1717_v55 = vpop.eup %1716  ;;  %v580_v52 = vmul.f32 %v1715_v51, %v1713_v0  ;;  %v2354_v51 = vld [vmem:[%s2859_s1 + $0x10] sm:$0x3] }
 0x4cc   :  { %v579_v54 = vmul.f32 %v1717_v55, %v2247_v38  ;;  %v1719_v58 = vpop.eup %1718 }
 0x4ce   :  { %v581_v6 = vadd.f32 %v580_v52, %v579_v54  ;;  %v2366_v54 = vld [vmem:[%s2859_s1 + $0x6] sm:$0x3] }
 0x4d0   :  { %1720 = vtanh.f32 %v581_v6  ;;  %v2295_v57 = vsel %vm584_vm13, %v581_v6, %v2247_v38  ;;  %v1921_v38 = vmov 7  }
 0x4dd   :  { %v1721_v61 = vpop.eup %1720 }
 0x4de   :  { %v583_v62 = vmul.f32 %v1721_v61, %v1719_v58 }
 0x4e0   :  { %v2298_v63 = vsel %vm584_vm13, %v583_v62, %v2250_v46  ;;  %v1866_v46 = vld [vmem:[%s2858_s0] sm:$0x3]  ;;  %v2372_v62 = vld [vmem:[%s2859_s1 + $0xe] sm:$0x3] }
 0x4e1   :  { %607 = vperm.xlu0 %1563, %v2298_v63   ;;  %597 = vperm.xlu1 %1561, %v2298_v63   ;;  %v639_v40 = vmul.f32 %v2334_v47, %v2298_v63  ;;  %v643_v53 = vmul.f32 %v2347_v50, %v2298_v63 }
 0x4e5   :  { %1566 = vset.pattern.permute.xlu0 %v1920_v36  ;;  %1562 = vset.pattern.permute.xlu1 %v1914_v2 }
 0x4e6   :  { %622 = vperm.xlu0 %1566, %v2298_v63   ;;  %602 = vperm.xlu1 %1562, %v2298_v63  }
 0x4ea   :  { %1564 = vset.pattern.permute.xlu1 %v1915_v3  ;;  %1569 = vset.pattern.permute.xlu0 %v1913_v1 }
 0x4eb   :  { %612 = vperm.xlu1 %1564, %v2298_v63  }
 0x4ef   :  { %1565 = vset.pattern.permute.xlu1 %v1919_v35 }
 0x4f0   :  { %617 = vperm.xlu1 %1565, %v2298_v63  }
 0x4f4   :  { %1567 = vset.pattern.permute.xlu1 %v1917_v31 }
 0x4f5   :  { %627 = vperm.xlu1 %1567, %v2298_v63  }
 0x4f9   :  { %1568 = vset.pattern.permute.xlu1 %v1921_v38  ;;  %v651_v38 = vmul.f32 %v2372_v62, %v2298_v63 }
 0x4fa   :  { %685 = vperm.xlu1 %1568, %v1866_v46  }
 0x4fe   :  { %1570 = vset.pattern.permute.xlu1 %v1914_v2 }
 0x55c   :  { %v598_v15 = vpop.permute.xlu1 %597  ;;  %v608_v16 = vpop.permute.xlu0 %607 }
 0x55d   :  { %v610_v22 = vmul.f32 %v1970_v12, %v608_v16  ;;  %v600_v23 = vmul.f32 %v1976_v17, %v598_v15  ;;  %v2379_v15 = vld [vmem:[%s2859_s1 + $0x4] sm:$0x3]  ;;  %v2392_v16 = vld [vmem:[%s2859_s1 + $0x16] sm:$0x3] }
 0x55f   :  { %v631_v45 = vadd.f32 %v600_v23, %v594_v28 }
 0x561   :  { %v603_v21 = vpop.permute.xlu1 %602  ;;  %v623_v24 = vpop.permute.xlu0 %622 }
 0x562   :  { %v605_v19 = vmul.f32 %v1968_v11, %v603_v21  ;;  %v625_v27 = vmul.f32 %v1962_v9, %v623_v24 }
 0x564   :  { %v632_v37 = vadd.f32 %v610_v22, %v605_v19 }
 0x566   :  { %v613_v14 = vpop.permute.xlu1 %612  ;;  %v635_v29 = vadd.f32 %v632_v37, %v631_v45 }
 0x567   :  { %v615_v41 = vmul.f32 %v1958_v7, %v613_v14  ;;  %v647_v14 = vmul.f32 %v2385_v13, %v2298_v63 }
 0x56b   :  { %v618_v18 = vpop.permute.xlu1 %617 }
 0x56c   :  { %v620_v25 = vmul.f32 %v1960_v8, %v618_v18 }
 0x56e   :  { %v633_v49 = vadd.f32 %v620_v25, %v615_v41 }
 0x570   :  { %v628_v26 = vpop.permute.xlu1 %627 }
 0x571   :  { %v630_v42 = vmul.f32 %v1964_v10, %v628_v26 }
 0x573   :  { %v634_v32 = vadd.f32 %v630_v42, %v625_v27 }
 0x575   :  { %v636_v33 = vadd.f32 %v634_v32, %v633_v49 }
 0x577   :  { %v637_v30 = vadd.f32 %v636_v33, %v635_v29 }
 0x579   :  { %v638_v39 = vmul.f32 %v2328_v56, %v637_v30  ;;  %v642_v48 = vmul.f32 %v2341_v43, %v637_v30  ;;  %v650_v6 = vmul.f32 %v2366_v54, %v637_v30  ;;  %v646_v21 = vmul.f32 %v2379_v15, %v637_v30 }
 0x57b   :  { %v640_v44 = vadd.f32 %v639_v40, %v638_v39  ;;  %v644_v0 = vadd.f32 %v643_v53, %v642_v48  ;;  %v652_v46 = vadd.f32 %v651_v38, %v650_v6  ;;  %v648_v19 = vadd.f32 %v647_v14, %v646_v21 }
 0x57d   :  { %v641_v55 = vadd.f32 %v2354_v51, %v640_v44  ;;  %v645_v52 = vadd.f32 %v2360_v60, %v644_v0  ;;  %v653_v18 = vadd.f32 %v2392_v16, %v652_v46  ;;  %v649_v28 = vadd.f32 %v648_v19, %v2053_v59 }
 0x57f   :  { %v1483_v58 = vmul.f32 -1.442695, %v641_v55  ;;  %v1484_v61 = vmul.f32 -1.442695, %v645_v52  ;;  %v1485_v24 = vmul.f32 -1.442695, %v653_v18 }
 0x581   :  { %1722 = vpow2.f32 %v1483_v58 }
 0x582   :  { %1724 = vpow2.f32 %v1484_v61 }
 0x583   :  { %1726 = vpow2.f32 %v1485_v24 }
 0x584   :  { %1728 = vtanh.f32 %v649_v28 }
 0x58e   :  { %v1723_v22 = vpop.eup %1722 }
 0x58f   :  { %v1725_v23 = vpop.eup %1724  ;;  %v657_v25 = vadd.f32 1.0, %v1723_v22 }
 0x590   :  { %v663_v26 = vadd.f32 1.0, %v1725_v23  ;;  %v1727_v27 = vpop.eup %1726 }
 0x591   :  { %1730 = vrcp.f32 %v657_v25  ;;  %v1729_v37 = vpop.eup %1728  ;;  %v670_v45 = vadd.f32 1.0, %v1727_v27 }
 0x592   :  { %1732 = vrcp.f32 %v663_v26 }
 0x593   :  { %1734 = vrcp.f32 %v670_v45 }
 0x59e   :  { %v1731_v41 = vpop.eup %1730 }
 0x59f   :  { %v1733_v42 = vpop.eup %1732  ;;  %v674_v49 = vmul.f32 %v1731_v41, %v1729_v37 }
 0x5a0   :  { %v673_v32 = vmul.f32 %v1733_v42, %v2295_v57  ;;  %v1735_v33 = vpop.eup %1734 }
 0x5a2   :  { %v675_v29 = vadd.f32 %v674_v49, %v673_v32 }
 0x5a4   :  { %1736 = vtanh.f32 %v675_v29  ;;  %v2399_v59 = vsel %vm678_vm14, %v675_v29, %v2295_v57  ;;  %v686_v57 = vpop.permute.xlu1 %685 }
 0x5a5   :  { %v688_v38 = vmul.f32 %v1980_v20, %v686_v57 }
 0x5b1   :  { %v1737_v30 = vpop.eup %1736 }
 0x5b2   :  { %v677_v39 = vmul.f32 %v1737_v30, %v1735_v33 }
 0x5b4   :  { %v683_v40 = vsel %vm678_vm14, %v677_v39, %v2298_v63 }
 0x5b5   :  { %696 = vperm.xlu1 %1570, %v683_v40   ;;  %691 = vperm.xlu0 %1569, %v683_v40   ;;  %v733_v37 = vmul.f32 %v2334_v47, %v683_v40  ;;  %v737_v42 = vmul.f32 %v2347_v50, %v683_v40  ;;  %v745_v57 = vmul.f32 %v2372_v62, %v683_v40 }
 0x5b9   :  { %1571 = vset.pattern.permute.xlu1 %v1918_v34  ;;  %1572 = vset.pattern.permute.xlu0 %v1915_v3 }
 0x5ba   :  { %701 = vperm.xlu1 %1571, %v683_v40   ;;  %706 = vperm.xlu0 %1572, %v683_v40  }
 0x5be   :  { %1573 = vset.pattern.permute.xlu1 %v1919_v35  ;;  %1575 = vset.pattern.permute.xlu0 %v1917_v31 }
 0x5bf   :  { %711 = vperm.xlu1 %1573, %v683_v40   ;;  %721 = vperm.xlu0 %1575, %v683_v40  }
 0x5c3   :  { %1574 = vset.pattern.permute.xlu1 %v1920_v36  ;;  %1578 = vset.pattern.permute.xlu0 %v1918_v34 }
 0x5c4   :  { %716 = vperm.xlu1 %1574, %v683_v40  }
 0x5c8   :  { %1576 = vset.pattern.permute.xlu1 %v1913_v1 }
 0x630   :  { %v697_v63 = vpop.permute.xlu1 %696  ;;  %v692_v48 = vpop.permute.xlu0 %691 }
 0x631   :  { %v699_v6 = vmul.f32 %v1968_v11, %v697_v63  ;;  %v694_v58 = vmul.f32 %v1976_v17, %v692_v48 }
 0x633   :  { %v725_v24 = vadd.f32 %v694_v58, %v688_v38 }
 0x635   :  { %v702_v53 = vpop.permute.xlu1 %701  ;;  %v707_v44 = vpop.permute.xlu0 %706 }
 0x636   :  { %v704_v55 = vmul.f32 %v1970_v12, %v702_v53  ;;  %v709_v14 = vmul.f32 %v1958_v7, %v707_v44  ;;  %v741_v53 = vmul.f32 %v2385_v13, %v683_v40 }
 0x638   :  { %v726_v21 = vadd.f32 %v704_v55, %v699_v6 }
 0x63a   :  { %v712_v0 = vpop.permute.xlu1 %711  ;;  %v722_v52 = vpop.permute.xlu0 %721  ;;  %v729_v23 = vadd.f32 %v726_v21, %v725_v24 }
 0x63b   :  { %v714_v61 = vmul.f32 %v1960_v8, %v712_v0  ;;  %v724_v18 = vmul.f32 %v1964_v10, %v722_v52  ;;  %v2431_v52 = vld [vmem:[%s2859_s1 + $0x14] sm:$0x3] }
 0x63d   :  { %v727_v28 = vadd.f32 %v714_v61, %v709_v14 }
 0x63f   :  { %v717_v46 = vpop.permute.xlu1 %716 }
 0x640   :  { %v719_v19 = vmul.f32 %v1962_v9, %v717_v46 }
 0x642   :  { %v728_v22 = vadd.f32 %v724_v18, %v719_v19 }
 0x644   :  { %v730_v25 = vadd.f32 %v728_v22, %v727_v28 }
 0x646   :  { %v731_v26 = vadd.f32 %v730_v25, %v729_v23 }
 0x648   :  { %v732_v27 = vmul.f32 %v2328_v56, %v731_v26  ;;  %v736_v41 = vmul.f32 %v2341_v43, %v731_v26  ;;  %v744_v33 = vmul.f32 %v2366_v54, %v731_v26  ;;  %v740_v48 = vmul.f32 %v2379_v15, %v731_v26 }
 0x64a   :  { %v734_v45 = vadd.f32 %v733_v37, %v732_v27  ;;  %v738_v49 = vadd.f32 %v737_v42, %v736_v41  ;;  %v746_v63 = vadd.f32 %v745_v57, %v744_v33  ;;  %v742_v0 = vadd.f32 %v741_v53, %v740_v48 }
 0x64c   :  { %v735_v32 = vadd.f32 %v2354_v51, %v734_v45  ;;  %v739_v29 = vadd.f32 %v2360_v60, %v738_v49  ;;  %v747_v44 = vadd.f32 %v2392_v16, %v746_v63  ;;  %v743_v6 = vadd.f32 %v2431_v52, %v742_v0 }
 0x64e   :  { %v1486_v30 = vmul.f32 -1.442695, %v735_v32  ;;  %v1487_v39 = vmul.f32 -1.442695, %v739_v29  ;;  %v1488_v55 = vmul.f32 -1.442695, %v747_v44 }
 0x64f   :  { %v2457_v29 = vmul.f32 0.0, %v1980_v20 }
 0x650   :  { %1738 = vpow2.f32 %v1486_v30 }
 0x651   :  { %1740 = vpow2.f32 %v1487_v39 }
 0x652   :  { %1742 = vpow2.f32 %v1488_v55 }
 0x653   :  { %1744 = vtanh.f32 %v743_v6 }
 0x65d   :  { %v1739_v58 = vpop.eup %1738 }
 0x65e   :  { %v1741_v61 = vpop.eup %1740  ;;  %v751_v38 = vadd.f32 1.0, %v1739_v58 }
 0x65f   :  { %v757_v46 = vadd.f32 1.0, %v1741_v61  ;;  %v1743_v40 = vpop.eup %1742 }
 0x660   :  { %1746 = vrcp.f32 %v751_v38  ;;  %v1745_v21 = vpop.eup %1744  ;;  %v764_v19 = vadd.f32 1.0, %v1743_v40 }
 0x661   :  { %1748 = vrcp.f32 %v757_v46 }
 0x662   :  { %1750 = vrcp.f32 %v764_v19 }
 0x66d   :  { %v1747_v14 = vpop.eup %1746 }
 0x66e   :  { %v1749_v18 = vpop.eup %1748  ;;  %v768_v24 = vmul.f32 %v1747_v14, %v1745_v21 }
 0x66f   :  { %v767_v28 = vmul.f32 %v1749_v18, %v2399_v59  ;;  %v1751_v23 = vpop.eup %1750 }
 0x671   :  { %v2435_v22 = vadd.f32 %v768_v24, %v767_v28 }
 0x673   :  { %1752 = vtanh.f32 %v2435_v22 }
 0x680   :  { %v1753_v25 = vpop.eup %1752 }
 0x681   :  { %v2438_v26 = vmul.f32 %v1753_v25, %v1751_v23 }
 0x683   :  { %785 = vperm.xlu0 %1578, %v2438_v26   ;;  %775 = vperm.xlu1 %1576, %v2438_v26   ;;  %v817_v46 = vmul.f32 %v2334_v47, %v2438_v26  ;;  %v821_v21 = vmul.f32 %v2347_v50, %v2438_v26 }
 0x687   :  { %1581 = vset.pattern.permute.xlu0 %v1920_v36  ;;  %1577 = vset.pattern.permute.xlu1 %v1914_v2 }
 0x688   :  { %800 = vperm.xlu0 %1581, %v2438_v26   ;;  %780 = vperm.xlu1 %1577, %v2438_v26  }
 0x68c   :  { %1579 = vset.pattern.permute.xlu1 %v1915_v3  ;;  %1584 = vset.pattern.permute.xlu0 %v1914_v2 }
 0x68d   :  { %790 = vperm.xlu1 %1579, %v2438_v26  }
 0x691   :  { %1580 = vset.pattern.permute.xlu1 %v1919_v35 }
 0x692   :  { %795 = vperm.xlu1 %1580, %v2438_v26  }
 0x696   :  { %1582 = vset.pattern.permute.xlu1 %v1917_v31 }
 0x697   :  { %805 = vperm.xlu1 %1582, %v2438_v26  }
 0x69b   :  { %1583 = vset.pattern.permute.xlu1 %v1913_v1 }
 0x6fe   :  { %v776_v59 = vpop.permute.xlu1 %775  ;;  %v786_v41 = vpop.permute.xlu0 %785 }
 0x6ff   :  { %v788_v32 = vmul.f32 %v1970_v12, %v786_v41  ;;  %v778_v33 = vmul.f32 %v1976_v17, %v776_v59  ;;  %v829_v59 = vmul.f32 %v2372_v62, %v2438_v26  ;;  %v825_v41 = vmul.f32 %v2385_v13, %v2438_v26 }
 0x701   :  { %v809_v44 = vadd.f32 %v778_v33, %v2457_v29 }
 0x703   :  { %v781_v27 = vpop.permute.xlu1 %780  ;;  %v801_v49 = vpop.permute.xlu0 %800 }
 0x704   :  { %v783_v45 = vmul.f32 %v1968_v11, %v781_v27  ;;  %v803_v57 = vmul.f32 %v1962_v9, %v801_v49 }
 0x706   :  { %v810_v63 = vadd.f32 %v788_v32, %v783_v45 }
 0x708   :  { %v791_v37 = vpop.permute.xlu1 %790  ;;  %v813_v6 = vadd.f32 %v810_v63, %v809_v44 }
 0x709   :  { %v793_v48 = vmul.f32 %v1958_v7, %v791_v37 }
 0x70d   :  { %v796_v42 = vpop.permute.xlu1 %795 }
 0x70e   :  { %v798_v30 = vmul.f32 %v1960_v8, %v796_v42 }
 0x710   :  { %v811_v0 = vadd.f32 %v798_v30, %v793_v48 }
 0x712   :  { %v806_v39 = vpop.permute.xlu1 %805 }
 0x713   :  { %v808_v53 = vmul.f32 %v1964_v10, %v806_v39 }
 0x715   :  { %v812_v55 = vadd.f32 %v808_v53, %v803_v57 }
 0x717   :  { %v814_v58 = vadd.f32 %v812_v55, %v811_v0 }
 0x719   :  { %v815_v61 = vadd.f32 %v814_v58, %v813_v6 }
 0x71b   :  { %v816_v38 = vmul.f32 %v2328_v56, %v815_v61  ;;  %v820_v40 = vmul.f32 %v2341_v43, %v815_v61  ;;  %v828_v28 = vmul.f32 %v2366_v54, %v815_v61  ;;  %v824_v37 = vmul.f32 %v2379_v15, %v815_v61 }
 0x71d   :  { %v818_v14 = vadd.f32 %v817_v46, %v816_v38  ;;  %v822_v18 = vadd.f32 %v821_v21, %v820_v40  ;;  %v830_v27 = vadd.f32 %v829_v59, %v828_v28  ;;  %v826_v45 = vadd.f32 %v825_v41, %v824_v37 }
 0x71f   :  { %v819_v19 = vadd.f32 %v2354_v51, %v818_v14  ;;  %v823_v24 = vadd.f32 %v2360_v60, %v822_v18  ;;  %v831_v42 = vadd.f32 %v2392_v16, %v830_v27  ;;  %v827_v32 = vadd.f32 %v2431_v52, %v826_v45 }
 0x721   :  { %v1489_v23 = vmul.f32 -1.442695, %v819_v19  ;;  %v1490_v25 = vmul.f32 -1.442695, %v823_v24  ;;  %v1491_v49 = vmul.f32 -1.442695, %v831_v42 }
 0x723   :  { %1754 = vpow2.f32 %v1489_v23 }
 0x724   :  { %1756 = vpow2.f32 %v1490_v25 }
 0x725   :  { %1758 = vpow2.f32 %v1491_v49 }
 0x726   :  { %1760 = vtanh.f32 %v827_v32 }
 0x730   :  { %v1755_v33 = vpop.eup %1754 }
 0x731   :  { %v1757_v30 = vpop.eup %1756  ;;  %v835_v39 = vadd.f32 1.0, %v1755_v33 }
 0x732   :  { %v841_v57 = vadd.f32 1.0, %v1757_v30  ;;  %v1759_v63 = vpop.eup %1758 }
 0x733   :  { %1762 = vrcp.f32 %v835_v39  ;;  %v1761_v48 = vpop.eup %1760  ;;  %v848_v0 = vadd.f32 1.0, %v1759_v63 }
 0x734   :  { %1764 = vrcp.f32 %v841_v57 }
 0x735   :  { %1766 = vrcp.f32 %v848_v0 }
 0x740   :  { %v1763_v53 = vpop.eup %1762 }
 0x741   :  { %v1765_v44 = vpop.eup %1764  ;;  %v852_v55 = vmul.f32 %v1763_v53, %v1761_v48 }
 0x742   :  { %v851_v6 = vmul.f32 %v1765_v44, %v2435_v22  ;;  %v1767_v38 = vpop.eup %1766 }
 0x744   :  { %v853_v58 = vadd.f32 %v852_v55, %v851_v6 }
 0x746   :  { %1768 = vtanh.f32 %v853_v58  ;;  %v2487_v61 = vsel %vm858_vm1, %v853_v58, %v2435_v22 }
 0x753   :  { %v1769_v46 = vpop.eup %1768 }
 0x754   :  { %v855_v40 = vmul.f32 %v1769_v46, %v1767_v38 }
 0x756   :  { %v2490_v21 = vsel %vm858_vm1, %v855_v40, %v2438_v26 }
 0x757   :  { %870 = vperm.xlu0 %1584, %v2490_v21   ;;  %865 = vperm.xlu1 %1583, %v2490_v21   ;;  %v907_v48 = vmul.f32 %v2334_v47, %v2490_v21  ;;  %v911_v44 = vmul.f32 %v2347_v50, %v2490_v21 }
 0x75b   :  { %1587 = vset.pattern.permute.xlu0 %v1919_v35  ;;  %1585 = vset.pattern.permute.xlu1 %v1918_v34 }
 0x75c   :  { %885 = vperm.xlu0 %1587, %v2490_v21   ;;  %875 = vperm.xlu1 %1585, %v2490_v21  }
 0x760   :  { %1586 = vset.pattern.permute.xlu1 %v1915_v3  ;;  %1590 = vset.pattern.permute.xlu0 %v1913_v1 }
 0x761   :  { %880 = vperm.xlu1 %1586, %v2490_v21  }
 0x765   :  { %1588 = vset.pattern.permute.xlu1 %v1920_v36 }
 0x766   :  { %890 = vperm.xlu1 %1588, %v2490_v21  }
 0x76a   :  { %1589 = vset.pattern.permute.xlu1 %v1917_v31 }
 0x76b   :  { %895 = vperm.xlu1 %1589, %v2490_v21  }
 0x76f   :  { %1591 = vset.pattern.permute.xlu1 %v1914_v2 }
 0x7d2   :  { %v866_v22 = vpop.permute.xlu1 %865  ;;  %v871_v18 = vpop.permute.xlu0 %870 }
 0x7d3   :  { %v873_v23 = vmul.f32 %v1968_v11, %v871_v18  ;;  %v868_v25 = vmul.f32 %v1976_v17, %v866_v22  ;;  %v919_v22 = vmul.f32 %v2372_v62, %v2490_v21  ;;  %v915_v18 = vmul.f32 %v2385_v13, %v2490_v21 }
 0x7d5   :  { %v899_v49 = vadd.f32 %v868_v25, %v2457_v29 }
 0x7d7   :  { %v876_v26 = vpop.permute.xlu1 %875  ;;  %v886_v28 = vpop.permute.xlu0 %885 }
 0x7d8   :  { %v878_v24 = vmul.f32 %v1970_v12, %v876_v26  ;;  %v888_v37 = vmul.f32 %v1960_v8, %v886_v28 }
 0x7da   :  { %v900_v41 = vadd.f32 %v878_v24, %v873_v23 }
 0x7dc   :  { %v881_v14 = vpop.permute.xlu1 %880  ;;  %v903_v30 = vadd.f32 %v900_v41, %v899_v49 }
 0x7dd   :  { %v883_v59 = vmul.f32 %v1958_v7, %v881_v14 }
 0x7df   :  { %v901_v32 = vadd.f32 %v888_v37, %v883_v59 }
 0x7e1   :  { %v891_v19 = vpop.permute.xlu1 %890 }
 0x7e2   :  { %v893_v42 = vmul.f32 %v1962_v9, %v891_v19 }
 0x7e6   :  { %v896_v27 = vpop.permute.xlu1 %895 }
 0x7e7   :  { %v898_v45 = vmul.f32 %v1964_v10, %v896_v27 }
 0x7e9   :  { %v902_v33 = vadd.f32 %v898_v45, %v893_v42 }
 0x7eb   :  { %v904_v39 = vadd.f32 %v902_v33, %v901_v32 }
 0x7ed   :  { %v905_v57 = vadd.f32 %v904_v39, %v903_v30 }
 0x7ef   :  { %v906_v63 = vmul.f32 %v2328_v56, %v905_v57  ;;  %v910_v53 = vmul.f32 %v2341_v43, %v905_v57  ;;  %v918_v38 = vmul.f32 %v2366_v54, %v905_v57  ;;  %v914_v14 = vmul.f32 %v2379_v15, %v905_v57 }
 0x7f1   :  { %v908_v0 = vadd.f32 %v907_v48, %v906_v63  ;;  %v912_v55 = vadd.f32 %v911_v44, %v910_v53  ;;  %v920_v26 = vadd.f32 %v919_v22, %v918_v38  ;;  %v916_v24 = vadd.f32 %v915_v18, %v914_v14 }
 0x7f3   :  { %v909_v6 = vadd.f32 %v2354_v51, %v908_v0  ;;  %v913_v58 = vadd.f32 %v2360_v60, %v912_v55  ;;  %v921_v19 = vadd.f32 %v2392_v16, %v920_v26  ;;  %v917_v23 = vadd.f32 %v2431_v52, %v916_v24 }
 0x7f5   :  { %v1492_v46 = vmul.f32 -1.442695, %v909_v6  ;;  %v1493_v40 = vmul.f32 -1.442695, %v913_v58  ;;  %v1494_v28 = vmul.f32 -1.442695, %v921_v19 }
 0x7f7   :  { %1770 = vpow2.f32 %v1492_v46 }
 0x7f8   :  { %1772 = vpow2.f32 %v1493_v40 }
 0x7f9   :  { %1774 = vpow2.f32 %v1494_v28 }
 0x7fa   :  { %1776 = vtanh.f32 %v917_v23 }
 0x804   :  { %v1771_v25 = vpop.eup %1770 }
 0x805   :  { %v1773_v59 = vpop.eup %1772  ;;  %v925_v27 = vadd.f32 1.0, %v1771_v25 }
 0x806   :  { %v931_v37 = vadd.f32 1.0, %v1773_v59  ;;  %v1775_v41 = vpop.eup %1774 }
 0x807   :  { %1778 = vrcp.f32 %v925_v27  ;;  %v1777_v42 = vpop.eup %1776  ;;  %v938_v32 = vadd.f32 1.0, %v1775_v41 }
 0x808   :  { %1780 = vrcp.f32 %v931_v37 }
 0x809   :  { %1782 = vrcp.f32 %v938_v32 }
 0x814   :  { %v1779_v45 = vpop.eup %1778 }
 0x815   :  { %v1781_v49 = vpop.eup %1780  ;;  %v942_v33 = vmul.f32 %v1779_v45, %v1777_v42 }
 0x816   :  { %v941_v30 = vmul.f32 %v1781_v49, %v2487_v61  ;;  %v1783_v63 = vpop.eup %1782 }
 0x818   :  { %v943_v39 = vadd.f32 %v942_v33, %v941_v30 }
 0x81a   :  { %1784 = vtanh.f32 %v943_v39  ;;  %v2535_v57 = vsel %vm947_vm3, %v943_v39, %v2487_v61 }
 0x827   :  { %v1785_v48 = vpop.eup %1784 }
 0x828   :  { %v945_v53 = vmul.f32 %v1785_v48, %v1783_v63 }
 0x82a   :  { %v2538_v44 = vsel %vm947_vm3, %v945_v53, %v2490_v21 }
 0x82b   :  { %959 = vperm.xlu1 %1591, %v2538_v44   ;;  %954 = vperm.xlu0 %1590, %v2538_v44   ;;  %v996_v42 = vmul.f32 %v2334_v47, %v2538_v44  ;;  %v1000_v49 = vmul.f32 %v2347_v50, %v2538_v44 }
 0x82f   :  { %1592 = vset.pattern.permute.xlu1 %v1918_v34  ;;  %1593 = vset.pattern.permute.xlu0 %v1915_v3 }
 0x830   :  { %964 = vperm.xlu1 %1592, %v2538_v44   ;;  %969 = vperm.xlu0 %1593, %v2538_v44  }
 0x834   :  { %1594 = vset.pattern.permute.xlu1 %v1919_v35  ;;  %1596 = vset.pattern.permute.xlu0 %v1917_v31 }
 0x835   :  { %974 = vperm.xlu1 %1594, %v2538_v44   ;;  %984 = vperm.xlu0 %1596, %v2538_v44  }
 0x839   :  { %1595 = vset.pattern.permute.xlu1 %v1920_v36  ;;  %1599 = vset.pattern.permute.xlu0 %v1918_v34 }
 0x83a   :  { %979 = vperm.xlu1 %1595, %v2538_v44  }
 0x83e   :  { %1597 = vset.pattern.permute.xlu1 %v1913_v1 }
 0x8a6   :  { %v960_v61 = vpop.permute.xlu1 %959  ;;  %v955_v21 = vpop.permute.xlu0 %954 }
 0x8a7   :  { %v962_v46 = vmul.f32 %v1968_v11, %v960_v61  ;;  %v957_v40 = vmul.f32 %v1976_v17, %v955_v21  ;;  %v1008_v61 = vmul.f32 %v2372_v62, %v2538_v44 }
 0x8a9   :  { %v988_v28 = vadd.f32 %v957_v40, %v2457_v29 }
 0x8ab   :  { %v965_v0 = vpop.permute.xlu1 %964  ;;  %v970_v55 = vpop.permute.xlu0 %969 }
 0x8ac   :  { %v967_v58 = vmul.f32 %v1970_v12, %v965_v0  ;;  %v972_v18 = vmul.f32 %v1958_v7, %v970_v55  ;;  %v1004_v55 = vmul.f32 %v2385_v13, %v2538_v44 }
 0x8ae   :  { %v989_v14 = vadd.f32 %v967_v58, %v962_v46 }
 0x8b0   :  { %v975_v6 = vpop.permute.xlu1 %974  ;;  %v985_v38 = vpop.permute.xlu0 %984  ;;  %v992_v59 = vadd.f32 %v989_v14, %v988_v28 }
 0x8b1   :  { %v977_v22 = vmul.f32 %v1960_v8, %v975_v6  ;;  %v987_v19 = vmul.f32 %v1964_v10, %v985_v38 }
 0x8b3   :  { %v990_v23 = vadd.f32 %v977_v22, %v972_v18 }
 0x8b5   :  { %v980_v26 = vpop.permute.xlu1 %979 }
 0x8b6   :  { %v982_v24 = vmul.f32 %v1962_v9, %v980_v26 }
 0x8b8   :  { %v991_v25 = vadd.f32 %v987_v19, %v982_v24 }
 0x8ba   :  { %v993_v27 = vadd.f32 %v991_v25, %v990_v23 }
 0x8bc   :  { %v994_v37 = vadd.f32 %v993_v27, %v992_v59 }
 0x8be   :  { %v995_v41 = vmul.f32 %v2328_v56, %v994_v37  ;;  %v999_v45 = vmul.f32 %v2341_v43, %v994_v37  ;;  %v1007_v63 = vmul.f32 %v2366_v54, %v994_v37  ;;  %v1003_v0 = vmul.f32 %v2379_v15, %v994_v37 }
 0x8c0   :  { %v997_v32 = vadd.f32 %v996_v42, %v995_v41  ;;  %v1001_v33 = vadd.f32 %v1000_v49, %v999_v45  ;;  %v1009_v21 = vadd.f32 %v1008_v61, %v1007_v63  ;;  %v1005_v58 = vadd.f32 %v1004_v55, %v1003_v0 }
 0x8c2   :  { %v998_v30 = vadd.f32 %v2354_v51, %v997_v32  ;;  %v1002_v39 = vadd.f32 %v2360_v60, %v1001_v33  ;;  %v1010_v6 = vadd.f32 %v2392_v16, %v1009_v21  ;;  %v1006_v46 = vadd.f32 %v2431_v52, %v1005_v58 }
 0x8c4   :  { %v1495_v48 = vmul.f32 -1.442695, %v998_v30  ;;  %v1496_v53 = vmul.f32 -1.442695, %v1002_v39  ;;  %v1497_v38 = vmul.f32 -1.442695, %v1010_v6 }
 0x8c6   :  { %1786 = vpow2.f32 %v1495_v48 }
 0x8c7   :  { %1788 = vpow2.f32 %v1496_v53 }
 0x8c8   :  { %1790 = vpow2.f32 %v1497_v38 }
 0x8c9   :  { %1792 = vtanh.f32 %v1006_v46 }
 0x8d3   :  { %v1787_v40 = vpop.eup %1786 }
 0x8d4   :  { %v1789_v22 = vpop.eup %1788  ;;  %v1014_v26 = vadd.f32 1.0, %v1787_v40 }
 0x8d5   :  { %v1020_v14 = vadd.f32 1.0, %v1789_v22  ;;  %v1791_v18 = vpop.eup %1790 }
 0x8d6   :  { %1794 = vrcp.f32 %v1014_v26  ;;  %v1793_v19 = vpop.eup %1792  ;;  %v1027_v23 = vadd.f32 1.0, %v1791_v18 }
 0x8d7   :  { %1796 = vrcp.f32 %v1020_v14 }
 0x8d8   :  { %1798 = vrcp.f32 %v1027_v23 }
 0x8e3   :  { %v1795_v24 = vpop.eup %1794 }
 0x8e4   :  { %v1797_v28 = vpop.eup %1796  ;;  %v1031_v25 = vmul.f32 %v1795_v24, %v1793_v19 }
 0x8e5   :  { %v1030_v59 = vmul.f32 %v1797_v28, %v2535_v57  ;;  %v1799_v41 = vpop.eup %1798 }
 0x8e7   :  { %v1032_v27 = vadd.f32 %v1031_v25, %v1030_v59 }
 0x8e9   :  { %1800 = vtanh.f32 %v1032_v27  ;;  %v2583_v37 = vsel %vm1036_vm5, %v1032_v27, %v2535_v57 }
 0x8f6   :  { %v1801_v42 = vpop.eup %1800 }
 0x8f7   :  { %v1034_v45 = vmul.f32 %v1801_v42, %v1799_v41 }
 0x8f9   :  { %v2586_v49 = vsel %vm1036_vm5, %v1034_v45, %v2538_v44  ;;  %vm1405_vm5 = vcmask 58368  }
 0x8fa   :  { %1053 = vperm.xlu0 %1599, %v2586_v49   ;;  %1043 = vperm.xlu1 %1597, %v2586_v49   ;;  %v1085_v19 = vmul.f32 %v2334_v47, %v2586_v49  ;;  %v1089_v28 = vmul.f32 %v2347_v50, %v2586_v49 }
 0x8fe   :  { %1602 = vset.pattern.permute.xlu0 %v1920_v36  ;;  %1598 = vset.pattern.permute.xlu1 %v1914_v2 }
 0x8ff   :  { %1068 = vperm.xlu0 %1602, %v2586_v49   ;;  %1048 = vperm.xlu1 %1598, %v2586_v49  }
 0x903   :  { %1600 = vset.pattern.permute.xlu1 %v1915_v3  ;;  %1605 = vset.pattern.permute.xlu0 %v1914_v2 }
 0x904   :  { %1058 = vperm.xlu1 %1600, %v2586_v49  }
 0x908   :  { %1601 = vset.pattern.permute.xlu1 %v1919_v35 }
 0x909   :  { %1063 = vperm.xlu1 %1601, %v2586_v49  }
 0x90d   :  { %1603 = vset.pattern.permute.xlu1 %v1917_v31 }
 0x90e   :  { %1073 = vperm.xlu1 %1603, %v2586_v49  }
 0x912   :  { %1604 = vset.pattern.permute.xlu1 %v1913_v1 }
 0x975   :  { %v1044_v57 = vpop.permute.xlu1 %1043  ;;  %v1054_v33 = vpop.permute.xlu0 %1053 }
 0x976   :  { %v1056_v48 = vmul.f32 %v1970_v12, %v1054_v33  ;;  %v1046_v53 = vmul.f32 %v1976_v17, %v1044_v57  ;;  %v1097_v57 = vmul.f32 %v2372_v62, %v2586_v49  ;;  %v1093_v33 = vmul.f32 %v2385_v13, %v2586_v49 }
 0x978   :  { %v1077_v38 = vadd.f32 %v1046_v53, %v2457_v29 }
 0x97a   :  { %v1049_v44 = vpop.permute.xlu1 %1048  ;;  %v1069_v63 = vpop.permute.xlu0 %1068 }
 0x97b   :  { %v1051_v39 = vmul.f32 %v1968_v11, %v1049_v44  ;;  %v1071_v0 = vmul.f32 %v1962_v9, %v1069_v63 }
 0x97d   :  { %v1078_v55 = vadd.f32 %v1056_v48, %v1051_v39 }
 0x97f   :  { %v1059_v32 = vpop.permute.xlu1 %1058  ;;  %v1081_v22 = vadd.f32 %v1078_v55, %v1077_v38 }
 0x980   :  { %v1061_v6 = vmul.f32 %v1958_v7, %v1059_v32 }
 0x984   :  { %v1064_v30 = vpop.permute.xlu1 %1063 }
 0x985   :  { %v1066_v61 = vmul.f32 %v1960_v8, %v1064_v30 }
 0x987   :  { %v1079_v46 = vadd.f32 %v1066_v61, %v1061_v6 }
 0x989   :  { %v1074_v21 = vpop.permute.xlu1 %1073 }
 0x98a   :  { %v1076_v58 = vmul.f32 %v1964_v10, %v1074_v21 }
 0x98c   :  { %v1080_v40 = vadd.f32 %v1076_v58, %v1071_v0 }
 0x98e   :  { %v1082_v26 = vadd.f32 %v1080_v40, %v1079_v46 }
 0x990   :  { %v1083_v14 = vadd.f32 %v1082_v26, %v1081_v22 }
 0x992   :  { %v1084_v18 = vmul.f32 %v2328_v56, %v1083_v14  ;;  %v1088_v24 = vmul.f32 %v2341_v43, %v1083_v14  ;;  %v1096_v41 = vmul.f32 %v2366_v54, %v1083_v14  ;;  %v1092_v32 = vmul.f32 %v2379_v15, %v1083_v14 }
 0x994   :  { %v1086_v23 = vadd.f32 %v1085_v19, %v1084_v18  ;;  %v1090_v25 = vadd.f32 %v1089_v28, %v1088_v24  ;;  %v1098_v44 = vadd.f32 %v1097_v57, %v1096_v41  ;;  %v1094_v39 = vadd.f32 %v1093_v33, %v1092_v32 }
 0x996   :  { %v1087_v59 = vadd.f32 %v2354_v51, %v1086_v23  ;;  %v1091_v27 = vadd.f32 %v2360_v60, %v1090_v25  ;;  %v1099_v30 = vadd.f32 %v2392_v16, %v1098_v44  ;;  %v1095_v48 = vadd.f32 %v2431_v52, %v1094_v39 }
 0x998   :  { %v1498_v42 = vmul.f32 -1.442695, %v1087_v59  ;;  %v1499_v45 = vmul.f32 -1.442695, %v1091_v27  ;;  %v1500_v63 = vmul.f32 -1.442695, %v1099_v30 }
 0x99a   :  { %1802 = vpow2.f32 %v1498_v42 }
 0x99b   :  { %1804 = vpow2.f32 %v1499_v45 }
 0x99c   :  { %1806 = vpow2.f32 %v1500_v63 }
 0x99d   :  { %1808 = vtanh.f32 %v1095_v48 }
 0x9a7   :  { %v1803_v53 = vpop.eup %1802 }
 0x9a8   :  { %v1805_v61 = vpop.eup %1804  ;;  %v1103_v21 = vadd.f32 1.0, %v1803_v53 }
 0x9a9   :  { %v1109_v0 = vadd.f32 1.0, %v1805_v61  ;;  %v1807_v55 = vpop.eup %1806 }
 0x9aa   :  { %1810 = vrcp.f32 %v1103_v21  ;;  %v1809_v6 = vpop.eup %1808  ;;  %v1116_v46 = vadd.f32 1.0, %v1807_v55 }
 0x9ab   :  { %1812 = vrcp.f32 %v1109_v0 }
 0x9ac   :  { %1814 = vrcp.f32 %v1116_v46 }
 0x9b7   :  { %v1811_v58 = vpop.eup %1810 }
 0x9b8   :  { %v1813_v38 = vpop.eup %1812  ;;  %v1120_v40 = vmul.f32 %v1811_v58, %v1809_v6 }
 0x9b9   :  { %v1119_v22 = vmul.f32 %v1813_v38, %v2583_v37  ;;  %v1815_v18 = vpop.eup %1814 }
 0x9bb   :  { %v1121_v26 = vadd.f32 %v1120_v40, %v1119_v22 }
 0x9bd   :  { %1816 = vtanh.f32 %v1121_v26  ;;  %v2631_v14 = vsel %vm1125_vm7, %v1121_v26, %v2583_v37 }
 0x9ca   :  { %v1817_v19 = vpop.eup %1816 }
 0x9cb   :  { %v1123_v24 = vmul.f32 %v1817_v19, %v1815_v18 }
 0x9cd   :  { %v2634_v28 = vsel %vm1125_vm7, %v1123_v24, %v2586_v49 }
 0x9ce   :  { %1137 = vperm.xlu0 %1605, %v2634_v28   ;;  %1132 = vperm.xlu1 %1604, %v2634_v28   ;;  %v1174_v6 = vmul.f32 %v2334_v47, %v2634_v28  ;;  %v1178_v38 = vmul.f32 %v2347_v50, %v2634_v28  ;;  %v1182_v50 = vmul.f32 %v2385_v13, %v2634_v28 }
 0x9d2   :  { %1608 = vset.pattern.permute.xlu0 %v1919_v35  ;;  %1606 = vset.pattern.permute.xlu1 %v1918_v34 }
 0x9d3   :  { %1152 = vperm.xlu0 %1608, %v2634_v28   ;;  %1142 = vperm.xlu1 %1606, %v2634_v28  }
 0x9d7   :  { %1607 = vset.pattern.permute.xlu1 %v1915_v3  ;;  %1611 = vset.pattern.permute.xlu0 %v1913_v1 }
 0x9d8   :  { %1147 = vperm.xlu1 %1607, %v2634_v28  }
 0x9dc   :  { %1609 = vset.pattern.permute.xlu1 %v1920_v36 }
 0x9dd   :  { %1157 = vperm.xlu1 %1609, %v2634_v28  }
 0x9e1   :  { %1610 = vset.pattern.permute.xlu1 %v1917_v31 }
 0x9e2   :  { %1162 = vperm.xlu1 %1610, %v2634_v28  }
 0x9e6   :  { %1612 = vset.pattern.permute.xlu1 %v1914_v2 }
 0xa49   :  { %v1133_v37 = vpop.permute.xlu1 %1132  ;;  %v1138_v25 = vpop.permute.xlu0 %1137 }
 0xa4a   :  { %v1140_v42 = vmul.f32 %v1968_v11, %v1138_v25  ;;  %v1135_v45 = vmul.f32 %v1976_v17, %v1133_v37 }
 0xa4c   :  { %v1166_v63 = vadd.f32 %v1135_v45, %v2457_v29 }
 0xa4e   :  { %v1143_v49 = vpop.permute.xlu1 %1142  ;;  %v1153_v41 = vpop.permute.xlu0 %1152 }
 0xa4f   :  { %v1145_v27 = vmul.f32 %v1970_v12, %v1143_v49  ;;  %v1155_v32 = vmul.f32 %v1960_v8, %v1153_v41 }
 0xa51   :  { %v1167_v33 = vadd.f32 %v1145_v27, %v1140_v42 }
 0xa53   :  { %v1148_v23 = vpop.permute.xlu1 %1147  ;;  %v1170_v61 = vadd.f32 %v1167_v33, %v1166_v63 }
 0xa54   :  { %v1150_v57 = vmul.f32 %v1958_v7, %v1148_v23 }
 0xa56   :  { %v1168_v48 = vadd.f32 %v1155_v32, %v1150_v57 }
 0xa58   :  { %v1158_v59 = vpop.permute.xlu1 %1157 }
 0xa59   :  { %v1160_v30 = vmul.f32 %v1962_v9, %v1158_v59 }
 0xa5d   :  { %v1163_v44 = vpop.permute.xlu1 %1162 }
 0xa5e   :  { %v1165_v39 = vmul.f32 %v1964_v10, %v1163_v44 }
 0xa60   :  { %v1169_v53 = vadd.f32 %v1165_v39, %v1160_v30 }
 0xa62   :  { %v1171_v21 = vadd.f32 %v1169_v53, %v1168_v48 }
 0xa64   :  { %v1172_v0 = vadd.f32 %v1171_v21, %v1170_v61 }
 0xa66   :  { %v1173_v55 = vmul.f32 %v2328_v56, %v1172_v0  ;;  %v1177_v58 = vmul.f32 %v2341_v43, %v1172_v0  ;;  %v1185_v18 = vmul.f32 %v2366_v54, %v1172_v0  ;;  %v1186_v56 = vmul.f32 %v2372_v62, %v2634_v28 }
 0xa67   :  { %v1181_v43 = vmul.f32 %v2379_v15, %v1172_v0 }
 0xa68   :  { %v1175_v46 = vadd.f32 %v1174_v6, %v1173_v55  ;;  %v1179_v40 = vadd.f32 %v1178_v38, %v1177_v58  ;;  %v1187_v47 = vadd.f32 %v1186_v56, %v1185_v18  ;;  %v2709_v56 = vld [vmem:[%s2859_s1] sm:$0x3] }
 0xa6a   :  { %v1176_v22 = vadd.f32 %v2354_v51, %v1175_v46  ;;  %v1180_v26 = vadd.f32 %v2360_v60, %v1179_v40  ;;  %v1188_v37 = vadd.f32 %v2392_v16, %v1187_v47  ;;  %v1183_v51 = vadd.f32 %v1182_v50, %v1181_v43  ;;  %v2715_v43 = vld [vmem:[%s2859_s1 + $0x8] sm:$0x3] }
 0xa6c   :  { %v1501_v19 = vmul.f32 -1.442695, %v1176_v22  ;;  %v1502_v24 = vmul.f32 -1.442695, %v1180_v26  ;;  %v1503_v49 = vmul.f32 -1.442695, %v1188_v37  ;;  %v1184_v60 = vadd.f32 %v2431_v52, %v1183_v51 }
 0xa6d   :  { %v2722_v37 = vld [vmem:[%s2859_s1 + $0x2] sm:$0x3] }
 0xa6e   :  { %1818 = vpow2.f32 %v1501_v19 }
 0xa6f   :  { %1820 = vpow2.f32 %v1502_v24 }
 0xa70   :  { %1822 = vpow2.f32 %v1503_v49  ;;  %v2728_v49 = vld [vmem:[%s2859_s1 + $0xa] sm:$0x3] }
 0xa71   :  { %1824 = vtanh.f32 %v1184_v60 }
 0xa7b   :  { %v1819_v54 = vpop.eup %1818 }
 0xa7c   :  { %v1821_v23 = vpop.eup %1820  ;;  %v1192_v25 = vadd.f32 1.0, %v1819_v54 }
 0xa7d   :  { %v1198_v59 = vadd.f32 1.0, %v1821_v23  ;;  %v1823_v62 = vpop.eup %1822 }
 0xa7e   :  { %1826 = vrcp.f32 %v1192_v25  ;;  %v1825_v27 = vpop.eup %1824  ;;  %v1205_v41 = vadd.f32 1.0, %v1823_v62  ;;  %v2735_v25 = vld [vmem:[%s2859_s1 + $0x10] sm:$0x3]  ;;  %v2741_v62 = vld [vmem:[%s2859_s1 + $0x12] sm:$0x3] }
 0xa7f   :  { %1828 = vrcp.f32 %v1198_v59 }
 0xa80   :  { %1830 = vrcp.f32 %v1205_v41 }
 0xa8b   :  { %v1827_v15 = vpop.eup %1826 }
 0xa8c   :  { %v1829_v13 = vpop.eup %1828  ;;  %v1209_v16 = vmul.f32 %v1827_v15, %v1825_v27  ;;  %v2747_v15 = vld [vmem:[%s2859_s1 + $0x6] sm:$0x3] }
 0xa8d   :  { %v1208_v42 = vmul.f32 %v1829_v13, %v2631_v14  ;;  %v1831_v44 = vpop.eup %1830 }
 0xa8f   :  { %v1210_v45 = vadd.f32 %v1209_v16, %v1208_v42  ;;  %v2753_v42 = vld [vmem:[%s2859_s1 + $0xe] sm:$0x3] }
 0xa91   :  { %1832 = vtanh.f32 %v1210_v45  ;;  %v2679_v57 = vsel %vm1214_vm9, %v1210_v45, %v2631_v14 }
 0xa9e   :  { %v1833_v32 = vpop.eup %1832 }
 0xa9f   :  { %v1212_v33 = vmul.f32 %v1833_v32, %v1831_v44  ;;  %v2760_v32 = vld [vmem:[%s2859_s1 + $0x4] sm:$0x3] }
 0xaa1   :  { %v2682_v30 = vsel %vm1214_vm9, %v1212_v33, %v2634_v28 }
 0xaa2   :  { %1226 = vperm.xlu1 %1612, %v2682_v30   ;;  %1221 = vperm.xlu0 %1611, %v2682_v30   ;;  %v1263_v50 = vmul.f32 %v2715_v43, %v2682_v30  ;;  %v1267_v60 = vmul.f32 %v2728_v49, %v2682_v30  ;;  %v1275_v45 = vmul.f32 %v2753_v42, %v2682_v30 }
 0xaa6   :  { %1613 = vset.pattern.permute.xlu1 %v1918_v34  ;;  %1614 = vset.pattern.permute.xlu0 %v1915_v3 }
 0xaa7   :  { %1231 = vperm.xlu1 %1613, %v2682_v30   ;;  %1236 = vperm.xlu0 %1614, %v2682_v30  }
 0xaab   :  { %1615 = vset.pattern.permute.xlu1 %v1919_v35  ;;  %1617 = vset.pattern.permute.xlu0 %v1917_v31 }
 0xaac   :  { %1241 = vperm.xlu1 %1615, %v2682_v30   ;;  %1251 = vperm.xlu0 %1617, %v2682_v30  }
 0xab0   :  { %1616 = vset.pattern.permute.xlu1 %v1920_v36  ;;  %1620 = vset.pattern.permute.xlu0 %v1918_v34 }
 0xab1   :  { %1246 = vperm.xlu1 %1616, %v2682_v30  }
 0xab5   :  { %1618 = vset.pattern.permute.xlu1 %v1913_v1 }
 0xb1d   :  { %v1227_v14 = vpop.permute.xlu1 %1226  ;;  %v1222_v28 = vpop.permute.xlu0 %1221 }
 0xb1e   :  { %v1229_v21 = vmul.f32 %v1968_v11, %v1227_v14  ;;  %v1224_v0 = vmul.f32 %v1976_v17, %v1222_v28  ;;  %v2766_v14 = vld [vmem:[%s2859_s1 + $0xc] sm:$0x3] }
 0xb1f   :  { %v1271_v28 = vmul.f32 %v2766_v14, %v2682_v30 }
 0xb20   :  { %v1255_v40 = vadd.f32 %v1224_v0, %v2457_v29 }
 0xb22   :  { %v1232_v39 = vpop.permute.xlu1 %1231  ;;  %v1237_v63 = vpop.permute.xlu0 %1236 }
 0xb23   :  { %v1234_v53 = vmul.f32 %v1970_v12, %v1232_v39  ;;  %v1239_v58 = vmul.f32 %v1958_v7, %v1237_v63  ;;  %v2773_v39 = vld [vmem:[%s2859_s1 + $0x16] sm:$0x3] }
 0xb25   :  { %v1256_v34 = vadd.f32 %v1234_v53, %v1229_v21 }
 0xb27   :  { %v1242_v48 = vpop.permute.xlu1 %1241  ;;  %v1252_v61 = vpop.permute.xlu0 %1251  ;;  %v1259_v18 = vadd.f32 %v1256_v34, %v1255_v40 }
 0xb28   :  { %v1244_v55 = vmul.f32 %v1960_v8, %v1242_v48  ;;  %v1254_v38 = vmul.f32 %v1964_v10, %v1252_v61 }
 0xb2a   :  { %v1257_v22 = vadd.f32 %v1244_v55, %v1239_v58 }
 0xb2c   :  { %v1247_v6 = vpop.permute.xlu1 %1246 }
 0xb2d   :  { %v1249_v46 = vmul.f32 %v1962_v9, %v1247_v6 }
 0xb2f   :  { %v1258_v26 = vadd.f32 %v1254_v38, %v1249_v46 }
 0xb31   :  { %v1260_v19 = vadd.f32 %v1258_v26, %v1257_v22 }
 0xb33   :  { %v1261_v24 = vadd.f32 %v1260_v19, %v1259_v18 }
 0xb35   :  { %v1262_v47 = vmul.f32 %v2709_v56, %v1261_v24  ;;  %v1266_v51 = vmul.f32 %v2722_v37, %v1261_v24  ;;  %v1274_v13 = vmul.f32 %v2747_v15, %v1261_v24  ;;  %v1270_v33 = vmul.f32 %v2760_v32, %v1261_v24 }
 0xb37   :  { %v1264_v54 = vadd.f32 %v1263_v50, %v1262_v47  ;;  %v1268_v23 = vadd.f32 %v1267_v60, %v1266_v51  ;;  %v1276_v44 = vadd.f32 %v1275_v45, %v1274_v13  ;;  %v1272_v48 = vadd.f32 %v1271_v28, %v1270_v33 }
 0xb39   :  { %v1265_v59 = vadd.f32 %v2735_v25, %v1264_v54  ;;  %v1269_v27 = vadd.f32 %v2741_v62, %v1268_v23  ;;  %v1277_v63 = vadd.f32 %v2773_v39, %v1276_v44  ;;  %v1273_v61 = vadd.f32 %v2431_v52, %v1272_v48 }
 0xb3b   :  { %v1504_v41 = vmul.f32 -1.442695, %v1265_v59  ;;  %v1505_v16 = vmul.f32 -1.442695, %v1269_v27  ;;  %v1506_v53 = vmul.f32 -1.442695, %v1277_v63 }
 0xb3d   :  { %1834 = vpow2.f32 %v1504_v41 }
 0xb3e   :  { %1836 = vpow2.f32 %v1505_v16 }
 0xb3f   :  { %1838 = vpow2.f32 %v1506_v53 }
 0xb40   :  { %1840 = vtanh.f32 %v1273_v61 }
 0xb4a   :  { %v1835_v21 = vpop.eup %1834 }
 0xb4b   :  { %v1837_v0 = vpop.eup %1836  ;;  %v1281_v55 = vadd.f32 1.0, %v1835_v21 }
 0xb4c   :  { %v1287_v6 = vadd.f32 1.0, %v1837_v0  ;;  %v1839_v34 = vpop.eup %1838 }
 0xb4d   :  { %1842 = vrcp.f32 %v1281_v55  ;;  %v1841_v58 = vpop.eup %1840  ;;  %v1294_v40 = vadd.f32 1.0, %v1839_v34 }
 0xb4e   :  { %1844 = vrcp.f32 %v1287_v6 }
 0xb4f   :  { %1846 = vrcp.f32 %v1294_v40 }
 0xb5a   :  { %v1843_v38 = vpop.eup %1842 }
 0xb5b   :  { %v1845_v46 = vpop.eup %1844  ;;  %v1298_v22 = vmul.f32 %v1843_v38, %v1841_v58 }
 0xb5c   :  { %v1297_v26 = vmul.f32 %v1845_v46, %v2679_v57  ;;  %v1847_v24 = vpop.eup %1846 }
 0xb5e   :  { %v2785_v18 = vadd.f32 %v1298_v22, %v1297_v26 }
 0xb60   :  { %1848 = vtanh.f32 %v2785_v18  ;;  %v1306_v19 = vsel %vm2781_vm11, %v2785_v18, %v2679_v57  ;;  %v24_v57 = vld [vmem:[%s2859_s1 + $0x18] sm:$0x3] }
 0xb6d   :  { %v1849_v47 = vpop.eup %1848 }
 0xb6e   :  { %v1301_v50 = vmul.f32 %v1849_v47, %v1847_v24  ;;  %v1396_v47 = vmul.u32 2, %v1950_v5 }
 0xb70   :  { %v2795_v51 = vsel %vm2781_vm11, %v1301_v50, %v2682_v30  ;;  %v1398_v50 = vshrl.u32 %v27_v4, 7 }
 0xb71   :  { %1320 = vperm.xlu0 %1620, %v2795_v51   ;;  %1310 = vperm.xlu1 %1618, %v2795_v51  }
 0xb75   :  { %1623 = vset.pattern.permute.xlu0 %v1920_v36  ;;  %1619 = vset.pattern.permute.xlu1 %v1914_v2 }
 0xb76   :  { %1335 = vperm.xlu0 %1623, %v2795_v51   ;;  %1315 = vperm.xlu1 %1619, %v2795_v51  }
 0xb7a   :  { %1621 = vset.pattern.permute.xlu1 %v1915_v3  ;;  %1625 = vset.pattern.permute.xlu0 %v1913_v1 }
 0xb7b   :  { %1325 = vperm.xlu1 %1621, %v2795_v51  }
 0xb7f   :  { %1622 = vset.pattern.permute.xlu1 %v1919_v35 }
 0xb80   :  { %1330 = vperm.xlu1 %1622, %v2795_v51  }
 0xb84   :  { %1624 = vset.pattern.permute.xlu1 %v1917_v31 }
 0xb85   :  { %1340 = vperm.xlu1 %1624, %v2795_v51  }
 0xbec   :  { %v1311_v36 = vpop.permute.xlu1 %1310  ;;  %v1321_v60 = vpop.permute.xlu0 %1320 }
 0xbed   :  { %v1323_v1 = vmul.f32 %v1970_v12, %v1321_v60  ;;  %v1313_v59 = vmul.f32 %v1976_v17, %v1311_v36  ;;  %v1399_v36 = vadd.s32 %v1398_v50, %v1396_v47 }
 0xbef   :  { %v1344_v45 = vadd.f32 %v1313_v59, %v2457_v29  ;;  %vm1419_vm13 = vcmp.ge.s32.totalorder %v1399_v36, 8  ;;  %vm1420_vm14 = vcmp.lt.s32.totalorder %v1399_v36, 16  ;;  %vm1401_vm1 = vcmp.ge.s32.totalorder %v1399_v36, 0 }
 0xbf0   :  { %vm1402_vm2 = vcmp.lt.s32.totalorder %v1399_v36, 8  ;;  %vm1421_vm3 = vmand %vm1419_vm13, %vm1420_vm14 }
 0xbf1   :  { %v1316_v2 = vpop.permute.xlu1 %1315  ;;  %v1336_v3 = vpop.permute.xlu0 %1335  ;;  %vm1403_vm4 = vmand %vm1401_vm1, %vm1402_vm2 }
 0xbf2   :  { %v1318_v23 = vmul.f32 %v1968_v11, %v1316_v2  ;;  %v1338_v13 = vmul.f32 %v1962_v9, %v1336_v3  ;;  %v1356_v9 = vmul.f32 %v2728_v49, %v2795_v51  ;;  %v1360_v49 = vmul.f32 %v2766_v14, %v2795_v51 }
 0xbf4   :  { %v1345_v31 = vadd.f32 %v1323_v1, %v1318_v23 }
 0xbf6   :  { %v1326_v30 = vpop.permute.xlu1 %1325  ;;  %v1348_v11 = vadd.f32 %v1345_v31, %v1344_v45 }
 0xbf7   :  { %v1328_v41 = vmul.f32 %v1958_v7, %v1326_v30 }
 0xbfb   :  { %v1331_v54 = vpop.permute.xlu1 %1330 }
 0xbfc   :  { %v1333_v35 = vmul.f32 %v1960_v8, %v1331_v54  ;;  %v1352_v8 = vmul.f32 %v2715_v43, %v2795_v51 }
 0xbfe   :  { %v1346_v44 = vadd.f32 %v1333_v35, %v1328_v41 }
 0xc00   :  { %v1341_v27 = vpop.permute.xlu1 %1340 }
 0xc01   :  { %v1343_v16 = vmul.f32 %v1964_v10, %v1341_v27 }
 0xc03   :  { %v1347_v33 = vadd.f32 %v1343_v16, %v1338_v13 }
 0xc05   :  { %v1349_v28 = vadd.f32 %v1347_v33, %v1346_v44 }
 0xc07   :  { %v1350_v63 = vadd.f32 %v1349_v28, %v1348_v11  ;;  %v25_v11 = vld [vmem:[%s2859_s1 + $0x1a] sm:$0x1] }
 0xc09   :  { %v1351_v12 = vmul.f32 %v2709_v56, %v1350_v63  ;;  %v1355_v48 = vmul.f32 %v2722_v37, %v1350_v63  ;;  %v1363_v61 = vmul.f32 %v2747_v15, %v1350_v63  ;;  %v1364_v56 = vmul.f32 %v2753_v42, %v2795_v51 }
 0xc0a   :  { %v1359_v37 = vmul.f32 %v2760_v32, %v1350_v63 }
 0xc0b   :  { %v1353_v7 = vadd.f32 %v1352_v8, %v1351_v12  ;;  %v1357_v53 = vadd.f32 %v1356_v9, %v1355_v48  ;;  %v1365_v43 = vadd.f32 %v1364_v56, %v1363_v61 }
 0xc0d   :  { %v1354_v10 = vadd.f32 %v2735_v25, %v1353_v7  ;;  %v1358_v29 = vadd.f32 %v2741_v62, %v1357_v53  ;;  %v1366_v55 = vadd.f32 %v2773_v39, %v1365_v43  ;;  %v1361_v25 = vadd.f32 %v1360_v49, %v1359_v37  ;;  %v1890_v62 = vld [vmem:[%s2859_s1 + $0x14] sm:$0x3] }
 0xc0f   :  { %v1507_v21 = vmul.f32 -1.442695, %v1354_v10  ;;  %v1508_v0 = vmul.f32 -1.442695, %v1358_v29  ;;  %v1509_v6 = vmul.f32 -1.442695, %v1366_v55  ;;  %v1362_v15 = vadd.f32 %v1890_v62, %v1361_v25 }
 0xc11   :  { %1850 = vpow2.f32 %v1507_v21 }
 0xc12   :  { %1852 = vpow2.f32 %v1508_v0 }
 0xc13   :  { %1854 = vpow2.f32 %v1509_v6 }
 0xc14   :  { %1856 = vtanh.f32 %v1362_v15 }
 0xc1e   :  { %v1851_v34 = vpop.eup %1850 }
 0xc1f   :  { %v1853_v58 = vpop.eup %1852  ;;  %v1370_v42 = vadd.f32 1.0, %v1851_v34 }
 0xc20   :  { %v1376_v38 = vadd.f32 1.0, %v1853_v58  ;;  %v1855_v32 = vpop.eup %1854 }
 0xc21   :  { %1858 = vrcp.f32 %v1370_v42  ;;  %v1857_v46 = vpop.eup %1856  ;;  %v1383_v39 = vadd.f32 1.0, %v1855_v32 }
 0xc22   :  { %1860 = vrcp.f32 %v1376_v38 }
 0xc23   :  { %1862 = vrcp.f32 %v1383_v39 }
 0xc2e   :  { %v1859_v14 = vpop.eup %1858 }
 0xc2f   :  { %v1861_v40 = vpop.eup %1860  ;;  %v1387_v22 = vmul.f32 %v1859_v14, %v1857_v46 }
 0xc30   :  { %v1386_v26 = vmul.f32 %v1861_v40, %v1306_v19  ;;  %v1863_v2 = vpop.eup %1862 }
 0xc32   :  { %v1388_v24 = vadd.f32 %v1387_v22, %v1386_v26 }
 0xc34   :  { %1864 = vtanh.f32 %v1388_v24 }
 0xc41   :  { %v1865_v30 = vpop.eup %1864 }
 0xc42   :  { %v1390_v52 = vmul.f32 %v1865_v30, %v1863_v2 }
 0xc44   :  { %v1395_v4 = vsel %vm1392_vm15, %v1390_v52, %v2795_v51 }
 0xc45   :  { %v1400_v18 = vmul.f32 %v1395_v4, %v24_v57 }
 0xc47   :  { %v1422_v19 = vsel %vm1421_vm3, %v1400_v18, 0.0  ;;  %v1404_v60 = vsel %vm1403_vm4, %v1400_v18, 0.0 }
 0xc48   :  { %v1423_v54 = vsel %vm1405_vm5, %v1422_v19, 0.0  ;;  %v1406_v23 = vsel %vm1405_vm5, %v1404_v60, 0.0 }
 0xc49   :  { %v1424_v3 = vrot.slane %v1423_v54, 4  ;;  %v1407_v5 = vrot.slane %v1406_v23, 4 }
 0xc4b   :  { %v1425_v1 = vadd.f32 %v1424_v3, %v1423_v54  ;;  %v1408_v59 = vadd.f32 %v1407_v5, %v1406_v23 }
 0xc4d   :  { %v1426_v35 = vrot.slane %v1425_v1, 2  ;;  %v1409_v27 = vrot.slane %v1408_v59, 2 }
 0xc4f   :  { %v1427_v13 = vadd.f32 %v1426_v35, %v1425_v1  ;;  %v1410_v31 = vadd.f32 %v1409_v27, %v1408_v59 }
 0xc51   :  { %v1428_v41 = vrot.slane %v1427_v13, 1  ;;  %v1411_v16 = vrot.slane %v1410_v31, 1 }
 0xc53   :  { %v1429_v45 = vadd.f32 %v1428_v41, %v1427_v13  ;;  %v1412_v51 = vadd.f32 %v1411_v16, %v1410_v31 }
 0xc55   :  { %v1430_v44 = vsel %vm1413_vm0, %v1429_v45, 0.0  ;;  %v1414_v33 = vsel %vm1413_vm0, %v1412_v51, 0.0 }
 0xc56   :  { %1431 = vadd.xlane.f32.xlu0 %v1430_v44  ;;  %1415 = vadd.xlane.f32.xlu1 %v1414_v33 }
 0xc6c   :  { %1437 = vperm.xlu0 %1625, %v25_v11  }
 0xcdf   :  { %v1432_v28 = vpop.xlane.xlu0 %1431  ;;  %v1416_v63 = vpop.xlane.xlu1 %1415 }
 0xce0   :  { %v1433_v12 = vmul.f32 %v1976_v17, %v1432_v28  ;;  %v1417_v8 = vmul.f32 %v1980_v20, %v1416_v63 }
 0xce2   :  { %v1434_v48 = vadd.f32 %v1433_v12, %v1417_v8 }
 0xce7   :  { %v1438_v9 = vpop.permute.xlu0 %1437 }
 0xce8   :  { %v1440_v7 = vadd.f32 %v1438_v9, %v1434_v48 }
 0xcea   :  { %1442 = vst.msk [vmem:[#allocation2] sm:$0x1] %vm1441_vm6, %v1440_v7 }
 0xceb   :  { %1902 = shalt.err (!%p1899_p4)
}
 0xcec   :  { %1452 = dma.vmem_to_hbm [thread:$0]  %s1450_s4, 16, %s2860_s2, [#allocation3]  }
 0xced   :  { %1911 = dma.done.wait [#allocation3], 16  }
 0xcee   :  { %1912 = vsyncadd [#allocation3], 4294967280 }
 0xcef   :  { %1456 = vsyncpa [#allocation3], 1 }

</bundles_post_ra>
